<compile_context>
chip_gen: v6e
topology: v6e:2x2x1
jax: 0.10.0
libtpu: 0.0.40
codegen_flags: <defaults>
</compile_context>

<pallas_src>
import jax
import jax.numpy as jnp
from jax.experimental import pallas as pl
from jax.experimental.pallas import tpu as pltpu


# ------------------------------ small helpers ------------------------------

def _round_up(x, m):
    return (x + m - 1) // m * m


def _pad2(x, m0, m1):
    M, N = x.shape
    return jnp.pad(x, ((0, _round_up(M, m0) - M), (0, _round_up(N, m1) - N)))


def _choose_tk(Kp, cap=1024):
    """Largest K tile (multiple of 128) that divides Kp, capped at `cap`."""
    if Kp <= cap:
        return Kp
    for t in range(cap, 0, -128):
        if Kp % t == 0:
            return t
    return 128


def _im2col_nhwc(x, kh, kw, sh, sw, ph, pw):
    """Extract conv patches from an NHWC tensor.
    Returns (N*Ho*Wo, kh*kw*C) with column ordering (i, j, c)."""
    N, H, W, C = x.shape
    xp = jnp.pad(x, ((0, 0), (ph, ph), (pw, pw), (0, 0)))
    Ho = (H + 2 * ph - kh) // sh + 1
    Wo = (W + 2 * pw - kw) // sw + 1
    cols = []
    for i in range(kh):
        for j in range(kw):
            cols.append(xp[:, i:i + sh * (Ho - 1) + 1:sh,
                              j:j + sw * (Wo - 1) + 1:sw, :])   # (N,Ho,Wo,C)
    st = jnp.stack(cols, axis=3)                                # (N,Ho,Wo,kh*kw,C)
    return st.reshape(N * Ho * Wo, kh * kw * C), Ho, Wo


# ----------------------------- Pallas kernels ------------------------------

def _make_matmul_bn_relu_kernel(m_true, eps):
    """K-tiled matmul accumulating directly into the resident output block,
    with a fused bias + batch-stats BatchNorm + ReLU epilogue."""
    inv_m = 1.0 / float(m_true)

    def kernel(x_ref, w_ref, b_ref, g_ref, bt_ref, o_ref):
        k = pl.program_id(0)

        @pl.when(k == 0)
        def _():
            o_ref[...] = jnp.zeros_like(o_ref)

        o_ref[...] += jnp.dot(x_ref[...], w_ref[...],
                              preferred_element_type=jnp.float32)

        @pl.when(k == pl.num_programs(0) - 1)
        def _():
            y = o_ref[...] + b_ref[...]                       # bias
            rows = jax.lax.broadcasted_iota(jnp.int32, y.shape, 0)
            ym = jnp.where(rows < m_true, y, 0.0)             # mask padded rows
            s = jnp.sum(ym, axis=0, keepdims=True)
            sq = jnp.sum(ym * ym, axis=0, keepdims=True)
            mean = s * inv_m
            var = jnp.maximum(sq * inv_m - mean * mean, 0.0)  # biased, clamped
            a = g_ref[...] * jax.lax.rsqrt(var + eps)
            c = bt_ref[...] - mean * a
            o_ref[...] = jnp.maximum(y * a + c, 0.0)          # scale-shift+ReLU

    return kernel


def _matmul_bias_kernel(x_ref, w_ref, b_ref, o_ref):
    k = pl.program_id(0)

    @pl.when(k == 0)
    def _():
        o_ref[...] = jnp.zeros_like(o_ref)

    o_ref[...] += jnp.dot(x_ref[...], w_ref[...],
                          preferred_element_type=jnp.float32)

    @pl.when(k == pl.num_programs(0) - 1)
    def _():
        o_ref[...] += b_ref[...]


def _make_meanvar_reparam_kernel(cp):
    """Fused [mean|var] = x @ Wcat + bcat and z = mean + exp(var) * noise."""

    def kernel(x_ref, w_ref, b_ref, n_ref, mv_ref, z_ref):
        k = pl.program_id(0)

        @pl.when(k == 0)
        def _():
            mv_ref[...] = jnp.zeros_like(mv_ref)

        mv_ref[...] += jnp.dot(x_ref[...], w_ref[...],
                               preferred_element_type=jnp.float32)

        @pl.when(k == pl.num_programs(0) - 1)
        def _():
            mv = mv_ref[...] + b_ref[...]
            mv_ref[...] = mv
            mean = mv[:, :cp]
            logv = mv[:, cp:]
            z_ref[...] = mean + jnp.exp(logv) * n_ref[...]

    return kernel


# ------------------------------ Pallas wrappers -----------------------------

def matmul_bn_relu(x, w, b, gamma, beta, eps=1e-5):
    """relu(batchnorm(x @ w + b)) with batch (column) statistics. x:(M,K)."""
    M, K = x.shape
    N = w.shape[1]
    Mp, Kp, Np = _round_up(M, 16), _round_up(K, 128), _round_up(N, 128)
    xp = _pad2(x.astype(jnp.float32), 16, 128).astype(jnp.bfloat16)
    wp = _pad2(w.astype(jnp.float32), 128, 128).astype(jnp.bfloat16)
    bp = jnp.pad(b.astype(jnp.float32), (0, Np - N)).reshape(1, Np)
    gp = jnp.pad(gamma.astype(jnp.float32), (0, Np - N)).reshape(1, Np)
    btp = jnp.pad(beta.astype(jnp.float32), (0, Np - N)).reshape(1, Np)
    tk = _choose_tk(Kp)
    out = pl.pallas_call(
        _make_matmul_bn_relu_kernel(M, eps),
        out_shape=jax.ShapeDtypeStruct((Mp, Np), jnp.float32),
        grid_spec=pltpu.PrefetchScalarGridSpec(
            num_scalar_prefetch=0,
            grid=(Kp // tk,),
            in_specs=[
                pl.BlockSpec((Mp, tk), lambda k: (0, k)),
                pl.BlockSpec((tk, Np), lambda k: (k, 0)),
                pl.BlockSpec((1, Np), lambda k: (0, 0)),
                pl.BlockSpec((1, Np), lambda k: (0, 0)),
                pl.BlockSpec((1, Np), lambda k: (0, 0)),
            ],
            out_specs=pl.BlockSpec((Mp, Np), lambda k: (0, 0)),
        ),
        compiler_params=pltpu.CompilerParams(
            dimension_semantics=("arbitrary",)),
    )(xp, wp, bp, gp, btp)
    return out[:M, :N]


def matmul_bias(x, w, b):
    """y = x @ w + b. x:(M,K), w:(K,N), b:(N,)."""
    M, K = x.shape
    N = w.shape[1]
    Mp, Kp, Np = _round_up(M, 16), _round_up(K, 128), _round_up(N, 128)
    xp = _pad2(x.astype(jnp.float32), 16, 128).astype(jnp.bfloat16)
    wp = _pad2(w.astype(jnp.float32), 128, 128).astype(jnp.bfloat16)
    bp = jnp.pad(b.astype(jnp.float32), (0, Np - N)).reshape(1, Np)
    tk = _choose_tk(Kp)
    out = pl.pallas_call(
        _matmul_bias_kernel,
        out_shape=jax.ShapeDtypeStruct((Mp, Np), jnp.float32),
        grid_spec=pltpu.PrefetchScalarGridSpec(
            num_scalar_prefetch=0,
            grid=(Kp // tk,),
            in_specs=[
                pl.BlockSpec((Mp, tk), lambda k: (0, k)),
                pl.BlockSpec((tk, Np), lambda k: (k, 0)),
                pl.BlockSpec((1, Np), lambda k: (0, 0)),
            ],
            out_specs=pl.BlockSpec((Mp, Np), lambda k: (0, 0)),
        ),
        compiler_params=pltpu.CompilerParams(
            dimension_semantics=("arbitrary",)),
    )(xp, wp, bp)
    return out[:M, :N]


def meanvar_reparam(x, w_mean, b_mean, w_var, b_var, noise):
    """Fused mean/var Linear layers (PyTorch layout W:(out,in)) + reparam.
    Returns (mean_mat, var_mat, z_mat), each (M, C)."""
    M, K = x.shape
    C = w_mean.shape[0]
    Mp, Kp, Cp = _round_up(M, 16), _round_up(K, 128), _round_up(C, 128)
    wm = jnp.pad(w_mean.T.astype(jnp.float32), ((0, Kp - K), (0, Cp - C)))
    wv = jnp.pad(w_var.T.astype(jnp.float32), ((0, Kp - K), (0, Cp - C)))
    wcat = jnp.concatenate([wm, wv], axis=1).astype(jnp.bfloat16)   # (Kp, 2Cp)
    bcat = jnp.concatenate([
        jnp.pad(b_mean.astype(jnp.float32), (0, Cp - C)),
        jnp.pad(b_var.astype(jnp.float32), (0, Cp - C))]).reshape(1, 2 * Cp)
    xp = _pad2(x.astype(jnp.float32), 16, 128).astype(jnp.bfloat16)
    npad = jnp.pad(noise.astype(jnp.float32), ((0, Mp - M), (0, Cp - C)))
    tk = _choose_tk(Kp)
    mv, z = pl.pallas_call(
        _make_meanvar_reparam_kernel(Cp),
        out_shape=(jax.ShapeDtypeStruct((Mp, 2 * Cp), jnp.float32),
                   jax.ShapeDtypeStruct((Mp, Cp), jnp.float32)),
        grid_spec=pltpu.PrefetchScalarGridSpec(
            num_scalar_prefetch=0,
            grid=(Kp // tk,),
            in_specs=[
                pl.BlockSpec((Mp, tk), lambda k: (0, k)),
                pl.BlockSpec((tk, 2 * Cp), lambda k: (k, 0)),
                pl.BlockSpec((1, 2 * Cp), lambda k: (0, 0)),
                pl.BlockSpec((Mp, Cp), lambda k: (0, 0)),
            ],
            out_specs=(pl.BlockSpec((Mp, 2 * Cp), lambda k: (0, 0)),
                       pl.BlockSpec((Mp, Cp), lambda k: (0, 0))),
        ),
        compiler_params=pltpu.CompilerParams(
            dimension_semantics=("arbitrary",)),
    )(xp, wcat, bcat, npad)
    return mv[:M, :C], mv[:M, Cp:Cp + C], z[:M, :C]


# --------------------------- layer compositions ----------------------------

def conv2d_bn_relu(x, W, b, gamma, beta, stride, padding):
    """x: NHWC. W: PyTorch Conv2d layout (Cout, Cin, kh, kw). Returns NHWC."""
    Cout, Cin, kh, kw = W.shape
    sh, sw = stride
    ph, pw = padding
    patches, Ho, Wo = _im2col_nhwc(x, kh, kw, sh, sw, ph, pw)
    wm = jnp.transpose(W, (2, 3, 1, 0)).reshape(kh * kw * Cin, Cout)
    y = matmul_bn_relu(patches, wm, b, gamma, beta)   # fused Pallas kernel
    N = x.shape[0]
    return y.reshape(N, Ho, Wo, Cout)


def convT2d_bn_relu(x, W, b, gamma, beta, stride, padding):
    """ConvTranspose2d == dilate input by stride, pad by (k-1-p), conv with the
    spatially flipped, (Cin,Cout)->(Cout,Cin) transposed kernel, stride 1.
    x: NHWC. W: PyTorch ConvTranspose2d layout (Cin, Cout, kh, kw)."""
    Cin, Cout, kh, kw = W.shape
    sh, sw = stride
    ph, pw = padding
    N, H, Wd, C = x.shape
    Hd = (H - 1) * sh + 1
    Wdil = (Wd - 1) * sw + 1
    xd = jnp.zeros((N, Hd, Wdil, C), x.dtype).at[:, ::sh, ::sw, :].set(x)
    Weq = jnp.flip(W, axis=(2, 3)).transpose(1, 0, 2, 3)   # (Cout, Cin, kh, kw)
    return conv2d_bn_relu(xd, Weq, b, gamma, beta, (1, 1),
                          (kh - 1 - ph, kw - 1 - pw))


# ------------------------------- parameters --------------------------------

def init_params(key, features=32):
    F = features

    def nrm(k, shape, scale=0.05):
        return scale * jax.random.normal(k, shape, jnp.float32)

    keys = iter(jax.random.split(key, 32))
    p = {'enc': [], 'dec': []}
    enc_cfg = [(3, F, (2, 3)), (F, 2 * F, (2, 3)),
               (2 * F, 4 * F, (2, 2)), (4 * F, 8 * F, (3, 3))]
    for cin, cout, (kh, kw) in enc_cfg:
        p['enc'].append(dict(w=nrm(next(keys), (cout, cin, kh, kw)),
                             b=nrm(next(keys), (cout,)),
                             gamma=jnp.ones((cout,), jnp.float32),
                             beta=jnp.zeros((cout,), jnp.float32)))
    for name in ('mean', 'var', 'restore'):
        p[name] = dict(w=nrm(next(keys), (8 * F, 8 * F)),
                       b=nrm(next(keys), (8 * F,)))
    dec_cfg = [(8 * F, 4 * F, (3, 3)), (4 * F, 2 * F, (2, 2)),
               (2 * F, F, (3, 2)), (F, 3, (3, 2))]
    for cin, cout, (kh, kw) in dec_cfg:
        p['dec'].append(dict(w=nrm(next(keys), (cin, cout, kh, kw)),
                             b=nrm(next(keys), (cout,)),
                             gamma=jnp.ones((cout,), jnp.float32),
                             beta=jnp.zeros((cout,), jnp.float32)))
    return p


# --------------------------------- forward ---------------------------------

def vae_forward(params, image_nchw, noise, features=32):
    F8 = 8 * features
    x = jnp.transpose(image_nchw, (0, 2, 3, 1))        # NCHW -> NHWC (once)

    for layer in params['enc']:
        x = conv2d_bn_relu(x, layer['w'], layer['b'],
                           layer['gamma'], layer['beta'], (2, 2), (1, 1))

    N, Ho, Wo, C8 = x.shape
    size_nchw = (N, C8, Ho, Wo)                        # torch self.size

    # reproduces torch `x.view(-1, 8F)` on an NCHW-contiguous tensor
    flat = jnp.transpose(x, (0, 3, 1, 2)).reshape(-1, F8)

    mean_mat, var_mat, z_mat = meanvar_reparam(
        flat, params['mean']['w'], params['mean']['b'],
        params['var']['w'], params['var']['b'],
        noise.reshape(flat.shape))

    z_mat = matmul_bias(z_mat, params['restore']['w'].T, params['restore']['b'])
    z = z_mat.reshape(size_nchw)                       # NCHW (torch .reshape)
    z = jnp.transpose(z, (0, 2, 3, 1))                 # -> NHWC for decoder

    dec_pads = [(1, 1), (1, 1), (1, 0), (1, 1)]
    for layer, pad in zip(params['dec'], dec_pads):
        z = convT2d_bn_relu(z, layer['w'], layer['b'],
                            layer['gamma'], layer['beta'], (2, 2), pad)

    z = jnp.transpose(z, (0, 3, 1, 2))                 # back to NCHW output
    return z, mean_mat.reshape(-1), var_mat.reshape(-1)


# ----------------------------------- main -----------------------------------

if __name__ == "__main__":
    features = 32
    key = jax.random.PRNGKey(0)
    k_img, k_par, k_noise = jax.random.split(key, 3)

    # NCHW input, as PyTorch expects: (batch=2, channels=3, 16, 16)
    image = jax.random.normal(k_img, (2, 3, 16, 16), jnp.float32)
    params = init_params(k_par, features)

    # Encoder output is (2, 8F, 2, 2) -> latent vector of length 2048
    latent_len = 2 * 8 * features * 2 * 2
    noise = jax.random.normal(k_noise, (latent_len,), jnp.float32)

    fwd = jax.jit(lambda p, img, n: vae_forward(p, img, n, features))
    z, mean, var = fwd(params, image, noise)
    jax.block_until_ready((z, mean, var))

    assert z.shape == (2, 3, 13, 14), z.shape
    assert mean.shape == (latent_len,) and var.shape == (latent_len,)
    assert bool(jnp.all(jnp.isfinite(z)))
    assert bool(jnp.all(jnp.isfinite(mean))) and bool(jnp.all(jnp.isfinite(var)))
    print("KERNEL_OK")
</pallas_src>

<mosaic_0001>
module attributes {stable_mosaic.version = 11 : i64} {
  func.func @kernel(%arg0: i32, %arg1: memref<144x128xbf16, #tpu.memory_space<vmem>>, %arg2: memref<128x128xbf16, #tpu.memory_space<vmem>>, %arg3: memref<1x128xf32, #tpu.memory_space<vmem>>, %arg4: memref<1x128xf32, #tpu.memory_space<vmem>>, %arg5: memref<1x128xf32, #tpu.memory_space<vmem>>, %arg6: memref<144x128xf32, #tpu.memory_space<vmem>>) attributes {dimension_semantics = [#tpu.dimension_semantics<arbitrary>], iteration_bounds = array<i64: 1>, scalar_prefetch = 0 : i64, scratch_operands = 0 : i64, tpu.core_type = #tpu.core_type<tc>, window_params = [{transform_indices = @transform_0, window_bounds = array<i64: 144, 128>}, {transform_indices = @transform_1, window_bounds = array<i64: 128, 128>}, {pipeline_mode = #tpu.pipeline_mode<synchronous>, transform_indices = @transform_2, window_bounds = array<i64: 1, 128>}, {pipeline_mode = #tpu.pipeline_mode<synchronous>, transform_indices = @transform_3, window_bounds = array<i64: 1, 128>}, {pipeline_mode = #tpu.pipeline_mode<synchronous>, transform_indices = @transform_4, window_bounds = array<i64: 1, 128>}, {pipeline_mode = #tpu.pipeline_mode<synchronous>, transform_indices = @transform_5, window_bounds = array<i64: 144, 128>}]} {
    %c0_i32 = arith.constant 0 : i32
    %0 = arith.cmpi eq, %arg0, %c0_i32 : i32
    %1 = arith.extui %0 : i1 to i32
    %c0_i32_0 = arith.constant 0 : i32
    %2 = arith.cmpi ne, %1, %c0_i32_0 : i32
    scf.if %2 {
      %cst_10 = arith.constant 0.000000e+00 : f32
      %12 = vector.broadcast %cst_10 : f32 to vector<144x128xf32>
      %c0_11 = arith.constant 0 : index
      %c0_12 = arith.constant 0 : index
      %13 = vector.load %arg6[%c0_11, %c0_12] : memref<144x128xf32, #tpu.memory_space<vmem>>, vector<144x128xf32>
      tpu.vector_store %arg6[%c0_11, %c0_12], %12 {strides = array<i32>} : memref<144x128xf32, #tpu.memory_space<vmem>>, vector<144x128xf32>,
    } else {
    }
    %c0 = arith.constant 0 : index
    %c0_1 = arith.constant 0 : index
    %3 = vector.load %arg6[%c0, %c0_1] : memref<144x128xf32, #tpu.memory_space<vmem>>, vector<144x128xf32>
    %c0_2 = arith.constant 0 : index
    %c0_3 = arith.constant 0 : index
    %4 = vector.load %arg1[%c0_2, %c0_3] : memref<144x128xbf16, #tpu.memory_space<vmem>>, vector<144x128xbf16>
    %c0_4 = arith.constant 0 : index
    %c0_5 = arith.constant 0 : index
    %5 = vector.load %arg2[%c0_4, %c0_5] : memref<128x128xbf16, #tpu.memory_space<vmem>>, vector<128x128xbf16>
    %cst = arith.constant dense<0.000000e+00> : vector<144x128xf32>
    %6 = tpu.matmul %4, %5, %cst {dimension_numbers = #tpu.dot_dimension_numbers<[1], [0], [0], [1], [0, 0, 1, 1], [], []>} : vector<144x128xbf16>, vector<128x128xbf16>, vector<144x128xf32> -> vector<144x128xf32>
    %7 = arith.addf %3, %6 : vector<144x128xf32>
    %c0_6 = arith.constant 0 : index
    %c0_7 = arith.constant 0 : index
    %8 = vector.load %arg6[%c0_6, %c0_7] : memref<144x128xf32, #tpu.memory_space<vmem>>, vector<144x128xf32>
    tpu.vector_store %arg6[%c0_6, %c0_7], %7 {strides = array<i32>} : memref<144x128xf32, #tpu.memory_space<vmem>>, vector<144x128xf32>,
    %c0_i32_8 = arith.constant 0 : i32
    %9 = arith.cmpi eq, %arg0, %c0_i32_8 : i32
    %10 = arith.extui %9 : i1 to i32
    %c0_i32_9 = arith.constant 0 : i32
    %11 = arith.cmpi ne, %10, %c0_i32_9 : i32
    scf.if %11 {
      %c0_10 = arith.constant 0 : index
      %c0_11 = arith.constant 0 : index
      %12 = vector.load %arg6[%c0_10, %c0_11] : memref<144x128xf32, #tpu.memory_space<vmem>>, vector<144x128xf32>
      %c0_12 = arith.constant 0 : index
      %c0_13 = arith.constant 0 : index
      %13 = vector.load %arg3[%c0_12, %c0_13] : memref<1x128xf32, #tpu.memory_space<vmem>>, vector<1x128xf32>
      %14 = vector.broadcast %13 : vector<1x128xf32> to vector<144x128xf32>
      %15 = arith.addf %12, %14 : vector<144x128xf32>
      %16 = tpu.iota {dimensions = array<i32: 0>} : vector<144x128xi32>
      %c144_i32 = arith.constant 144 : i32
      %17 = vector.broadcast %c144_i32 : i32 to vector<144x128xi32>
      %18 = arith.cmpi slt, %16, %17 : vector<144x128xi32>
      %cst_14 = arith.constant 0.000000e+00 : f32
      %19 = vector.broadcast %cst_14 : f32 to vector<144x128xf32>
      %20 = arith.select %18, %15, %19 : vector<144x128xi1>, vector<144x128xf32>
      %cst_15 = arith.constant dense<0.000000e+00> : vector<128xf32>
      %21 = vector.multi_reduction <add>, %20, %cst_15 [0] : vector<144x128xf32> to vector<128xf32>
      %22 = vector.shape_cast %21 : vector<128xf32> to vector<1x128xf32>
      %23 = arith.mulf %20, %20 : vector<144x128xf32>
      %cst_16 = arith.constant dense<0.000000e+00> : vector<128xf32>
      %24 = vector.multi_reduction <add>, %23, %cst_16 [0] : vector<144x128xf32> to vector<128xf32>
      %25 = vector.shape_cast %24 : vector<128xf32> to vector<1x128xf32>
      %cst_17 = arith.constant 0.0069444445 : f32
      %26 = vector.broadcast %cst_17 : f32 to vector<1x128xf32>
      %27 = arith.mulf %22, %26 : vector<1x128xf32>
      %cst_18 = arith.constant 0.0069444445 : f32
      %28 = vector.broadcast %cst_18 : f32 to vector<1x128xf32>
      %29 = arith.mulf %25, %28 : vector<1x128xf32>
      %30 = arith.mulf %27, %27 : vector<1x128xf32>
      %31 = arith.subf %29, %30 : vector<1x128xf32>
      %cst_19 = arith.constant 0.000000e+00 : f32
      %32 = vector.broadcast %cst_19 : f32 to vector<1x128xf32>
      %33 = arith.maximumf %31, %32 : vector<1x128xf32>
      %c0_20 = arith.constant 0 : index
      %c0_21 = arith.constant 0 : index
      %34 = vector.load %arg4[%c0_20, %c0_21] : memref<1x128xf32, #tpu.memory_space<vmem>>, vector<1x128xf32>
      %cst_22 = arith.constant 9.99999974E-6 : f32
      %35 = vector.broadcast %cst_22 : f32 to vector<1x128xf32>
      %36 = arith.addf %33, %35 : vector<1x128xf32>
      %37 = math.rsqrt %36 : vector<1x128xf32>
      %38 = arith.mulf %34, %37 : vector<1x128xf32>
      %c0_23 = arith.constant 0 : index
      %c0_24 = arith.constant 0 : index
      %39 = vector.load %arg5[%c0_23, %c0_24] : memref<1x128xf32, #tpu.memory_space<vmem>>, vector<1x128xf32>
      %40 = arith.mulf %27, %38 : vector<1x128xf32>
      %41 = arith.subf %39, %40 : vector<1x128xf32>
      %42 = vector.broadcast %38 : vector<1x128xf32> to vector<144x128xf32>
      %43 = arith.mulf %15, %42 : vector<144x128xf32>
      %44 = vector.broadcast %41 : vector<1x128xf32> to vector<144x128xf32>
      %45 = arith.addf %43, %44 : vector<144x128xf32>
      %cst_25 = arith.constant 0.000000e+00 : f32
      %46 = vector.broadcast %cst_25 : f32 to vector<144x128xf32>
      %47 = arith.maximumf %45, %46 : vector<144x128xf32>
      %c0_26 = arith.constant 0 : index
      %c0_27 = arith.constant 0 : index
      %48 = vector.load %arg6[%c0_26, %c0_27] : memref<144x128xf32, #tpu.memory_space<vmem>>, vector<144x128xf32>
      tpu.vector_store %arg6[%c0_26, %c0_27], %47 {strides = array<i32>} : memref<144x128xf32, #tpu.memory_space<vmem>>, vector<144x128xf32>,
    } else {
    }
    return
  }
  func.func @transform_0(%arg0: i32) -> (i32, i32) {
    %c0_i32 = arith.constant 0 : i32
    %c0_i32_0 = arith.constant 0 : i32
    return %c0_i32, %arg0 : i32, i32
  }
  func.func @transform_1(%arg0: i32) -> (i32, i32) {
    %c0_i32 = arith.constant 0 : i32
    %c0_i32_0 = arith.constant 0 : i32
    return %arg0, %c0_i32 : i32, i32
  }
  func.func @transform_2(%arg0: i32) -> (i32, i32) {
    %c0_i32 = arith.constant 0 : i32
    %c0_i32_0 = arith.constant 0 : i32
    %c0_i32_1 = arith.constant 0 : i32
    return %c0_i32, %c0_i32_0 : i32, i32
  }
  func.func @transform_3(%arg0: i32) -> (i32, i32) {
    %c0_i32 = arith.constant 0 : i32
    %c0_i32_0 = arith.constant 0 : i32
    %c0_i32_1 = arith.constant 0 : i32
    return %c0_i32, %c0_i32_0 : i32, i32
  }
  func.func @transform_4(%arg0: i32) -> (i32, i32) {
    %c0_i32 = arith.constant 0 : i32
    %c0_i32_0 = arith.constant 0 : i32
    %c0_i32_1 = arith.constant 0 : i32
    return %c0_i32, %c0_i32_0 : i32, i32
  }
  func.func @transform_5(%arg0: i32) -> (i32, i32) {
    %c0_i32 = arith.constant 0 : i32
    %c0_i32_0 = arith.constant 0 : i32
    %c0_i32_1 = arith.constant 0 : i32
    return %c0_i32, %c0_i32_0 : i32, i32
  }
}

module attributes {stable_mosaic.version = 11 : i64} {
  func.func @kernel(%arg0: i32, %arg1: memref<48x256xbf16, #tpu.memory_space<vmem>>, %arg2: memref<256x128xbf16, #tpu.memory_space<vmem>>, %arg3: memref<1x128xf32, #tpu.memory_space<vmem>>, %arg4: memref<1x128xf32, #tpu.memory_space<vmem>>, %arg5: memref<1x128xf32, #tpu.memory_space<vmem>>, %arg6: memref<48x128xf32, #tpu.memory_space<vmem>>) attributes {dimension_semantics = [#tpu.dimension_semantics<arbitrary>], iteration_bounds = array<i64: 1>, scalar_prefetch = 0 : i64, scratch_operands = 0 : i64, tpu.core_type = #tpu.core_type<tc>, window_params = [{transform_indices = @transform_0, window_bounds = array<i64: 48, 256>}, {transform_indices = @transform_1, window_bounds = array<i64: 256, 128>}, {pipeline_mode = #tpu.pipeline_mode<synchronous>, transform_indices = @transform_2, window_bounds = array<i64: 1, 128>}, {pipeline_mode = #tpu.pipeline_mode<synchronous>, transform_indices = @transform_3, window_bounds = array<i64: 1, 128>}, {pipeline_mode = #tpu.pipeline_mode<synchronous>, transform_indices = @transform_4, window_bounds = array<i64: 1, 128>}, {pipeline_mode = #tpu.pipeline_mode<synchronous>, transform_indices = @transform_5, window_bounds = array<i64: 48, 128>}]} {
    %c0_i32 = arith.constant 0 : i32
    %0 = arith.cmpi eq, %arg0, %c0_i32 : i32
    %1 = arith.extui %0 : i1 to i32
    %c0_i32_0 = arith.constant 0 : i32
    %2 = arith.cmpi ne, %1, %c0_i32_0 : i32
    scf.if %2 {
      %cst_10 = arith.constant 0.000000e+00 : f32
      %12 = vector.broadcast %cst_10 : f32 to vector<48x128xf32>
      %c0_11 = arith.constant 0 : index
      %c0_12 = arith.constant 0 : index
      %13 = vector.load %arg6[%c0_11, %c0_12] : memref<48x128xf32, #tpu.memory_space<vmem>>, vector<48x128xf32>
      tpu.vector_store %arg6[%c0_11, %c0_12], %12 {strides = array<i32>} : memref<48x128xf32, #tpu.memory_space<vmem>>, vector<48x128xf32>,
    } else {
    }
    %c0 = arith.constant 0 : index
    %c0_1 = arith.constant 0 : index
    %3 = vector.load %arg6[%c0, %c0_1] : memref<48x128xf32, #tpu.memory_space<vmem>>, vector<48x128xf32>
    %c0_2 = arith.constant 0 : index
    %c0_3 = arith.constant 0 : index
    %4 = vector.load %arg1[%c0_2, %c0_3] : memref<48x256xbf16, #tpu.memory_space<vmem>>, vector<48x256xbf16>
    %c0_4 = arith.constant 0 : index
    %c0_5 = arith.constant 0 : index
    %5 = vector.load %arg2[%c0_4, %c0_5] : memref<256x128xbf16, #tpu.memory_space<vmem>>, vector<256x128xbf16>
    %cst = arith.constant dense<0.000000e+00> : vector<48x128xf32>
    %6 = tpu.matmul %4, %5, %cst {dimension_numbers = #tpu.dot_dimension_numbers<[1], [0], [0], [1], [0, 0, 1, 1], [], []>} : vector<48x256xbf16>, vector<256x128xbf16>, vector<48x128xf32> -> vector<48x128xf32>
    %7 = arith.addf %3, %6 : vector<48x128xf32>
    %c0_6 = arith.constant 0 : index
    %c0_7 = arith.constant 0 : index
    %8 = vector.load %arg6[%c0_6, %c0_7] : memref<48x128xf32, #tpu.memory_space<vmem>>, vector<48x128xf32>
    tpu.vector_store %arg6[%c0_6, %c0_7], %7 {strides = array<i32>} : memref<48x128xf32, #tpu.memory_space<vmem>>, vector<48x128xf32>,
    %c0_i32_8 = arith.constant 0 : i32
    %9 = arith.cmpi eq, %arg0, %c0_i32_8 : i32
    %10 = arith.extui %9 : i1 to i32
    %c0_i32_9 = arith.constant 0 : i32
    %11 = arith.cmpi ne, %10, %c0_i32_9 : i32
    scf.if %11 {
      %c0_10 = arith.constant 0 : index
      %c0_11 = arith.constant 0 : index
      %12 = vector.load %arg6[%c0_10, %c0_11] : memref<48x128xf32, #tpu.memory_space<vmem>>, vector<48x128xf32>
      %c0_12 = arith.constant 0 : index
      %c0_13 = arith.constant 0 : index
      %13 = vector.load %arg3[%c0_12, %c0_13] : memref<1x128xf32, #tpu.memory_space<vmem>>, vector<1x128xf32>
      %14 = vector.broadcast %13 : vector<1x128xf32> to vector<48x128xf32>
      %15 = arith.addf %12, %14 : vector<48x128xf32>
      %16 = tpu.iota {dimensions = array<i32: 0>} : vector<48x128xi32>
      %c40_i32 = arith.constant 40 : i32
      %17 = vector.broadcast %c40_i32 : i32 to vector<48x128xi32>
      %18 = arith.cmpi slt, %16, %17 : vector<48x128xi32>
      %cst_14 = arith.constant 0.000000e+00 : f32
      %19 = vector.broadcast %cst_14 : f32 to vector<48x128xf32>
      %20 = arith.select %18, %15, %19 : vector<48x128xi1>, vector<48x128xf32>
      %cst_15 = arith.constant dense<0.000000e+00> : vector<128xf32>
      %21 = vector.multi_reduction <add>, %20, %cst_15 [0] : vector<48x128xf32> to vector<128xf32>
      %22 = vector.shape_cast %21 : vector<128xf32> to vector<1x128xf32>
      %23 = arith.mulf %20, %20 : vector<48x128xf32>
      %cst_16 = arith.constant dense<0.000000e+00> : vector<128xf32>
      %24 = vector.multi_reduction <add>, %23, %cst_16 [0] : vector<48x128xf32> to vector<128xf32>
      %25 = vector.shape_cast %24 : vector<128xf32> to vector<1x128xf32>
      %cst_17 = arith.constant 2.500000e-02 : f32
      %26 = vector.broadcast %cst_17 : f32 to vector<1x128xf32>
      %27 = arith.mulf %22, %26 : vector<1x128xf32>
      %cst_18 = arith.constant 2.500000e-02 : f32
      %28 = vector.broadcast %cst_18 : f32 to vector<1x128xf32>
      %29 = arith.mulf %25, %28 : vector<1x128xf32>
      %30 = arith.mulf %27, %27 : vector<1x128xf32>
      %31 = arith.subf %29, %30 : vector<1x128xf32>
      %cst_19 = arith.constant 0.000000e+00 : f32
      %32 = vector.broadcast %cst_19 : f32 to vector<1x128xf32>
      %33 = arith.maximumf %31, %32 : vector<1x128xf32>
      %c0_20 = arith.constant 0 : index
      %c0_21 = arith.constant 0 : index
      %34 = vector.load %arg4[%c0_20, %c0_21] : memref<1x128xf32, #tpu.memory_space<vmem>>, vector<1x128xf32>
      %cst_22 = arith.constant 9.99999974E-6 : f32
      %35 = vector.broadcast %cst_22 : f32 to vector<1x128xf32>
      %36 = arith.addf %33, %35 : vector<1x128xf32>
      %37 = math.rsqrt %36 : vector<1x128xf32>
      %38 = arith.mulf %34, %37 : vector<1x128xf32>
      %c0_23 = arith.constant 0 : index
      %c0_24 = arith.constant 0 : index
      %39 = vector.load %arg5[%c0_23, %c0_24] : memref<1x128xf32, #tpu.memory_space<vmem>>, vector<1x128xf32>
      %40 = arith.mulf %27, %38 : vector<1x128xf32>
      %41 = arith.subf %39, %40 : vector<1x128xf32>
      %42 = vector.broadcast %38 : vector<1x128xf32> to vector<48x128xf32>
      %43 = arith.mulf %15, %42 : vector<48x128xf32>
      %44 = vector.broadcast %41 : vector<1x128xf32> to vector<48x128xf32>
      %45 = arith.addf %43, %44 : vector<48x128xf32>
      %cst_25 = arith.constant 0.000000e+00 : f32
      %46 = vector.broadcast %cst_25 : f32 to vector<48x128xf32>
      %47 = arith.maximumf %45, %46 : vector<48x128xf32>
      %c0_26 = arith.constant 0 : index
      %c0_27 = arith.constant 0 : index
      %48 = vector.load %arg6[%c0_26, %c0_27] : memref<48x128xf32, #tpu.memory_space<vmem>>, vector<48x128xf32>
      tpu.vector_store %arg6[%c0_26, %c0_27], %47 {strides = array<i32>} : memref<48x128xf32, #tpu.memory_space<vmem>>, vector<48x128xf32>,
    } else {
    }
    return
  }
  func.func @transform_0(%arg0: i32) -> (i32, i32) {
    %c0_i32 = arith.constant 0 : i32
    %c0_i32_0 = arith.constant 0 : i32
    return %c0_i32, %arg0 : i32, i32
  }
  func.func @transform_1(%arg0: i32) -> (i32, i32) {
    %c0_i32 = arith.constant 0 : i32
    %c0_i32_0 = arith.constant 0 : i32
    return %arg0, %c0_i32 : i32, i32
  }
  func.func @transform_2(%arg0: i32) -> (i32, i32) {
    %c0_i32 = arith.constant 0 : i32
    %c0_i32_0 = arith.constant 0 : i32
    %c0_i32_1 = arith.constant 0 : i32
    return %c0_i32, %c0_i32_0 : i32, i32
  }
  func.func @transform_3(%arg0: i32) -> (i32, i32) {
    %c0_i32 = arith.constant 0 : i32
    %c0_i32_0 = arith.constant 0 : i32
    %c0_i32_1 = arith.constant 0 : i32
    return %c0_i32, %c0_i32_0 : i32, i32
  }
  func.func @transform_4(%arg0: i32) -> (i32, i32) {
    %c0_i32 = arith.constant 0 : i32
    %c0_i32_0 = arith.constant 0 : i32
    %c0_i32_1 = arith.constant 0 : i32
    return %c0_i32, %c0_i32_0 : i32, i32
  }
  func.func @transform_5(%arg0: i32) -> (i32, i32) {
    %c0_i32 = arith.constant 0 : i32
    %c0_i32_0 = arith.constant 0 : i32
    %c0_i32_1 = arith.constant 0 : i32
    return %c0_i32, %c0_i32_0 : i32, i32
  }
}

module attributes {stable_mosaic.version = 11 : i64} {
  func.func @kernel(%arg0: i32, %arg1: memref<32x256xbf16, #tpu.memory_space<vmem>>, %arg2: memref<256x128xbf16, #tpu.memory_space<vmem>>, %arg3: memref<1x128xf32, #tpu.memory_space<vmem>>, %arg4: memref<1x128xf32, #tpu.memory_space<vmem>>, %arg5: memref<1x128xf32, #tpu.memory_space<vmem>>, %arg6: memref<32x128xf32, #tpu.memory_space<vmem>>) attributes {dimension_semantics = [#tpu.dimension_semantics<arbitrary>], iteration_bounds = array<i64: 1>, scalar_prefetch = 0 : i64, scratch_operands = 0 : i64, tpu.core_type = #tpu.core_type<tc>, window_params = [{transform_indices = @transform_0, window_bounds = array<i64: 32, 256>}, {transform_indices = @transform_1, window_bounds = array<i64: 256, 128>}, {pipeline_mode = #tpu.pipeline_mode<synchronous>, transform_indices = @transform_2, window_bounds = array<i64: 1, 128>}, {pipeline_mode = #tpu.pipeline_mode<synchronous>, transform_indices = @transform_3, window_bounds = array<i64: 1, 128>}, {pipeline_mode = #tpu.pipeline_mode<synchronous>, transform_indices = @transform_4, window_bounds = array<i64: 1, 128>}, {pipeline_mode = #tpu.pipeline_mode<synchronous>, transform_indices = @transform_5, window_bounds = array<i64: 32, 128>}]} {
    %c0_i32 = arith.constant 0 : i32
    %0 = arith.cmpi eq, %arg0, %c0_i32 : i32
    %1 = arith.extui %0 : i1 to i32
    %c0_i32_0 = arith.constant 0 : i32
    %2 = arith.cmpi ne, %1, %c0_i32_0 : i32
    scf.if %2 {
      %cst_10 = arith.constant 0.000000e+00 : f32
      %12 = vector.broadcast %cst_10 : f32 to vector<32x128xf32>
      %c0_11 = arith.constant 0 : index
      %c0_12 = arith.constant 0 : index
      %13 = vector.load %arg6[%c0_11, %c0_12] : memref<32x128xf32, #tpu.memory_space<vmem>>, vector<32x128xf32>
      tpu.vector_store %arg6[%c0_11, %c0_12], %12 {strides = array<i32>} : memref<32x128xf32, #tpu.memory_space<vmem>>, vector<32x128xf32>,
    } else {
    }
    %c0 = arith.constant 0 : index
    %c0_1 = arith.constant 0 : index
    %3 = vector.load %arg6[%c0, %c0_1] : memref<32x128xf32, #tpu.memory_space<vmem>>, vector<32x128xf32>
    %c0_2 = arith.constant 0 : index
    %c0_3 = arith.constant 0 : index
    %4 = vector.load %arg1[%c0_2, %c0_3] : memref<32x256xbf16, #tpu.memory_space<vmem>>, vector<32x256xbf16>
    %c0_4 = arith.constant 0 : index
    %c0_5 = arith.constant 0 : index
    %5 = vector.load %arg2[%c0_4, %c0_5] : memref<256x128xbf16, #tpu.memory_space<vmem>>, vector<256x128xbf16>
    %cst = arith.constant dense<0.000000e+00> : vector<32x128xf32>
    %6 = tpu.matmul %4, %5, %cst {dimension_numbers = #tpu.dot_dimension_numbers<[1], [0], [0], [1], [0, 0, 1, 1], [], []>} : vector<32x256xbf16>, vector<256x128xbf16>, vector<32x128xf32> -> vector<32x128xf32>
    %7 = arith.addf %3, %6 : vector<32x128xf32>
    %c0_6 = arith.constant 0 : index
    %c0_7 = arith.constant 0 : index
    %8 = vector.load %arg6[%c0_6, %c0_7] : memref<32x128xf32, #tpu.memory_space<vmem>>, vector<32x128xf32>
    tpu.vector_store %arg6[%c0_6, %c0_7], %7 {strides = array<i32>} : memref<32x128xf32, #tpu.memory_space<vmem>>, vector<32x128xf32>,
    %c0_i32_8 = arith.constant 0 : i32
    %9 = arith.cmpi eq, %arg0, %c0_i32_8 : i32
    %10 = arith.extui %9 : i1 to i32
    %c0_i32_9 = arith.constant 0 : i32
    %11 = arith.cmpi ne, %10, %c0_i32_9 : i32
    scf.if %11 {
      %c0_10 = arith.constant 0 : index
      %c0_11 = arith.constant 0 : index
      %12 = vector.load %arg6[%c0_10, %c0_11] : memref<32x128xf32, #tpu.memory_space<vmem>>, vector<32x128xf32>
      %c0_12 = arith.constant 0 : index
      %c0_13 = arith.constant 0 : index
      %13 = vector.load %arg3[%c0_12, %c0_13] : memref<1x128xf32, #tpu.memory_space<vmem>>, vector<1x128xf32>
      %14 = vector.broadcast %13 : vector<1x128xf32> to vector<32x128xf32>
      %15 = arith.addf %12, %14 : vector<32x128xf32>
      %16 = tpu.iota {dimensions = array<i32: 0>} : vector<32x128xi32>
      %c18_i32 = arith.constant 18 : i32
      %17 = vector.broadcast %c18_i32 : i32 to vector<32x128xi32>
      %18 = arith.cmpi slt, %16, %17 : vector<32x128xi32>
      %cst_14 = arith.constant 0.000000e+00 : f32
      %19 = vector.broadcast %cst_14 : f32 to vector<32x128xf32>
      %20 = arith.select %18, %15, %19 : vector<32x128xi1>, vector<32x128xf32>
      %cst_15 = arith.constant dense<0.000000e+00> : vector<128xf32>
      %21 = vector.multi_reduction <add>, %20, %cst_15 [0] : vector<32x128xf32> to vector<128xf32>
      %22 = vector.shape_cast %21 : vector<128xf32> to vector<1x128xf32>
      %23 = arith.mulf %20, %20 : vector<32x128xf32>
      %cst_16 = arith.constant dense<0.000000e+00> : vector<128xf32>
      %24 = vector.multi_reduction <add>, %23, %cst_16 [0] : vector<32x128xf32> to vector<128xf32>
      %25 = vector.shape_cast %24 : vector<128xf32> to vector<1x128xf32>
      %cst_17 = arith.constant 0.055555556 : f32
      %26 = vector.broadcast %cst_17 : f32 to vector<1x128xf32>
      %27 = arith.mulf %22, %26 : vector<1x128xf32>
      %cst_18 = arith.constant 0.055555556 : f32
      %28 = vector.broadcast %cst_18 : f32 to vector<1x128xf32>
      %29 = arith.mulf %25, %28 : vector<1x128xf32>
      %30 = arith.mulf %27, %27 : vector<1x128xf32>
      %31 = arith.subf %29, %30 : vector<1x128xf32>
      %cst_19 = arith.constant 0.000000e+00 : f32
      %32 = vector.broadcast %cst_19 : f32 to vector<1x128xf32>
      %33 = arith.maximumf %31, %32 : vector<1x128xf32>
      %c0_20 = arith.constant 0 : index
      %c0_21 = arith.constant 0 : index
      %34 = vector.load %arg4[%c0_20, %c0_21] : memref<1x128xf32, #tpu.memory_space<vmem>>, vector<1x128xf32>
      %cst_22 = arith.constant 9.99999974E-6 : f32
      %35 = vector.broadcast %cst_22 : f32 to vector<1x128xf32>
      %36 = arith.addf %33, %35 : vector<1x128xf32>
      %37 = math.rsqrt %36 : vector<1x128xf32>
      %38 = arith.mulf %34, %37 : vector<1x128xf32>
      %c0_23 = arith.constant 0 : index
      %c0_24 = arith.constant 0 : index
      %39 = vector.load %arg5[%c0_23, %c0_24] : memref<1x128xf32, #tpu.memory_space<vmem>>, vector<1x128xf32>
      %40 = arith.mulf %27, %38 : vector<1x128xf32>
      %41 = arith.subf %39, %40 : vector<1x128xf32>
      %42 = vector.broadcast %38 : vector<1x128xf32> to vector<32x128xf32>
      %43 = arith.mulf %15, %42 : vector<32x128xf32>
      %44 = vector.broadcast %41 : vector<1x128xf32> to vector<32x128xf32>
      %45 = arith.addf %43, %44 : vector<32x128xf32>
      %cst_25 = arith.constant 0.000000e+00 : f32
      %46 = vector.broadcast %cst_25 : f32 to vector<32x128xf32>
      %47 = arith.maximumf %45, %46 : vector<32x128xf32>
      %c0_26 = arith.constant 0 : index
      %c0_27 = arith.constant 0 : index
      %48 = vector.load %arg6[%c0_26, %c0_27] : memref<32x128xf32, #tpu.memory_space<vmem>>, vector<32x128xf32>
      tpu.vector_store %arg6[%c0_26, %c0_27], %47 {strides = array<i32>} : memref<32x128xf32, #tpu.memory_space<vmem>>, vector<32x128xf32>,
    } else {
    }
    return
  }
  func.func @transform_0(%arg0: i32) -> (i32, i32) {
    %c0_i32 = arith.constant 0 : i32
    %c0_i32_0 = arith.constant 0 : i32
    return %c0_i32, %arg0 : i32, i32
  }
  func.func @transform_1(%arg0: i32) -> (i32, i32) {
    %c0_i32 = arith.constant 0 : i32
    %c0_i32_0 = arith.constant 0 : i32
    return %arg0, %c0_i32 : i32, i32
  }
  func.func @transform_2(%arg0: i32) -> (i32, i32) {
    %c0_i32 = arith.constant 0 : i32
    %c0_i32_0 = arith.constant 0 : i32
    %c0_i32_1 = arith.constant 0 : i32
    return %c0_i32, %c0_i32_0 : i32, i32
  }
  func.func @transform_3(%arg0: i32) -> (i32, i32) {
    %c0_i32 = arith.constant 0 : i32
    %c0_i32_0 = arith.constant 0 : i32
    %c0_i32_1 = arith.constant 0 : i32
    return %c0_i32, %c0_i32_0 : i32, i32
  }
  func.func @transform_4(%arg0: i32) -> (i32, i32) {
    %c0_i32 = arith.constant 0 : i32
    %c0_i32_0 = arith.constant 0 : i32
    %c0_i32_1 = arith.constant 0 : i32
    return %c0_i32, %c0_i32_0 : i32, i32
  }
  func.func @transform_5(%arg0: i32) -> (i32, i32) {
    %c0_i32 = arith.constant 0 : i32
    %c0_i32_0 = arith.constant 0 : i32
    %c0_i32_1 = arith.constant 0 : i32
    return %c0_i32, %c0_i32_0 : i32, i32
  }
}

module attributes {stable_mosaic.version = 11 : i64} {
  func.func @kernel(%arg0: i32, %arg1: memref<16x384xbf16, #tpu.memory_space<vmem>>, %arg2: memref<384x256xbf16, #tpu.memory_space<vmem>>, %arg3: memref<1x256xf32, #tpu.memory_space<vmem>>, %arg4: memref<1x256xf32, #tpu.memory_space<vmem>>, %arg5: memref<1x256xf32, #tpu.memory_space<vmem>>, %arg6: memref<16x256xf32, #tpu.memory_space<vmem>>) attributes {dimension_semantics = [#tpu.dimension_semantics<arbitrary>], iteration_bounds = array<i64: 3>, scalar_prefetch = 0 : i64, scratch_operands = 0 : i64, tpu.core_type = #tpu.core_type<tc>, window_params = [{transform_indices = @transform_0, window_bounds = array<i64: 16, 384>}, {transform_indices = @transform_1, window_bounds = array<i64: 384, 256>}, {pipeline_mode = #tpu.pipeline_mode<synchronous>, transform_indices = @transform_2, window_bounds = array<i64: 1, 256>}, {pipeline_mode = #tpu.pipeline_mode<synchronous>, transform_indices = @transform_3, window_bounds = array<i64: 1, 256>}, {pipeline_mode = #tpu.pipeline_mode<synchronous>, transform_indices = @transform_4, window_bounds = array<i64: 1, 256>}, {pipeline_mode = #tpu.pipeline_mode<synchronous>, transform_indices = @transform_5, window_bounds = array<i64: 16, 256>}]} {
    %c0_i32 = arith.constant 0 : i32
    %0 = arith.cmpi eq, %arg0, %c0_i32 : i32
    %1 = arith.extui %0 : i1 to i32
    %c0_i32_0 = arith.constant 0 : i32
    %2 = arith.cmpi ne, %1, %c0_i32_0 : i32
    scf.if %2 {
      %cst_9 = arith.constant 0.000000e+00 : f32
      %12 = vector.broadcast %cst_9 : f32 to vector<16x256xf32>
      %c0_10 = arith.constant 0 : index
      %c0_11 = arith.constant 0 : index
      %13 = vector.load %arg6[%c0_10, %c0_11] : memref<16x256xf32, #tpu.memory_space<vmem>>, vector<16x256xf32>
      tpu.vector_store %arg6[%c0_10, %c0_11], %12 {strides = array<i32>} : memref<16x256xf32, #tpu.memory_space<vmem>>, vector<16x256xf32>,
    } else {
    }
    %c0 = arith.constant 0 : index
    %c0_1 = arith.constant 0 : index
    %3 = vector.load %arg6[%c0, %c0_1] : memref<16x256xf32, #tpu.memory_space<vmem>>, vector<16x256xf32>
    %c0_2 = arith.constant 0 : index
    %c0_3 = arith.constant 0 : index
    %4 = vector.load %arg1[%c0_2, %c0_3] : memref<16x384xbf16, #tpu.memory_space<vmem>>, vector<16x384xbf16>
    %c0_4 = arith.constant 0 : index
    %c0_5 = arith.constant 0 : index
    %5 = vector.load %arg2[%c0_4, %c0_5] : memref<384x256xbf16, #tpu.memory_space<vmem>>, vector<384x256xbf16>
    %cst = arith.constant dense<0.000000e+00> : vector<16x256xf32>
    %6 = tpu.matmul %4, %5, %cst {dimension_numbers = #tpu.dot_dimension_numbers<[1], [0], [0], [1], [0, 0, 1, 1], [], []>} : vector<16x384xbf16>, vector<384x256xbf16>, vector<16x256xf32> -> vector<16x256xf32>
    %7 = arith.addf %3, %6 : vector<16x256xf32>
    %c0_6 = arith.constant 0 : index
    %c0_7 = arith.constant 0 : index
    %8 = vector.load %arg6[%c0_6, %c0_7] : memref<16x256xf32, #tpu.memory_space<vmem>>, vector<16x256xf32>
    tpu.vector_store %arg6[%c0_6, %c0_7], %7 {strides = array<i32>} : memref<16x256xf32, #tpu.memory_space<vmem>>, vector<16x256xf32>,
    %c2_i32 = arith.constant 2 : i32
    %9 = arith.cmpi eq, %arg0, %c2_i32 : i32
    %10 = arith.extui %9 : i1 to i32
    %c0_i32_8 = arith.constant 0 : i32
    %11 = arith.cmpi ne, %10, %c0_i32_8 : i32
    scf.if %11 {
      %c0_9 = arith.constant 0 : index
      %c0_10 = arith.constant 0 : index
      %12 = vector.load %arg6[%c0_9, %c0_10] : memref<16x256xf32, #tpu.memory_space<vmem>>, vector<16x256xf32>
      %c0_11 = arith.constant 0 : index
      %c0_12 = arith.constant 0 : index
      %13 = vector.load %arg3[%c0_11, %c0_12] : memref<1x256xf32, #tpu.memory_space<vmem>>, vector<1x256xf32>
      %14 = vector.broadcast %13 : vector<1x256xf32> to vector<16x256xf32>
      %15 = arith.addf %12, %14 : vector<16x256xf32>
      %16 = tpu.iota {dimensions = array<i32: 0>} : vector<16x256xi32>
      %c8_i32 = arith.constant 8 : i32
      %17 = vector.broadcast %c8_i32 : i32 to vector<16x256xi32>
      %18 = arith.cmpi slt, %16, %17 : vector<16x256xi32>
      %cst_13 = arith.constant 0.000000e+00 : f32
      %19 = vector.broadcast %cst_13 : f32 to vector<16x256xf32>
      %20 = arith.select %18, %15, %19 : vector<16x256xi1>, vector<16x256xf32>
      %cst_14 = arith.constant dense<0.000000e+00> : vector<256xf32>
      %21 = vector.multi_reduction <add>, %20, %cst_14 [0] : vector<16x256xf32> to vector<256xf32>
      %22 = vector.shape_cast %21 : vector<256xf32> to vector<1x256xf32>
      %23 = arith.mulf %20, %20 : vector<16x256xf32>
      %cst_15 = arith.constant dense<0.000000e+00> : vector<256xf32>
      %24 = vector.multi_reduction <add>, %23, %cst_15 [0] : vector<16x256xf32> to vector<256xf32>
      %25 = vector.shape_cast %24 : vector<256xf32> to vector<1x256xf32>
      %cst_16 = arith.constant 1.250000e-01 : f32
      %26 = vector.broadcast %cst_16 : f32 to vector<1x256xf32>
      %27 = arith.mulf %22, %26 : vector<1x256xf32>
      %cst_17 = arith.constant 1.250000e-01 : f32
      %28 = vector.broadcast %cst_17 : f32 to vector<1x256xf32>
      %29 = arith.mulf %25, %28 : vector<1x256xf32>
      %30 = arith.mulf %27, %27 : vector<1x256xf32>
      %31 = arith.subf %29, %30 : vector<1x256xf32>
      %cst_18 = arith.constant 0.000000e+00 : f32
      %32 = vector.broadcast %cst_18 : f32 to vector<1x256xf32>
      %33 = arith.maximumf %31, %32 : vector<1x256xf32>
      %c0_19 = arith.constant 0 : index
      %c0_20 = arith.constant 0 : index
      %34 = vector.load %arg4[%c0_19, %c0_20] : memref<1x256xf32, #tpu.memory_space<vmem>>, vector<1x256xf32>
      %cst_21 = arith.constant 9.99999974E-6 : f32
      %35 = vector.broadcast %cst_21 : f32 to vector<1x256xf32>
      %36 = arith.addf %33, %35 : vector<1x256xf32>
      %37 = math.rsqrt %36 : vector<1x256xf32>
      %38 = arith.mulf %34, %37 : vector<1x256xf32>
      %c0_22 = arith.constant 0 : index
      %c0_23 = arith.constant 0 : index
      %39 = vector.load %arg5[%c0_22, %c0_23] : memref<1x256xf32, #tpu.memory_space<vmem>>, vector<1x256xf32>
      %40 = arith.mulf %27, %38 : vector<1x256xf32>
      %41 = arith.subf %39, %40 : vector<1x256xf32>
      %42 = vector.broadcast %38 : vector<1x256xf32> to vector<16x256xf32>
      %43 = arith.mulf %15, %42 : vector<16x256xf32>
      %44 = vector.broadcast %41 : vector<1x256xf32> to vector<16x256xf32>
      %45 = arith.addf %43, %44 : vector<16x256xf32>
      %cst_24 = arith.constant 0.000000e+00 : f32
      %46 = vector.broadcast %cst_24 : f32 to vector<16x256xf32>
      %47 = arith.maximumf %45, %46 : vector<16x256xf32>
      %c0_25 = arith.constant 0 : index
      %c0_26 = arith.constant 0 : index
      %48 = vector.load %arg6[%c0_25, %c0_26] : memref<16x256xf32, #tpu.memory_space<vmem>>, vector<16x256xf32>
      tpu.vector_store %arg6[%c0_25, %c0_26], %47 {strides = array<i32>} : memref<16x256xf32, #tpu.memory_space<vmem>>, vector<16x256xf32>,
    } else {
    }
    return
  }
  func.func @transform_0(%arg0: i32) -> (i32, i32) {
    %c0_i32 = arith.constant 0 : i32
    %c0_i32_0 = arith.constant 0 : i32
    return %c0_i32, %arg0 : i32, i32
  }
  func.func @transform_1(%arg0: i32) -> (i32, i32) {
    %c0_i32 = arith.constant 0 : i32
    %c0_i32_0 = arith.constant 0 : i32
    return %arg0, %c0_i32 : i32, i32
  }
  func.func @transform_2(%arg0: i32) -> (i32, i32) {
    %c0_i32 = arith.constant 0 : i32
    %c0_i32_0 = arith.constant 0 : i32
    %c0_i32_1 = arith.constant 0 : i32
    return %c0_i32, %c0_i32_0 : i32, i32
  }
  func.func @transform_3(%arg0: i32) -> (i32, i32) {
    %c0_i32 = arith.constant 0 : i32
    %c0_i32_0 = arith.constant 0 : i32
    %c0_i32_1 = arith.constant 0 : i32
    return %c0_i32, %c0_i32_0 : i32, i32
  }
  func.func @transform_4(%arg0: i32) -> (i32, i32) {
    %c0_i32 = arith.constant 0 : i32
    %c0_i32_0 = arith.constant 0 : i32
    %c0_i32_1 = arith.constant 0 : i32
    return %c0_i32, %c0_i32_0 : i32, i32
  }
  func.func @transform_5(%arg0: i32) -> (i32, i32) {
    %c0_i32 = arith.constant 0 : i32
    %c0_i32_0 = arith.constant 0 : i32
    %c0_i32_1 = arith.constant 0 : i32
    return %c0_i32, %c0_i32_0 : i32, i32
  }
}

module attributes {stable_mosaic.version = 11 : i64} {
  func.func @kernel(%arg0: i32, %arg1: memref<16x256xbf16, #tpu.memory_space<vmem>>, %arg2: memref<256x512xbf16, #tpu.memory_space<vmem>>, %arg3: memref<1x512xf32, #tpu.memory_space<vmem>>, %arg4: memref<16x256xf32, #tpu.memory_space<vmem>>, %arg5: memref<16x512xf32, #tpu.memory_space<vmem>>, %arg6: memref<16x256xf32, #tpu.memory_space<vmem>>) attributes {dimension_semantics = [#tpu.dimension_semantics<arbitrary>], iteration_bounds = array<i64: 1>, scalar_prefetch = 0 : i64, scratch_operands = 0 : i64, tpu.core_type = #tpu.core_type<tc>, window_params = [{transform_indices = @transform_0, window_bounds = array<i64: 16, 256>}, {transform_indices = @transform_1, window_bounds = array<i64: 256, 512>}, {pipeline_mode = #tpu.pipeline_mode<synchronous>, transform_indices = @transform_2, window_bounds = array<i64: 1, 512>}, {pipeline_mode = #tpu.pipeline_mode<synchronous>, transform_indices = @transform_3, window_bounds = array<i64: 16, 256>}, {pipeline_mode = #tpu.pipeline_mode<synchronous>, transform_indices = @transform_4, window_bounds = array<i64: 16, 512>}, {pipeline_mode = #tpu.pipeline_mode<synchronous>, transform_indices = @transform_5, window_bounds = array<i64: 16, 256>}]} {
    %c0_i32 = arith.constant 0 : i32
    %0 = arith.cmpi eq, %arg0, %c0_i32 : i32
    %1 = arith.extui %0 : i1 to i32
    %c0_i32_0 = arith.constant 0 : i32
    %2 = arith.cmpi ne, %1, %c0_i32_0 : i32
    scf.if %2 {
      %cst_10 = arith.constant 0.000000e+00 : f32
      %12 = vector.broadcast %cst_10 : f32 to vector<16x512xf32>
      %c0_11 = arith.constant 0 : index
      %c0_12 = arith.constant 0 : index
      %13 = vector.load %arg5[%c0_11, %c0_12] : memref<16x512xf32, #tpu.memory_space<vmem>>, vector<16x512xf32>
      tpu.vector_store %arg5[%c0_11, %c0_12], %12 {strides = array<i32>} : memref<16x512xf32, #tpu.memory_space<vmem>>, vector<16x512xf32>,
    } else {
    }
    %c0 = arith.constant 0 : index
    %c0_1 = arith.constant 0 : index
    %3 = vector.load %arg5[%c0, %c0_1] : memref<16x512xf32, #tpu.memory_space<vmem>>, vector<16x512xf32>
    %c0_2 = arith.constant 0 : index
    %c0_3 = arith.constant 0 : index
    %4 = vector.load %arg1[%c0_2, %c0_3] : memref<16x256xbf16, #tpu.memory_space<vmem>>, vector<16x256xbf16>
    %c0_4 = arith.constant 0 : index
    %c0_5 = arith.constant 0 : index
    %5 = vector.load %arg2[%c0_4, %c0_5] : memref<256x512xbf16, #tpu.memory_space<vmem>>, vector<256x512xbf16>
    %cst = arith.constant dense<0.000000e+00> : vector<16x512xf32>
    %6 = tpu.matmul %4, %5, %cst {dimension_numbers = #tpu.dot_dimension_numbers<[1], [0], [0], [1], [0, 0, 1, 1], [], []>} : vector<16x256xbf16>, vector<256x512xbf16>, vector<16x512xf32> -> vector<16x512xf32>
    %7 = arith.addf %3, %6 : vector<16x512xf32>
    %c0_6 = arith.constant 0 : index
    %c0_7 = arith.constant 0 : index
    %8 = vector.load %arg5[%c0_6, %c0_7] : memref<16x512xf32, #tpu.memory_space<vmem>>, vector<16x512xf32>
    tpu.vector_store %arg5[%c0_6, %c0_7], %7 {strides = array<i32>} : memref<16x512xf32, #tpu.memory_space<vmem>>, vector<16x512xf32>,
    %c0_i32_8 = arith.constant 0 : i32
    %9 = arith.cmpi eq, %arg0, %c0_i32_8 : i32
    %10 = arith.extui %9 : i1 to i32
    %c0_i32_9 = arith.constant 0 : i32
    %11 = arith.cmpi ne, %10, %c0_i32_9 : i32
    scf.if %11 {
      %c0_10 = arith.constant 0 : index
      %c0_11 = arith.constant 0 : index
      %12 = vector.load %arg5[%c0_10, %c0_11] : memref<16x512xf32, #tpu.memory_space<vmem>>, vector<16x512xf32>
      %c0_12 = arith.constant 0 : index
      %c0_13 = arith.constant 0 : index
      %13 = vector.load %arg3[%c0_12, %c0_13] : memref<1x512xf32, #tpu.memory_space<vmem>>, vector<1x512xf32>
      %14 = vector.broadcast %13 : vector<1x512xf32> to vector<16x512xf32>
      %15 = arith.addf %12, %14 : vector<16x512xf32>
      %c0_14 = arith.constant 0 : index
      %c0_15 = arith.constant 0 : index
      %16 = vector.load %arg5[%c0_14, %c0_15] : memref<16x512xf32, #tpu.memory_space<vmem>>, vector<16x512xf32>
      tpu.vector_store %arg5[%c0_14, %c0_15], %15 {strides = array<i32>} : memref<16x512xf32, #tpu.memory_space<vmem>>, vector<16x512xf32>,
      %17 = vector.extract_strided_slice %15 {offsets = [0, 0], sizes = [16, 256], strides = [1, 1]} : vector<16x512xf32> to vector<16x256xf32>
      %18 = vector.extract_strided_slice %15 {offsets = [0, 256], sizes = [16, 256], strides = [1, 1]} : vector<16x512xf32> to vector<16x256xf32>
      %19 = math.exp %18 : vector<16x256xf32>
      %c0_16 = arith.constant 0 : index
      %c0_17 = arith.constant 0 : index
      %20 = vector.load %arg4[%c0_16, %c0_17] : memref<16x256xf32, #tpu.memory_space<vmem>>, vector<16x256xf32>
      %21 = arith.mulf %19, %20 : vector<16x256xf32>
      %22 = arith.addf %17, %21 : vector<16x256xf32>
      %c0_18 = arith.constant 0 : index
      %c0_19 = arith.constant 0 : index
      %23 = vector.load %arg6[%c0_18, %c0_19] : memref<16x256xf32, #tpu.memory_space<vmem>>, vector<16x256xf32>
      tpu.vector_store %arg6[%c0_18, %c0_19], %22 {strides = array<i32>} : memref<16x256xf32, #tpu.memory_space<vmem>>, vector<16x256xf32>,
    } else {
    }
    return
  }
  func.func @transform_0(%arg0: i32) -> (i32, i32) {
    %c0_i32 = arith.constant 0 : i32
    %c0_i32_0 = arith.constant 0 : i32
    return %c0_i32, %arg0 : i32, i32
  }
  func.func @transform_1(%arg0: i32) -> (i32, i32) {
    %c0_i32 = arith.constant 0 : i32
    %c0_i32_0 = arith.constant 0 : i32
    return %arg0, %c0_i32 : i32, i32
  }
  func.func @transform_2(%arg0: i32) -> (i32, i32) {
    %c0_i32 = arith.constant 0 : i32
    %c0_i32_0 = arith.constant 0 : i32
    %c0_i32_1 = arith.constant 0 : i32
    return %c0_i32, %c0_i32_0 : i32, i32
  }
  func.func @transform_3(%arg0: i32) -> (i32, i32) {
    %c0_i32 = arith.constant 0 : i32
    %c0_i32_0 = arith.constant 0 : i32
    %c0_i32_1 = arith.constant 0 : i32
    return %c0_i32, %c0_i32_0 : i32, i32
  }
  func.func @transform_4(%arg0: i32) -> (i32, i32) {
    %c0_i32 = arith.constant 0 : i32
    %c0_i32_0 = arith.constant 0 : i32
    %c0_i32_1 = arith.constant 0 : i32
    return %c0_i32, %c0_i32_0 : i32, i32
  }
  func.func @transform_5(%arg0: i32) -> (i32, i32) {
    %c0_i32 = arith.constant 0 : i32
    %c0_i32_0 = arith.constant 0 : i32
    %c0_i32_1 = arith.constant 0 : i32
    return %c0_i32, %c0_i32_0 : i32, i32
  }
}

module attributes {stable_mosaic.version = 11 : i64} {
  func.func @_matmul_bias_kernel(%arg0: i32, %arg1: memref<16x256xbf16, #tpu.memory_space<vmem>>, %arg2: memref<256x256xbf16, #tpu.memory_space<vmem>>, %arg3: memref<1x256xf32, #tpu.memory_space<vmem>>, %arg4: memref<16x256xf32, #tpu.memory_space<vmem>>) attributes {dimension_semantics = [#tpu.dimension_semantics<arbitrary>], iteration_bounds = array<i64: 1>, scalar_prefetch = 0 : i64, scratch_operands = 0 : i64, tpu.core_type = #tpu.core_type<tc>, window_params = [{transform_indices = @transform_0, window_bounds = array<i64: 16, 256>}, {transform_indices = @transform_1, window_bounds = array<i64: 256, 256>}, {pipeline_mode = #tpu.pipeline_mode<synchronous>, transform_indices = @transform_2, window_bounds = array<i64: 1, 256>}, {pipeline_mode = #tpu.pipeline_mode<synchronous>, transform_indices = @transform_3, window_bounds = array<i64: 16, 256>}]} {
    %c0_i32 = arith.constant 0 : i32
    %0 = arith.cmpi eq, %arg0, %c0_i32 : i32
    %1 = arith.extui %0 : i1 to i32
    %c0_i32_0 = arith.constant 0 : i32
    %2 = arith.cmpi ne, %1, %c0_i32_0 : i32
    scf.if %2 {
      %cst_10 = arith.constant 0.000000e+00 : f32
      %12 = vector.broadcast %cst_10 : f32 to vector<16x256xf32>
      %c0_11 = arith.constant 0 : index
      %c0_12 = arith.constant 0 : index
      %13 = vector.load %arg4[%c0_11, %c0_12] : memref<16x256xf32, #tpu.memory_space<vmem>>, vector<16x256xf32>
      tpu.vector_store %arg4[%c0_11, %c0_12], %12 {strides = array<i32>} : memref<16x256xf32, #tpu.memory_space<vmem>>, vector<16x256xf32>,
    } else {
    }
    %c0 = arith.constant 0 : index
    %c0_1 = arith.constant 0 : index
    %3 = vector.load %arg4[%c0, %c0_1] : memref<16x256xf32, #tpu.memory_space<vmem>>, vector<16x256xf32>
    %c0_2 = arith.constant 0 : index
    %c0_3 = arith.constant 0 : index
    %4 = vector.load %arg1[%c0_2, %c0_3] : memref<16x256xbf16, #tpu.memory_space<vmem>>, vector<16x256xbf16>
    %c0_4 = arith.constant 0 : index
    %c0_5 = arith.constant 0 : index
    %5 = vector.load %arg2[%c0_4, %c0_5] : memref<256x256xbf16, #tpu.memory_space<vmem>>, vector<256x256xbf16>
    %cst = arith.constant dense<0.000000e+00> : vector<16x256xf32>
    %6 = tpu.matmul %4, %5, %cst {dimension_numbers = #tpu.dot_dimension_numbers<[1], [0], [0], [1], [0, 0, 1, 1], [], []>} : vector<16x256xbf16>, vector<256x256xbf16>, vector<16x256xf32> -> vector<16x256xf32>
    %7 = arith.addf %3, %6 : vector<16x256xf32>
    %c0_6 = arith.constant 0 : index
    %c0_7 = arith.constant 0 : index
    %8 = vector.load %arg4[%c0_6, %c0_7] : memref<16x256xf32, #tpu.memory_space<vmem>>, vector<16x256xf32>
    tpu.vector_store %arg4[%c0_6, %c0_7], %7 {strides = array<i32>} : memref<16x256xf32, #tpu.memory_space<vmem>>, vector<16x256xf32>,
    %c0_i32_8 = arith.constant 0 : i32
    %9 = arith.cmpi eq, %arg0, %c0_i32_8 : i32
    %10 = arith.extui %9 : i1 to i32
    %c0_i32_9 = arith.constant 0 : i32
    %11 = arith.cmpi ne, %10, %c0_i32_9 : i32
    scf.if %11 {
      %c0_10 = arith.constant 0 : index
      %c0_11 = arith.constant 0 : index
      %12 = vector.load %arg4[%c0_10, %c0_11] : memref<16x256xf32, #tpu.memory_space<vmem>>, vector<16x256xf32>
      %c0_12 = arith.constant 0 : index
      %c0_13 = arith.constant 0 : index
      %13 = vector.load %arg3[%c0_12, %c0_13] : memref<1x256xf32, #tpu.memory_space<vmem>>, vector<1x256xf32>
      %14 = vector.broadcast %13 : vector<1x256xf32> to vector<16x256xf32>
      %15 = arith.addf %12, %14 : vector<16x256xf32>
      %c0_14 = arith.constant 0 : index
      %c0_15 = arith.constant 0 : index
      %16 = vector.load %arg4[%c0_14, %c0_15] : memref<16x256xf32, #tpu.memory_space<vmem>>, vector<16x256xf32>
      tpu.vector_store %arg4[%c0_14, %c0_15], %15 {strides = array<i32>} : memref<16x256xf32, #tpu.memory_space<vmem>>, vector<16x256xf32>,
    } else {
    }
    return
  }
  func.func @transform_0(%arg0: i32) -> (i32, i32) {
    %c0_i32 = arith.constant 0 : i32
    %c0_i32_0 = arith.constant 0 : i32
    return %c0_i32, %arg0 : i32, i32
  }
  func.func @transform_1(%arg0: i32) -> (i32, i32) {
    %c0_i32 = arith.constant 0 : i32
    %c0_i32_0 = arith.constant 0 : i32
    return %arg0, %c0_i32 : i32, i32
  }
  func.func @transform_2(%arg0: i32) -> (i32, i32) {
    %c0_i32 = arith.constant 0 : i32
    %c0_i32_0 = arith.constant 0 : i32
    %c0_i32_1 = arith.constant 0 : i32
    return %c0_i32, %c0_i32_0 : i32, i32
  }
  func.func @transform_3(%arg0: i32) -> (i32, i32) {
    %c0_i32 = arith.constant 0 : i32
    %c0_i32_0 = arith.constant 0 : i32
    %c0_i32_1 = arith.constant 0 : i32
    return %c0_i32, %c0_i32_0 : i32, i32
  }
}

module attributes {stable_mosaic.version = 11 : i64} {
  func.func @kernel(%arg0: i32, %arg1: memref<32x768xbf16, #tpu.memory_space<vmem>>, %arg2: memref<768x128xbf16, #tpu.memory_space<vmem>>, %arg3: memref<1x128xf32, #tpu.memory_space<vmem>>, %arg4: memref<1x128xf32, #tpu.memory_space<vmem>>, %arg5: memref<1x128xf32, #tpu.memory_space<vmem>>, %arg6: memref<32x128xf32, #tpu.memory_space<vmem>>) attributes {dimension_semantics = [#tpu.dimension_semantics<arbitrary>], iteration_bounds = array<i64: 3>, scalar_prefetch = 0 : i64, scratch_operands = 0 : i64, tpu.core_type = #tpu.core_type<tc>, window_params = [{transform_indices = @transform_0, window_bounds = array<i64: 32, 768>}, {transform_indices = @transform_1, window_bounds = array<i64: 768, 128>}, {pipeline_mode = #tpu.pipeline_mode<synchronous>, transform_indices = @transform_2, window_bounds = array<i64: 1, 128>}, {pipeline_mode = #tpu.pipeline_mode<synchronous>, transform_indices = @transform_3, window_bounds = array<i64: 1, 128>}, {pipeline_mode = #tpu.pipeline_mode<synchronous>, transform_indices = @transform_4, window_bounds = array<i64: 1, 128>}, {pipeline_mode = #tpu.pipeline_mode<synchronous>, transform_indices = @transform_5, window_bounds = array<i64: 32, 128>}]} {
    %c0_i32 = arith.constant 0 : i32
    %0 = arith.cmpi eq, %arg0, %c0_i32 : i32
    %1 = arith.extui %0 : i1 to i32
    %c0_i32_0 = arith.constant 0 : i32
    %2 = arith.cmpi ne, %1, %c0_i32_0 : i32
    scf.if %2 {
      %cst_9 = arith.constant 0.000000e+00 : f32
      %12 = vector.broadcast %cst_9 : f32 to vector<32x128xf32>
      %c0_10 = arith.constant 0 : index
      %c0_11 = arith.constant 0 : index
      %13 = vector.load %arg6[%c0_10, %c0_11] : memref<32x128xf32, #tpu.memory_space<vmem>>, vector<32x128xf32>
      tpu.vector_store %arg6[%c0_10, %c0_11], %12 {strides = array<i32>} : memref<32x128xf32, #tpu.memory_space<vmem>>, vector<32x128xf32>,
    } else {
    }
    %c0 = arith.constant 0 : index
    %c0_1 = arith.constant 0 : index
    %3 = vector.load %arg6[%c0, %c0_1] : memref<32x128xf32, #tpu.memory_space<vmem>>, vector<32x128xf32>
    %c0_2 = arith.constant 0 : index
    %c0_3 = arith.constant 0 : index
    %4 = vector.load %arg1[%c0_2, %c0_3] : memref<32x768xbf16, #tpu.memory_space<vmem>>, vector<32x768xbf16>
    %c0_4 = arith.constant 0 : index
    %c0_5 = arith.constant 0 : index
    %5 = vector.load %arg2[%c0_4, %c0_5] : memref<768x128xbf16, #tpu.memory_space<vmem>>, vector<768x128xbf16>
    %cst = arith.constant dense<0.000000e+00> : vector<32x128xf32>
    %6 = tpu.matmul %4, %5, %cst {dimension_numbers = #tpu.dot_dimension_numbers<[1], [0], [0], [1], [0, 0, 1, 1], [], []>} : vector<32x768xbf16>, vector<768x128xbf16>, vector<32x128xf32> -> vector<32x128xf32>
    %7 = arith.addf %3, %6 : vector<32x128xf32>
    %c0_6 = arith.constant 0 : index
    %c0_7 = arith.constant 0 : index
    %8 = vector.load %arg6[%c0_6, %c0_7] : memref<32x128xf32, #tpu.memory_space<vmem>>, vector<32x128xf32>
    tpu.vector_store %arg6[%c0_6, %c0_7], %7 {strides = array<i32>} : memref<32x128xf32, #tpu.memory_space<vmem>>, vector<32x128xf32>,
    %c2_i32 = arith.constant 2 : i32
    %9 = arith.cmpi eq, %arg0, %c2_i32 : i32
    %10 = arith.extui %9 : i1 to i32
    %c0_i32_8 = arith.constant 0 : i32
    %11 = arith.cmpi ne, %10, %c0_i32_8 : i32
    scf.if %11 {
      %c0_9 = arith.constant 0 : index
      %c0_10 = arith.constant 0 : index
      %12 = vector.load %arg6[%c0_9, %c0_10] : memref<32x128xf32, #tpu.memory_space<vmem>>, vector<32x128xf32>
      %c0_11 = arith.constant 0 : index
      %c0_12 = arith.constant 0 : index
      %13 = vector.load %arg3[%c0_11, %c0_12] : memref<1x128xf32, #tpu.memory_space<vmem>>, vector<1x128xf32>
      %14 = vector.broadcast %13 : vector<1x128xf32> to vector<32x128xf32>
      %15 = arith.addf %12, %14 : vector<32x128xf32>
      %16 = tpu.iota {dimensions = array<i32: 0>} : vector<32x128xi32>
      %c18_i32 = arith.constant 18 : i32
      %17 = vector.broadcast %c18_i32 : i32 to vector<32x128xi32>
      %18 = arith.cmpi slt, %16, %17 : vector<32x128xi32>
      %cst_13 = arith.constant 0.000000e+00 : f32
      %19 = vector.broadcast %cst_13 : f32 to vector<32x128xf32>
      %20 = arith.select %18, %15, %19 : vector<32x128xi1>, vector<32x128xf32>
      %cst_14 = arith.constant dense<0.000000e+00> : vector<128xf32>
      %21 = vector.multi_reduction <add>, %20, %cst_14 [0] : vector<32x128xf32> to vector<128xf32>
      %22 = vector.shape_cast %21 : vector<128xf32> to vector<1x128xf32>
      %23 = arith.mulf %20, %20 : vector<32x128xf32>
      %cst_15 = arith.constant dense<0.000000e+00> : vector<128xf32>
      %24 = vector.multi_reduction <add>, %23, %cst_15 [0] : vector<32x128xf32> to vector<128xf32>
      %25 = vector.shape_cast %24 : vector<128xf32> to vector<1x128xf32>
      %cst_16 = arith.constant 0.055555556 : f32
      %26 = vector.broadcast %cst_16 : f32 to vector<1x128xf32>
      %27 = arith.mulf %22, %26 : vector<1x128xf32>
      %cst_17 = arith.constant 0.055555556 : f32
      %28 = vector.broadcast %cst_17 : f32 to vector<1x128xf32>
      %29 = arith.mulf %25, %28 : vector<1x128xf32>
      %30 = arith.mulf %27, %27 : vector<1x128xf32>
      %31 = arith.subf %29, %30 : vector<1x128xf32>
      %cst_18 = arith.constant 0.000000e+00 : f32
      %32 = vector.broadcast %cst_18 : f32 to vector<1x128xf32>
      %33 = arith.maximumf %31, %32 : vector<1x128xf32>
      %c0_19 = arith.constant 0 : index
      %c0_20 = arith.constant 0 : index
      %34 = vector.load %arg4[%c0_19, %c0_20] : memref<1x128xf32, #tpu.memory_space<vmem>>, vector<1x128xf32>
      %cst_21 = arith.constant 9.99999974E-6 : f32
      %35 = vector.broadcast %cst_21 : f32 to vector<1x128xf32>
      %36 = arith.addf %33, %35 : vector<1x128xf32>
      %37 = math.rsqrt %36 : vector<1x128xf32>
      %38 = arith.mulf %34, %37 : vector<1x128xf32>
      %c0_22 = arith.constant 0 : index
      %c0_23 = arith.constant 0 : index
      %39 = vector.load %arg5[%c0_22, %c0_23] : memref<1x128xf32, #tpu.memory_space<vmem>>, vector<1x128xf32>
      %40 = arith.mulf %27, %38 : vector<1x128xf32>
      %41 = arith.subf %39, %40 : vector<1x128xf32>
      %42 = vector.broadcast %38 : vector<1x128xf32> to vector<32x128xf32>
      %43 = arith.mulf %15, %42 : vector<32x128xf32>
      %44 = vector.broadcast %41 : vector<1x128xf32> to vector<32x128xf32>
      %45 = arith.addf %43, %44 : vector<32x128xf32>
      %cst_24 = arith.constant 0.000000e+00 : f32
      %46 = vector.broadcast %cst_24 : f32 to vector<32x128xf32>
      %47 = arith.maximumf %45, %46 : vector<32x128xf32>
      %c0_25 = arith.constant 0 : index
      %c0_26 = arith.constant 0 : index
      %48 = vector.load %arg6[%c0_25, %c0_26] : memref<32x128xf32, #tpu.memory_space<vmem>>, vector<32x128xf32>
      tpu.vector_store %arg6[%c0_25, %c0_26], %47 {strides = array<i32>} : memref<32x128xf32, #tpu.memory_space<vmem>>, vector<32x128xf32>,
    } else {
    }
    return
  }
  func.func @transform_0(%arg0: i32) -> (i32, i32) {
    %c0_i32 = arith.constant 0 : i32
    %c0_i32_0 = arith.constant 0 : i32
    return %c0_i32, %arg0 : i32, i32
  }
  func.func @transform_1(%arg0: i32) -> (i32, i32) {
    %c0_i32 = arith.constant 0 : i32
    %c0_i32_0 = arith.constant 0 : i32
    return %arg0, %c0_i32 : i32, i32
  }
  func.func @transform_2(%arg0: i32) -> (i32, i32) {
    %c0_i32 = arith.constant 0 : i32
    %c0_i32_0 = arith.constant 0 : i32
    %c0_i32_1 = arith.constant 0 : i32
    return %c0_i32, %c0_i32_0 : i32, i32
  }
  func.func @transform_3(%arg0: i32) -> (i32, i32) {
    %c0_i32 = arith.constant 0 : i32
    %c0_i32_0 = arith.constant 0 : i32
    %c0_i32_1 = arith.constant 0 : i32
    return %c0_i32, %c0_i32_0 : i32, i32
  }
  func.func @transform_4(%arg0: i32) -> (i32, i32) {
    %c0_i32 = arith.constant 0 : i32
    %c0_i32_0 = arith.constant 0 : i32
    %c0_i32_1 = arith.constant 0 : i32
    return %c0_i32, %c0_i32_0 : i32, i32
  }
  func.func @transform_5(%arg0: i32) -> (i32, i32) {
    %c0_i32 = arith.constant 0 : i32
    %c0_i32_0 = arith.constant 0 : i32
    %c0_i32_1 = arith.constant 0 : i32
    return %c0_i32, %c0_i32_0 : i32, i32
  }
}

module attributes {stable_mosaic.version = 11 : i64} {
  func.func @kernel(%arg0: i32, %arg1: memref<32x512xbf16, #tpu.memory_space<vmem>>, %arg2: memref<512x128xbf16, #tpu.memory_space<vmem>>, %arg3: memref<1x128xf32, #tpu.memory_space<vmem>>, %arg4: memref<1x128xf32, #tpu.memory_space<vmem>>, %arg5: memref<1x128xf32, #tpu.memory_space<vmem>>, %arg6: memref<32x128xf32, #tpu.memory_space<vmem>>) attributes {dimension_semantics = [#tpu.dimension_semantics<arbitrary>], iteration_bounds = array<i64: 1>, scalar_prefetch = 0 : i64, scratch_operands = 0 : i64, tpu.core_type = #tpu.core_type<tc>, window_params = [{transform_indices = @transform_0, window_bounds = array<i64: 32, 512>}, {transform_indices = @transform_1, window_bounds = array<i64: 512, 128>}, {pipeline_mode = #tpu.pipeline_mode<synchronous>, transform_indices = @transform_2, window_bounds = array<i64: 1, 128>}, {pipeline_mode = #tpu.pipeline_mode<synchronous>, transform_indices = @transform_3, window_bounds = array<i64: 1, 128>}, {pipeline_mode = #tpu.pipeline_mode<synchronous>, transform_indices = @transform_4, window_bounds = array<i64: 1, 128>}, {pipeline_mode = #tpu.pipeline_mode<synchronous>, transform_indices = @transform_5, window_bounds = array<i64: 32, 128>}]} {
    %c0_i32 = arith.constant 0 : i32
    %0 = arith.cmpi eq, %arg0, %c0_i32 : i32
    %1 = arith.extui %0 : i1 to i32
    %c0_i32_0 = arith.constant 0 : i32
    %2 = arith.cmpi ne, %1, %c0_i32_0 : i32
    scf.if %2 {
      %cst_10 = arith.constant 0.000000e+00 : f32
      %12 = vector.broadcast %cst_10 : f32 to vector<32x128xf32>
      %c0_11 = arith.constant 0 : index
      %c0_12 = arith.constant 0 : index
      %13 = vector.load %arg6[%c0_11, %c0_12] : memref<32x128xf32, #tpu.memory_space<vmem>>, vector<32x128xf32>
      tpu.vector_store %arg6[%c0_11, %c0_12], %12 {strides = array<i32>} : memref<32x128xf32, #tpu.memory_space<vmem>>, vector<32x128xf32>,
    } else {
    }
    %c0 = arith.constant 0 : index
    %c0_1 = arith.constant 0 : index
    %3 = vector.load %arg6[%c0, %c0_1] : memref<32x128xf32, #tpu.memory_space<vmem>>, vector<32x128xf32>
    %c0_2 = arith.constant 0 : index
    %c0_3 = arith.constant 0 : index
    %4 = vector.load %arg1[%c0_2, %c0_3] : memref<32x512xbf16, #tpu.memory_space<vmem>>, vector<32x512xbf16>
    %c0_4 = arith.constant 0 : index
    %c0_5 = arith.constant 0 : index
    %5 = vector.load %arg2[%c0_4, %c0_5] : memref<512x128xbf16, #tpu.memory_space<vmem>>, vector<512x128xbf16>
    %cst = arith.constant dense<0.000000e+00> : vector<32x128xf32>
    %6 = tpu.matmul %4, %5, %cst {dimension_numbers = #tpu.dot_dimension_numbers<[1], [0], [0], [1], [0, 0, 1, 1], [], []>} : vector<32x512xbf16>, vector<512x128xbf16>, vector<32x128xf32> -> vector<32x128xf32>
    %7 = arith.addf %3, %6 : vector<32x128xf32>
    %c0_6 = arith.constant 0 : index
    %c0_7 = arith.constant 0 : index
    %8 = vector.load %arg6[%c0_6, %c0_7] : memref<32x128xf32, #tpu.memory_space<vmem>>, vector<32x128xf32>
    tpu.vector_store %arg6[%c0_6, %c0_7], %7 {strides = array<i32>} : memref<32x128xf32, #tpu.memory_space<vmem>>, vector<32x128xf32>,
    %c0_i32_8 = arith.constant 0 : i32
    %9 = arith.cmpi eq, %arg0, %c0_i32_8 : i32
    %10 = arith.extui %9 : i1 to i32
    %c0_i32_9 = arith.constant 0 : i32
    %11 = arith.cmpi ne, %10, %c0_i32_9 : i32
    scf.if %11 {
      %c0_10 = arith.constant 0 : index
      %c0_11 = arith.constant 0 : index
      %12 = vector.load %arg6[%c0_10, %c0_11] : memref<32x128xf32, #tpu.memory_space<vmem>>, vector<32x128xf32>
      %c0_12 = arith.constant 0 : index
      %c0_13 = arith.constant 0 : index
      %13 = vector.load %arg3[%c0_12, %c0_13] : memref<1x128xf32, #tpu.memory_space<vmem>>, vector<1x128xf32>
      %14 = vector.broadcast %13 : vector<1x128xf32> to vector<32x128xf32>
      %15 = arith.addf %12, %14 : vector<32x128xf32>
      %16 = tpu.iota {dimensions = array<i32: 0>} : vector<32x128xi32>
      %c32_i32 = arith.constant 32 : i32
      %17 = vector.broadcast %c32_i32 : i32 to vector<32x128xi32>
      %18 = arith.cmpi slt, %16, %17 : vector<32x128xi32>
      %cst_14 = arith.constant 0.000000e+00 : f32
      %19 = vector.broadcast %cst_14 : f32 to vector<32x128xf32>
      %20 = arith.select %18, %15, %19 : vector<32x128xi1>, vector<32x128xf32>
      %cst_15 = arith.constant dense<0.000000e+00> : vector<128xf32>
      %21 = vector.multi_reduction <add>, %20, %cst_15 [0] : vector<32x128xf32> to vector<128xf32>
      %22 = vector.shape_cast %21 : vector<128xf32> to vector<1x128xf32>
      %23 = arith.mulf %20, %20 : vector<32x128xf32>
      %cst_16 = arith.constant dense<0.000000e+00> : vector<128xf32>
      %24 = vector.multi_reduction <add>, %23, %cst_16 [0] : vector<32x128xf32> to vector<128xf32>
      %25 = vector.shape_cast %24 : vector<128xf32> to vector<1x128xf32>
      %cst_17 = arith.constant 3.125000e-02 : f32
      %26 = vector.broadcast %cst_17 : f32 to vector<1x128xf32>
      %27 = arith.mulf %22, %26 : vector<1x128xf32>
      %cst_18 = arith.constant 3.125000e-02 : f32
      %28 = vector.broadcast %cst_18 : f32 to vector<1x128xf32>
      %29 = arith.mulf %25, %28 : vector<1x128xf32>
      %30 = arith.mulf %27, %27 : vector<1x128xf32>
      %31 = arith.subf %29, %30 : vector<1x128xf32>
      %cst_19 = arith.constant 0.000000e+00 : f32
      %32 = vector.broadcast %cst_19 : f32 to vector<1x128xf32>
      %33 = arith.maximumf %31, %32 : vector<1x128xf32>
      %c0_20 = arith.constant 0 : index
      %c0_21 = arith.constant 0 : index
      %34 = vector.load %arg4[%c0_20, %c0_21] : memref<1x128xf32, #tpu.memory_space<vmem>>, vector<1x128xf32>
      %cst_22 = arith.constant 9.99999974E-6 : f32
      %35 = vector.broadcast %cst_22 : f32 to vector<1x128xf32>
      %36 = arith.addf %33, %35 : vector<1x128xf32>
      %37 = math.rsqrt %36 : vector<1x128xf32>
      %38 = arith.mulf %34, %37 : vector<1x128xf32>
      %c0_23 = arith.constant 0 : index
      %c0_24 = arith.constant 0 : index
      %39 = vector.load %arg5[%c0_23, %c0_24] : memref<1x128xf32, #tpu.memory_space<vmem>>, vector<1x128xf32>
      %40 = arith.mulf %27, %38 : vector<1x128xf32>
      %41 = arith.subf %39, %40 : vector<1x128xf32>
      %42 = vector.broadcast %38 : vector<1x128xf32> to vector<32x128xf32>
      %43 = arith.mulf %15, %42 : vector<32x128xf32>
      %44 = vector.broadcast %41 : vector<1x128xf32> to vector<32x128xf32>
      %45 = arith.addf %43, %44 : vector<32x128xf32>
      %cst_25 = arith.constant 0.000000e+00 : f32
      %46 = vector.broadcast %cst_25 : f32 to vector<32x128xf32>
      %47 = arith.maximumf %45, %46 : vector<32x128xf32>
      %c0_26 = arith.constant 0 : index
      %c0_27 = arith.constant 0 : index
      %48 = vector.load %arg6[%c0_26, %c0_27] : memref<32x128xf32, #tpu.memory_space<vmem>>, vector<32x128xf32>
      tpu.vector_store %arg6[%c0_26, %c0_27], %47 {strides = array<i32>} : memref<32x128xf32, #tpu.memory_space<vmem>>, vector<32x128xf32>,
    } else {
    }
    return
  }
  func.func @transform_0(%arg0: i32) -> (i32, i32) {
    %c0_i32 = arith.constant 0 : i32
    %c0_i32_0 = arith.constant 0 : i32
    return %c0_i32, %arg0 : i32, i32
  }
  func.func @transform_1(%arg0: i32) -> (i32, i32) {
    %c0_i32 = arith.constant 0 : i32
    %c0_i32_0 = arith.constant 0 : i32
    return %arg0, %c0_i32 : i32, i32
  }
  func.func @transform_2(%arg0: i32) -> (i32, i32) {
    %c0_i32 = arith.constant 0 : i32
    %c0_i32_0 = arith.constant 0 : i32
    %c0_i32_1 = arith.constant 0 : i32
    return %c0_i32, %c0_i32_0 : i32, i32
  }
  func.func @transform_3(%arg0: i32) -> (i32, i32) {
    %c0_i32 = arith.constant 0 : i32
    %c0_i32_0 = arith.constant 0 : i32
    %c0_i32_1 = arith.constant 0 : i32
    return %c0_i32, %c0_i32_0 : i32, i32
  }
  func.func @transform_4(%arg0: i32) -> (i32, i32) {
    %c0_i32 = arith.constant 0 : i32
    %c0_i32_0 = arith.constant 0 : i32
    %c0_i32_1 = arith.constant 0 : i32
    return %c0_i32, %c0_i32_0 : i32, i32
  }
  func.func @transform_5(%arg0: i32) -> (i32, i32) {
    %c0_i32 = arith.constant 0 : i32
    %c0_i32_0 = arith.constant 0 : i32
    %c0_i32_1 = arith.constant 0 : i32
    return %c0_i32, %c0_i32_0 : i32, i32
  }
}

module attributes {stable_mosaic.version = 11 : i64} {
  func.func @kernel(%arg0: i32, %arg1: memref<112x384xbf16, #tpu.memory_space<vmem>>, %arg2: memref<384x128xbf16, #tpu.memory_space<vmem>>, %arg3: memref<1x128xf32, #tpu.memory_space<vmem>>, %arg4: memref<1x128xf32, #tpu.memory_space<vmem>>, %arg5: memref<1x128xf32, #tpu.memory_space<vmem>>, %arg6: memref<112x128xf32, #tpu.memory_space<vmem>>) attributes {dimension_semantics = [#tpu.dimension_semantics<arbitrary>], iteration_bounds = array<i64: 1>, scalar_prefetch = 0 : i64, scratch_operands = 0 : i64, tpu.core_type = #tpu.core_type<tc>, window_params = [{transform_indices = @transform_0, window_bounds = array<i64: 112, 384>}, {transform_indices = @transform_1, window_bounds = array<i64: 384, 128>}, {pipeline_mode = #tpu.pipeline_mode<synchronous>, transform_indices = @transform_2, window_bounds = array<i64: 1, 128>}, {pipeline_mode = #tpu.pipeline_mode<synchronous>, transform_indices = @transform_3, window_bounds = array<i64: 1, 128>}, {pipeline_mode = #tpu.pipeline_mode<synchronous>, transform_indices = @transform_4, window_bounds = array<i64: 1, 128>}, {pipeline_mode = #tpu.pipeline_mode<synchronous>, transform_indices = @transform_5, window_bounds = array<i64: 112, 128>}]} {
    %c0_i32 = arith.constant 0 : i32
    %0 = arith.cmpi eq, %arg0, %c0_i32 : i32
    %1 = arith.extui %0 : i1 to i32
    %c0_i32_0 = arith.constant 0 : i32
    %2 = arith.cmpi ne, %1, %c0_i32_0 : i32
    scf.if %2 {
      %cst_10 = arith.constant 0.000000e+00 : f32
      %12 = vector.broadcast %cst_10 : f32 to vector<112x128xf32>
      %c0_11 = arith.constant 0 : index
      %c0_12 = arith.constant 0 : index
      %13 = vector.load %arg6[%c0_11, %c0_12] : memref<112x128xf32, #tpu.memory_space<vmem>>, vector<112x128xf32>
      tpu.vector_store %arg6[%c0_11, %c0_12], %12 {strides = array<i32>} : memref<112x128xf32, #tpu.memory_space<vmem>>, vector<112x128xf32>,
    } else {
    }
    %c0 = arith.constant 0 : index
    %c0_1 = arith.constant 0 : index
    %3 = vector.load %arg6[%c0, %c0_1] : memref<112x128xf32, #tpu.memory_space<vmem>>, vector<112x128xf32>
    %c0_2 = arith.constant 0 : index
    %c0_3 = arith.constant 0 : index
    %4 = vector.load %arg1[%c0_2, %c0_3] : memref<112x384xbf16, #tpu.memory_space<vmem>>, vector<112x384xbf16>
    %c0_4 = arith.constant 0 : index
    %c0_5 = arith.constant 0 : index
    %5 = vector.load %arg2[%c0_4, %c0_5] : memref<384x128xbf16, #tpu.memory_space<vmem>>, vector<384x128xbf16>
    %cst = arith.constant dense<0.000000e+00> : vector<112x128xf32>
    %6 = tpu.matmul %4, %5, %cst {dimension_numbers = #tpu.dot_dimension_numbers<[1], [0], [0], [1], [0, 0, 1, 1], [], []>} : vector<112x384xbf16>, vector<384x128xbf16>, vector<112x128xf32> -> vector<112x128xf32>
    %7 = arith.addf %3, %6 : vector<112x128xf32>
    %c0_6 = arith.constant 0 : index
    %c0_7 = arith.constant 0 : index
    %8 = vector.load %arg6[%c0_6, %c0_7] : memref<112x128xf32, #tpu.memory_space<vmem>>, vector<112x128xf32>
    tpu.vector_store %arg6[%c0_6, %c0_7], %7 {strides = array<i32>} : memref<112x128xf32, #tpu.memory_space<vmem>>, vector<112x128xf32>,
    %c0_i32_8 = arith.constant 0 : i32
    %9 = arith.cmpi eq, %arg0, %c0_i32_8 : i32
    %10 = arith.extui %9 : i1 to i32
    %c0_i32_9 = arith.constant 0 : i32
    %11 = arith.cmpi ne, %10, %c0_i32_9 : i32
    scf.if %11 {
      %c0_10 = arith.constant 0 : index
      %c0_11 = arith.constant 0 : index
      %12 = vector.load %arg6[%c0_10, %c0_11] : memref<112x128xf32, #tpu.memory_space<vmem>>, vector<112x128xf32>
      %c0_12 = arith.constant 0 : index
      %c0_13 = arith.constant 0 : index
      %13 = vector.load %arg3[%c0_12, %c0_13] : memref<1x128xf32, #tpu.memory_space<vmem>>, vector<1x128xf32>
      %14 = vector.broadcast %13 : vector<1x128xf32> to vector<112x128xf32>
      %15 = arith.addf %12, %14 : vector<112x128xf32>
      %16 = tpu.iota {dimensions = array<i32: 0>} : vector<112x128xi32>
      %c112_i32 = arith.constant 112 : i32
      %17 = vector.broadcast %c112_i32 : i32 to vector<112x128xi32>
      %18 = arith.cmpi slt, %16, %17 : vector<112x128xi32>
      %cst_14 = arith.constant 0.000000e+00 : f32
      %19 = vector.broadcast %cst_14 : f32 to vector<112x128xf32>
      %20 = arith.select %18, %15, %19 : vector<112x128xi1>, vector<112x128xf32>
      %cst_15 = arith.constant dense<0.000000e+00> : vector<128xf32>
      %21 = vector.multi_reduction <add>, %20, %cst_15 [0] : vector<112x128xf32> to vector<128xf32>
      %22 = vector.shape_cast %21 : vector<128xf32> to vector<1x128xf32>
      %23 = arith.mulf %20, %20 : vector<112x128xf32>
      %cst_16 = arith.constant dense<0.000000e+00> : vector<128xf32>
      %24 = vector.multi_reduction <add>, %23, %cst_16 [0] : vector<112x128xf32> to vector<128xf32>
      %25 = vector.shape_cast %24 : vector<128xf32> to vector<1x128xf32>
      %cst_17 = arith.constant 0.00892857183 : f32
      %26 = vector.broadcast %cst_17 : f32 to vector<1x128xf32>
      %27 = arith.mulf %22, %26 : vector<1x128xf32>
      %cst_18 = arith.constant 0.00892857183 : f32
      %28 = vector.broadcast %cst_18 : f32 to vector<1x128xf32>
      %29 = arith.mulf %25, %28 : vector<1x128xf32>
      %30 = arith.mulf %27, %27 : vector<1x128xf32>
      %31 = arith.subf %29, %30 : vector<1x128xf32>
      %cst_19 = arith.constant 0.000000e+00 : f32
      %32 = vector.broadcast %cst_19 : f32 to vector<1x128xf32>
      %33 = arith.maximumf %31, %32 : vector<1x128xf32>
      %c0_20 = arith.constant 0 : index
      %c0_21 = arith.constant 0 : index
      %34 = vector.load %arg4[%c0_20, %c0_21] : memref<1x128xf32, #tpu.memory_space<vmem>>, vector<1x128xf32>
      %cst_22 = arith.constant 9.99999974E-6 : f32
      %35 = vector.broadcast %cst_22 : f32 to vector<1x128xf32>
      %36 = arith.addf %33, %35 : vector<1x128xf32>
      %37 = math.rsqrt %36 : vector<1x128xf32>
      %38 = arith.mulf %34, %37 : vector<1x128xf32>
      %c0_23 = arith.constant 0 : index
      %c0_24 = arith.constant 0 : index
      %39 = vector.load %arg5[%c0_23, %c0_24] : memref<1x128xf32, #tpu.memory_space<vmem>>, vector<1x128xf32>
      %40 = arith.mulf %27, %38 : vector<1x128xf32>
      %41 = arith.subf %39, %40 : vector<1x128xf32>
      %42 = vector.broadcast %38 : vector<1x128xf32> to vector<112x128xf32>
      %43 = arith.mulf %15, %42 : vector<112x128xf32>
      %44 = vector.broadcast %41 : vector<1x128xf32> to vector<112x128xf32>
      %45 = arith.addf %43, %44 : vector<112x128xf32>
      %cst_25 = arith.constant 0.000000e+00 : f32
      %46 = vector.broadcast %cst_25 : f32 to vector<112x128xf32>
      %47 = arith.maximumf %45, %46 : vector<112x128xf32>
      %c0_26 = arith.constant 0 : index
      %c0_27 = arith.constant 0 : index
      %48 = vector.load %arg6[%c0_26, %c0_27] : memref<112x128xf32, #tpu.memory_space<vmem>>, vector<112x128xf32>
      tpu.vector_store %arg6[%c0_26, %c0_27], %47 {strides = array<i32>} : memref<112x128xf32, #tpu.memory_space<vmem>>, vector<112x128xf32>,
    } else {
    }
    return
  }
  func.func @transform_0(%arg0: i32) -> (i32, i32) {
    %c0_i32 = arith.constant 0 : i32
    %c0_i32_0 = arith.constant 0 : i32
    return %c0_i32, %arg0 : i32, i32
  }
  func.func @transform_1(%arg0: i32) -> (i32, i32) {
    %c0_i32 = arith.constant 0 : i32
    %c0_i32_0 = arith.constant 0 : i32
    return %arg0, %c0_i32 : i32, i32
  }
  func.func @transform_2(%arg0: i32) -> (i32, i32) {
    %c0_i32 = arith.constant 0 : i32
    %c0_i32_0 = arith.constant 0 : i32
    %c0_i32_1 = arith.constant 0 : i32
    return %c0_i32, %c0_i32_0 : i32, i32
  }
  func.func @transform_3(%arg0: i32) -> (i32, i32) {
    %c0_i32 = arith.constant 0 : i32
    %c0_i32_0 = arith.constant 0 : i32
    %c0_i32_1 = arith.constant 0 : i32
    return %c0_i32, %c0_i32_0 : i32, i32
  }
  func.func @transform_4(%arg0: i32) -> (i32, i32) {
    %c0_i32 = arith.constant 0 : i32
    %c0_i32_0 = arith.constant 0 : i32
    %c0_i32_1 = arith.constant 0 : i32
    return %c0_i32, %c0_i32_0 : i32, i32
  }
  func.func @transform_5(%arg0: i32) -> (i32, i32) {
    %c0_i32 = arith.constant 0 : i32
    %c0_i32_0 = arith.constant 0 : i32
    %c0_i32_1 = arith.constant 0 : i32
    return %c0_i32, %c0_i32_0 : i32, i32
  }
}

module attributes {stable_mosaic.version = 11 : i64} {
  func.func @kernel(%arg0: i32, %arg1: memref<368x256xbf16, #tpu.memory_space<vmem>>, %arg2: memref<256x128xbf16, #tpu.memory_space<vmem>>, %arg3: memref<1x128xf32, #tpu.memory_space<vmem>>, %arg4: memref<1x128xf32, #tpu.memory_space<vmem>>, %arg5: memref<1x128xf32, #tpu.memory_space<vmem>>, %arg6: memref<368x128xf32, #tpu.memory_space<vmem>>) attributes {dimension_semantics = [#tpu.dimension_semantics<arbitrary>], iteration_bounds = array<i64: 1>, scalar_prefetch = 0 : i64, scratch_operands = 0 : i64, tpu.core_type = #tpu.core_type<tc>, window_params = [{transform_indices = @transform_0, window_bounds = array<i64: 368, 256>}, {transform_indices = @transform_1, window_bounds = array<i64: 256, 128>}, {pipeline_mode = #tpu.pipeline_mode<synchronous>, transform_indices = @transform_2, window_bounds = array<i64: 1, 128>}, {pipeline_mode = #tpu.pipeline_mode<synchronous>, transform_indices = @transform_3, window_bounds = array<i64: 1, 128>}, {pipeline_mode = #tpu.pipeline_mode<synchronous>, transform_indices = @transform_4, window_bounds = array<i64: 1, 128>}, {pipeline_mode = #tpu.pipeline_mode<synchronous>, transform_indices = @transform_5, window_bounds = array<i64: 368, 128>}]} {
    %c0_i32 = arith.constant 0 : i32
    %0 = arith.cmpi eq, %arg0, %c0_i32 : i32
    %1 = arith.extui %0 : i1 to i32
    %c0_i32_0 = arith.constant 0 : i32
    %2 = arith.cmpi ne, %1, %c0_i32_0 : i32
    scf.if %2 {
      %cst_10 = arith.constant 0.000000e+00 : f32
      %12 = vector.broadcast %cst_10 : f32 to vector<368x128xf32>
      %c0_11 = arith.constant 0 : index
      %c0_12 = arith.constant 0 : index
      %13 = vector.load %arg6[%c0_11, %c0_12] : memref<368x128xf32, #tpu.memory_space<vmem>>, vector<368x128xf32>
      tpu.vector_store %arg6[%c0_11, %c0_12], %12 {strides = array<i32>} : memref<368x128xf32, #tpu.memory_space<vmem>>, vector<368x128xf32>,
    } else {
    }
    %c0 = arith.constant 0 : index
    %c0_1 = arith.constant 0 : index
    %3 = vector.load %arg6[%c0, %c0_1] : memref<368x128xf32, #tpu.memory_space<vmem>>, vector<368x128xf32>
    %c0_2 = arith.constant 0 : index
    %c0_3 = arith.constant 0 : index
    %4 = vector.load %arg1[%c0_2, %c0_3] : memref<368x256xbf16, #tpu.memory_space<vmem>>, vector<368x256xbf16>
    %c0_4 = arith.constant 0 : index
    %c0_5 = arith.constant 0 : index
    %5 = vector.load %arg2[%c0_4, %c0_5] : memref<256x128xbf16, #tpu.memory_space<vmem>>, vector<256x128xbf16>
    %cst = arith.constant dense<0.000000e+00> : vector<368x128xf32>
    %6 = tpu.matmul %4, %5, %cst {dimension_numbers = #tpu.dot_dimension_numbers<[1], [0], [0], [1], [0, 0, 1, 1], [], []>} : vector<368x256xbf16>, vector<256x128xbf16>, vector<368x128xf32> -> vector<368x128xf32>
    %7 = arith.addf %3, %6 : vector<368x128xf32>
    %c0_6 = arith.constant 0 : index
    %c0_7 = arith.constant 0 : index
    %8 = vector.load %arg6[%c0_6, %c0_7] : memref<368x128xf32, #tpu.memory_space<vmem>>, vector<368x128xf32>
    tpu.vector_store %arg6[%c0_6, %c0_7], %7 {strides = array<i32>} : memref<368x128xf32, #tpu.memory_space<vmem>>, vector<368x128xf32>,
    %c0_i32_8 = arith.constant 0 : i32
    %9 = arith.cmpi eq, %arg0, %c0_i32_8 : i32
    %10 = arith.extui %9 : i1 to i32
    %c0_i32_9 = arith.constant 0 : i32
    %11 = arith.cmpi ne, %10, %c0_i32_9 : i32
    scf.if %11 {
      %c0_10 = arith.constant 0 : index
      %c0_11 = arith.constant 0 : index
      %12 = vector.load %arg6[%c0_10, %c0_11] : memref<368x128xf32, #tpu.memory_space<vmem>>, vector<368x128xf32>
      %c0_12 = arith.constant 0 : index
      %c0_13 = arith.constant 0 : index
      %13 = vector.load %arg3[%c0_12, %c0_13] : memref<1x128xf32, #tpu.memory_space<vmem>>, vector<1x128xf32>
      %14 = vector.broadcast %13 : vector<1x128xf32> to vector<368x128xf32>
      %15 = arith.addf %12, %14 : vector<368x128xf32>
      %16 = tpu.iota {dimensions = array<i32: 0>} : vector<368x128xi32>
      %c364_i32 = arith.constant 364 : i32
      %17 = vector.broadcast %c364_i32 : i32 to vector<368x128xi32>
      %18 = arith.cmpi slt, %16, %17 : vector<368x128xi32>
      %cst_14 = arith.constant 0.000000e+00 : f32
      %19 = vector.broadcast %cst_14 : f32 to vector<368x128xf32>
      %20 = arith.select %18, %15, %19 : vector<368x128xi1>, vector<368x128xf32>
      %cst_15 = arith.constant dense<0.000000e+00> : vector<128xf32>
      %21 = vector.multi_reduction <add>, %20, %cst_15 [0] : vector<368x128xf32> to vector<128xf32>
      %22 = vector.shape_cast %21 : vector<128xf32> to vector<1x128xf32>
      %23 = arith.mulf %20, %20 : vector<368x128xf32>
      %cst_16 = arith.constant dense<0.000000e+00> : vector<128xf32>
      %24 = vector.multi_reduction <add>, %23, %cst_16 [0] : vector<368x128xf32> to vector<128xf32>
      %25 = vector.shape_cast %24 : vector<128xf32> to vector<1x128xf32>
      %cst_17 = arith.constant 0.00274725282 : f32
      %26 = vector.broadcast %cst_17 : f32 to vector<1x128xf32>
      %27 = arith.mulf %22, %26 : vector<1x128xf32>
      %cst_18 = arith.constant 0.00274725282 : f32
      %28 = vector.broadcast %cst_18 : f32 to vector<1x128xf32>
      %29 = arith.mulf %25, %28 : vector<1x128xf32>
      %30 = arith.mulf %27, %27 : vector<1x128xf32>
      %31 = arith.subf %29, %30 : vector<1x128xf32>
      %cst_19 = arith.constant 0.000000e+00 : f32
      %32 = vector.broadcast %cst_19 : f32 to vector<1x128xf32>
      %33 = arith.maximumf %31, %32 : vector<1x128xf32>
      %c0_20 = arith.constant 0 : index
      %c0_21 = arith.constant 0 : index
      %34 = vector.load %arg4[%c0_20, %c0_21] : memref<1x128xf32, #tpu.memory_space<vmem>>, vector<1x128xf32>
      %cst_22 = arith.constant 9.99999974E-6 : f32
      %35 = vector.broadcast %cst_22 : f32 to vector<1x128xf32>
      %36 = arith.addf %33, %35 : vector<1x128xf32>
      %37 = math.rsqrt %36 : vector<1x128xf32>
      %38 = arith.mulf %34, %37 : vector<1x128xf32>
      %c0_23 = arith.constant 0 : index
      %c0_24 = arith.constant 0 : index
      %39 = vector.load %arg5[%c0_23, %c0_24] : memref<1x128xf32, #tpu.memory_space<vmem>>, vector<1x128xf32>
      %40 = arith.mulf %27, %38 : vector<1x128xf32>
      %41 = arith.subf %39, %40 : vector<1x128xf32>
      %42 = vector.broadcast %38 : vector<1x128xf32> to vector<368x128xf32>
      %43 = arith.mulf %15, %42 : vector<368x128xf32>
      %44 = vector.broadcast %41 : vector<1x128xf32> to vector<368x128xf32>
      %45 = arith.addf %43, %44 : vector<368x128xf32>
      %cst_25 = arith.constant 0.000000e+00 : f32
      %46 = vector.broadcast %cst_25 : f32 to vector<368x128xf32>
      %47 = arith.maximumf %45, %46 : vector<368x128xf32>
      %c0_26 = arith.constant 0 : index
      %c0_27 = arith.constant 0 : index
      %48 = vector.load %arg6[%c0_26, %c0_27] : memref<368x128xf32, #tpu.memory_space<vmem>>, vector<368x128xf32>
      tpu.vector_store %arg6[%c0_26, %c0_27], %47 {strides = array<i32>} : memref<368x128xf32, #tpu.memory_space<vmem>>, vector<368x128xf32>,
    } else {
    }
    return
  }
  func.func @transform_0(%arg0: i32) -> (i32, i32) {
    %c0_i32 = arith.constant 0 : i32
    %c0_i32_0 = arith.constant 0 : i32
    return %c0_i32, %arg0 : i32, i32
  }
  func.func @transform_1(%arg0: i32) -> (i32, i32) {
    %c0_i32 = arith.constant 0 : i32
    %c0_i32_0 = arith.constant 0 : i32
    return %arg0, %c0_i32 : i32, i32
  }
  func.func @transform_2(%arg0: i32) -> (i32, i32) {
    %c0_i32 = arith.constant 0 : i32
    %c0_i32_0 = arith.constant 0 : i32
    %c0_i32_1 = arith.constant 0 : i32
    return %c0_i32, %c0_i32_0 : i32, i32
  }
  func.func @transform_3(%arg0: i32) -> (i32, i32) {
    %c0_i32 = arith.constant 0 : i32
    %c0_i32_0 = arith.constant 0 : i32
    %c0_i32_1 = arith.constant 0 : i32
    return %c0_i32, %c0_i32_0 : i32, i32
  }
  func.func @transform_4(%arg0: i32) -> (i32, i32) {
    %c0_i32 = arith.constant 0 : i32
    %c0_i32_0 = arith.constant 0 : i32
    %c0_i32_1 = arith.constant 0 : i32
    return %c0_i32, %c0_i32_0 : i32, i32
  }
  func.func @transform_5(%arg0: i32) -> (i32, i32) {
    %c0_i32 = arith.constant 0 : i32
    %c0_i32_0 = arith.constant 0 : i32
    %c0_i32_1 = arith.constant 0 : i32
    return %c0_i32, %c0_i32_0 : i32, i32
  }
}

</mosaic_0001>

<bundles_post_ra>
// kernel: _lambda_.10
= control target key start
LH: loop header
LB: loop body
LE: loop exit
PB: predicated region body
PF: predicated region fallthrough
CT: control target
= control target key end

     0   :  { %v727_v0 = vmov 0.0   ;;  %vm728_vm0 = vmmov 0   ;;  %s1047_s1 = inlined_call_operand.vmem [shape: bf16[128,128], index: 1, kind: input, shape index: {}]   ;;  %s1048_s0 = inlined_call_operand.vmem [shape: bf16[144,128], index: 0, kind: input, shape index: {}]   ;;  %s1049_s2 = inlined_call_operand.vmem [shape: f32[1,128], index: 2, kind: input, shape index: {}]   ;;  %s1050_s3 = inlined_call_operand.vmem [shape: f32[1,128], index: 3, kind: input, shape index: {}]   ;;  %s1051_s4 = inlined_call_operand.vmem [shape: f32[1,128], index: 4, kind: input, shape index: {}]   ;;  %s1052_s5 = inlined_call_operand.vmem [shape: f32[144,128], index: 5, kind: output, shape index: {}]  }
   0x1   :  { %638 = vmatprep.subr.bf16.mxu0 %v727_v0  ;;  %v708_v1 = vld [vmem:[%s1047_s1 + $0x38] sm:$0xff]   ;;  %690 = vmatprep.subr.bf16.mxu1 %v727_v0  ;;  %v709_v2 = vld [vmem:[%s1047_s1 + $0x30] sm:$0xff]   ;;  %v710_v3 = vld [vmem:[%s1047_s1 + $0x28] sm:$0xff]  }
   0x2   :  { %654 = vmatprep.mubr.msk.bf16.mxu0 %vm728_vm0, %v727_v0  ;;  %674 = vmatprep.mubr.msk.bf16.mxu1 %vm728_vm0, %v727_v0  ;;  %v711_v4 = vld [vmem:[%s1047_s1 + $0x20] sm:$0xff]   ;;  %v712_v5 = vld [vmem:[%s1047_s1 + $0x18] sm:$0xff]   ;;  %v713_v6 = vld [vmem:[%s1047_s1 + $0x10] sm:$0xff]  }
   0x3   :  { %639 = vmatpush3.bf16.msra.mxu0 %v708_v1  ;;  %698 = vmatpush3.bf16.msra.mxu1 %v708_v1  ;;  %v714_v7 = vld [vmem:[%s1047_s1 + $0x8] sm:$0xff]   ;;  %v715_v8 = vld [vmem:[%s1047_s1] sm:$0xff]   ;;  %v721_v12 = vld [vmem:[%s1048_s0 + $0x30] sm:$0xff]  }
   0x4   :  { %640 = vmatprep.subr.bf16.mxu0 %v727_v0  ;;  %691 = vmatprep.subr.bf16.mxu1 %v727_v0  ;;  %v716_v9 = vld [vmem:[%s1048_s0] sm:$0xff]   ;;  %v719_v10 = vld [vmem:[%s1048_s0 + $0x28] sm:$0xff]   ;;  %v718_v13 = vld [vmem:[%s1048_s0 + $0x10] sm:$0xff]  }
   0x5   :  { %v717_v11 = vld [vmem:[%s1048_s0 + $0x8] sm:$0xff]   ;;  %v723_v14 = vld [vmem:[%s1048_s0 + $0x38] sm:$0xff]   ;;  %v724_v16 = vld [vmem:[%s1048_s0 + $0x40] sm:$0xff]  }
   0x6   :  { %v720_v15 = vld [vmem:[%s1048_s0 + $0x18] sm:$0xff]   ;;  %v722_v17 = vld [vmem:[%s1048_s0 + $0x20] sm:$0xff]  }
   0x7   :  { %641 = vmatpush3.bf16.msra.mxu0 %v709_v2  ;;  %699 = vmatpush3.bf16.msra.mxu1 %v709_v2  ;;  %v857_v36 = vld [vmem:[%s1049_s2] ss:$0 sm:$0xff] }
   0x8   :  { %642 = vmatprep.subr.bf16.mxu0 %v727_v0  ;;  %692 = vmatprep.subr.bf16.mxu1 %v727_v0 }
   0xb   :  { %643 = vmatpush3.bf16.msra.mxu0 %v710_v3  ;;  %700 = vmatpush3.bf16.msra.mxu1 %v710_v3 }
   0xc   :  { %644 = vmatprep.subr.bf16.mxu0 %v727_v0  ;;  %693 = vmatprep.subr.bf16.mxu1 %v727_v0 }
   0xf   :  { %645 = vmatpush3.bf16.msra.mxu0 %v711_v4  ;;  %701 = vmatpush3.bf16.msra.mxu1 %v711_v4 }
  0x10   :  { %646 = vmatprep.subr.bf16.mxu0 %v727_v0  ;;  %694 = vmatprep.subr.bf16.mxu1 %v727_v0 }
  0x13   :  { %647 = vmatpush3.bf16.msra.mxu0 %v712_v5  ;;  %702 = vmatpush3.bf16.msra.mxu1 %v712_v5 }
  0x14   :  { %648 = vmatprep.subr.bf16.mxu0 %v727_v0  ;;  %695 = vmatprep.subr.bf16.mxu1 %v727_v0 }
  0x17   :  { %649 = vmatpush3.bf16.msra.mxu0 %v713_v6  ;;  %703 = vmatpush3.bf16.msra.mxu1 %v713_v6 }
  0x18   :  { %650 = vmatprep.subr.bf16.mxu0 %v727_v0  ;;  %696 = vmatprep.subr.bf16.mxu1 %v727_v0 }
  0x1b   :  { %651 = vmatpush3.bf16.msra.mxu0 %v714_v7  ;;  %704 = vmatpush3.bf16.msra.mxu1 %v714_v7 }
  0x1c   :  { %652 = vmatprep.subr.bf16.mxu0 %v727_v0  ;;  %697 = vmatprep.subr.bf16.mxu1 %v727_v0 }
  0x1f   :  { %653 = vmatpush3.bf16.msra.mxu0 %v715_v8  ;;  %705 = vmatpush3.bf16.msra.mxu1 %v715_v8 }
  0x22   :  { %655 = vmatmul.mubr.bf16.vlgmr.msra.gmra.mxu0 %v716_v9  ;;  %675 = vmatmul.mubr.bf16.vlgmr.msra.gmra.mxu1 %v719_v10 }
  0x23   :  { %658 = vmatprep.mubr.msk.bf16.mxu0 %vm728_vm0, %v727_v0  ;;  %678 = vmatprep.mubr.msk.bf16.mxu1 %vm728_vm0, %v727_v0 }
  0x2a   :  { %659 = vmatmul.mubr.bf16.gmra.mxu0 %v717_v11  ;;  %679 = vmatmul.mubr.bf16.gmra.mxu1 %v721_v12 }
  0x2b   :  { %662 = vmatprep.mubr.msk.bf16.mxu0 %vm728_vm0, %v727_v0  ;;  %682 = vmatprep.mubr.msk.bf16.mxu1 %vm728_vm0, %v727_v0 }
  0x32   :  { %663 = vmatmul.mubr.bf16.gmra.mxu0 %v718_v13  ;;  %683 = vmatmul.mubr.bf16.gmra.mxu1 %v723_v14 }
  0x33   :  { %666 = vmatprep.mubr.msk.bf16.mxu0 %vm728_vm0, %v727_v0  ;;  %686 = vmatprep.mubr.msk.bf16.mxu1 %vm728_vm0, %v727_v0 }
  0x3a   :  { %667 = vmatmul.mubr.bf16.gmra.mxu0 %v720_v15  ;;  %687 = vmatmul.mubr.bf16.gmra.mxu1 %v724_v16 }
  0x3b   :  { %670 = vmatprep.mubr.msk.bf16.mxu0 %vm728_vm0, %v727_v0 }
  0x42   :  { %671 = vmatmul.mubr.bf16.gmra.mxu0 %v722_v17 }
  0xe2   :  { %v231_v18 = vpop.f32.mrf.mxu0  ;;  %v844_v19 = vpop.f32.mrf.mxu1 }
  0xe3   :  { %v863_v40 = vadd.f32 %v857_v36, %v231_v18 }
  0xe4   :  { %v656_v20 = vpop.f32.mrf.mxu0  ;;  %v676_v21 = vpop.f32.mrf.mxu1 }
  0xe5   :  { %v462_v48 = vmul.f32 %v863_v40, %v863_v40 }
  0xe6   :  { %v234_v22 = vpop.f32.mrf.mxu0  ;;  %v846_v23 = vpop.f32.mrf.mxu1 }
  0xe7   :  { %v860_v37 = vadd.f32 %v857_v36, %v234_v22 }
  0xe8   :  { %v657_v24 = vpop.f32.mrf.mxu0  ;;  %v677_v25 = vpop.f32.mrf.mxu1 }
  0xe9   :  { %v463_v44 = vmul.f32 %v860_v37, %v860_v37  ;;  %v439_v52 = vadd.f32 %v860_v37, %v863_v40  ;;  %v919_v25 = vadd.f32 %v857_v36, %v844_v19 }
  0xea   :  { %v239_v26 = vpop.f32.mrf.mxu0  ;;  %v848_v27 = vpop.f32.mrf.mxu1 }
  0xeb   :  { %v866_v41 = vadd.f32 %v857_v36, %v239_v26  ;;  %v480_v54 = vadd.f32 %v463_v44, %v462_v48 }
  0xec   :  { %v660_v28 = vpop.f32.mrf.mxu0  ;;  %v680_v29 = vpop.f32.mrf.mxu1 }
  0xed   :  { %v464_v49 = vmul.f32 %v866_v41, %v866_v41  ;;  %v440_v57 = vadd.f32 %v439_v52, %v866_v41  ;;  %v924_v29 = vadd.f32 %v857_v36, %v846_v23 }
  0xee   :  { %v242_v30 = vpop.f32.mrf.mxu0  ;;  %v850_v31 = vpop.f32.mrf.mxu1 }
  0xef   :  { %v873_v47 = vadd.f32 %v857_v36, %v242_v30  ;;  %v481_v60 = vadd.f32 %v480_v54, %v464_v49  ;;  %v938_v23 = vadd.f32 %v857_v36, %v850_v31  ;;  %v473_v44 = vmul.f32 %v924_v29, %v924_v29 }
  0xf0   :  { %v661_v32 = vpop.f32.mrf.mxu0  ;;  %v681_v33 = vpop.f32.mrf.mxu1 }
  0xf1   :  { %v465_v58 = vmul.f32 %v873_v47, %v873_v47  ;;  %v441_v63 = vadd.f32 %v440_v57, %v873_v47  ;;  %v475_v31 = vmul.f32 %v938_v23, %v938_v23 }
  0xf2   :  { %v247_v34 = vpop.f32.mrf.mxu0  ;;  %v852_v35 = vpop.f32.mrf.mxu1 }
  0xf3   :  { %v882_v53 = vadd.f32 %v857_v36, %v247_v34  ;;  %v482_v4 = vadd.f32 %v481_v60, %v465_v58  ;;  %v931_v34 = vadd.f32 %v857_v36, %v848_v27 }
  0xf4   :  { %v664_v38 = vpop.f32.mrf.mxu0  ;;  %v684_v39 = vpop.f32.mrf.mxu1 }
  0xf5   :  { %v466_v0 = vmul.f32 %v882_v53, %v882_v53  ;;  %v442_v5 = vadd.f32 %v441_v63, %v882_v53  ;;  %v472_v38 = vmul.f32 %v919_v25, %v919_v25  ;;  %v474_v27 = vmul.f32 %v931_v34, %v931_v34 }
  0xf6   :  { %v250_v42 = vpop.f32.mrf.mxu0  ;;  %v868_v43 = vpop.f32.mrf.mxu1 }
  0xf7   :  { %v888_v59 = vadd.f32 %v857_v36, %v250_v42  ;;  %v483_v9 = vadd.f32 %v482_v4, %v466_v0 }
  0xf8   :  { %v665_v45 = vpop.f32.mrf.mxu0  ;;  %v685_v46 = vpop.f32.mrf.mxu1 }
  0xf9   :  { %v467_v6 = vmul.f32 %v888_v59, %v888_v59  ;;  %v443_v11 = vadd.f32 %v442_v5, %v888_v59  ;;  %v947_v46 = vadd.f32 %v857_v36, %v852_v35 }
  0xfa   :  { %v255_v50 = vpop.f32.mrf.mxu0  ;;  %v295_v51 = vpop.f32.mrf.mxu1 }
  0xfb   :  { %v894_v1 = vadd.f32 %v857_v36, %v255_v50  ;;  %v484_v16 = vadd.f32 %v483_v9, %v467_v6  ;;  %v954_v50 = vadd.f32 %v857_v36, %v868_v43  ;;  %v476_v35 = vmul.f32 %v947_v46, %v947_v46 }
  0xfc   :  { %v668_v55 = vpop.f32.mrf.mxu0  ;;  %v688_v56 = vpop.f32.mrf.mxu1 }
  0xfd   :  { %v468_v10 = vmul.f32 %v894_v1, %v894_v1  ;;  %v444_v14 = vadd.f32 %v443_v11, %v894_v1  ;;  %v958_v55 = vadd.f32 %v857_v36, %v295_v51  ;;  %v477_v43 = vmul.f32 %v954_v50, %v954_v50 }
  0xfe   :  { %v258_v61 = vpop.f32.mrf.mxu0  ;;  %v298_v62 = vpop.f32.mrf.mxu1 }
  0xff   :  { %v900_v7 = vadd.f32 %v857_v36, %v258_v61  ;;  %v485_v21 = vadd.f32 %v484_v16, %v468_v10  ;;  %v383_v58 = vadd.f32 %v857_v36, %v298_v62  ;;  %v478_v51 = vmul.f32 %v958_v55, %v958_v55 }
 0x100   :  { %v669_v2 = vpop.f32.mrf.mxu0  ;;  %v689_v3 = vpop.f32.mrf.mxu1 }
 0x101   :  { %v469_v15 = vmul.f32 %v900_v7, %v900_v7  ;;  %v445_v18 = vadd.f32 %v444_v14, %v900_v7  ;;  %v479_v3 = vmul.f32 %v383_v58, %v383_v58 }
 0x102   :  { %v263_v8 = vpop.f32.mrf.mxu0 }
 0x103   :  { %v906_v13 = vadd.f32 %v857_v36, %v263_v8  ;;  %v486_v28 = vadd.f32 %v485_v21, %v469_v15 }
 0x104   :  { %v672_v12 = vpop.f32.mrf.mxu0 }
 0x105   :  { %v470_v20 = vmul.f32 %v906_v13, %v906_v13  ;;  %v446_v26 = vadd.f32 %v445_v18, %v906_v13 }
 0x106   :  { %v266_v17 = vpop.f32.mrf.mxu0 }
 0x107   :  { %v915_v24 = vadd.f32 %v857_v36, %v266_v17  ;;  %v487_v33 = vadd.f32 %v486_v28, %v470_v20 }
 0x108   :  { %v673_v22 = vpop.f32.mrf.mxu0 }
 0x109   :  { %v447_v30 = vadd.f32 %v446_v26, %v915_v24  ;;  %v471_v32 = vmul.f32 %v915_v24, %v915_v24 }
 0x10b   :  { %v448_v19 = vadd.f32 %v447_v30, %v919_v25  ;;  %v488_v39 = vadd.f32 %v487_v33, %v471_v32  ;;  %v516_v30 = vlaneseq  ;;  %v508_v33 = vld [vmem:[%s1050_s3] sm:$0x1] }
 0x10d   :  { %v449_v42 = vadd.f32 %v448_v19, %v924_v29  ;;  %v489_v45 = vadd.f32 %v488_v39, %v472_v38  ;;  %v517_v32 = vshrl.u32 %v516_v30, 7 }
 0x10f   :  { %v450_v48 = vadd.f32 %v449_v42, %v931_v34  ;;  %v490_v49 = vadd.f32 %v489_v45, %v473_v44  ;;  %v518_v19 = vsub.s32 0, %v517_v32  ;;  %v512_v42 = vld [vmem:[%s1051_s4] sm:$0x1] }
 0x111   :  { %v451_v52 = vadd.f32 %v450_v48, %v938_v23  ;;  %v491_v54 = vadd.f32 %v490_v49, %v474_v27 }
 0x113   :  { %v452_v56 = vadd.f32 %v451_v52, %v947_v46  ;;  %v492_v57 = vadd.f32 %v491_v54, %v475_v31 }
 0x115   :  { %v453_v60 = vadd.f32 %v452_v56, %v954_v50  ;;  %v493_v61 = vadd.f32 %v492_v57, %v476_v35 }
 0x117   :  { %v454_v63 = vadd.f32 %v453_v60, %v958_v55  ;;  %v494_v0 = vadd.f32 %v493_v61, %v477_v43 }
 0x119   :  { %v455_v2 = vadd.f32 %v454_v63, %v383_v58  ;;  %v495_v4 = vadd.f32 %v494_v0, %v478_v51 }
 0x11b   :  { %v456_v5 = vrot.slane %v455_v2, 4  ;;  %v496_v6 = vadd.f32 %v495_v4, %v479_v3 }
 0x11d   :  { %v457_v8 = vadd.f32 %v456_v5, %v455_v2  ;;  %v497_v9 = vrot.slane %v496_v6, 4 }
 0x11f   :  { %v458_v36 = vrot.slane %v457_v8, 2  ;;  %v498_v62 = vadd.f32 %v497_v9, %v496_v6 }
 0x121   :  { %v459_v10 = vadd.f32 %v458_v36, %v457_v8  ;;  %v499_v11 = vrot.slane %v498_v62, 2 }
 0x123   :  { %v460_v12 = vrot.slane %v459_v10, 1  ;;  %v500_v14 = vadd.f32 %v499_v11, %v498_v62 }
 0x125   :  { %v461_v15 = vadd.f32 %v460_v12, %v459_v10  ;;  %v501_v16 = vrot.slane %v500_v14, 1 }
 0x127   :  { %v502_v17 = vadd.f32 %v501_v16, %v500_v14  ;;  %v503_v18 = vmul.f32 0.0069444445, %v461_v15 }
 0x129   :  { %v504_v20 = vmul.f32 0.0069444445, %v502_v17  ;;  %v505_v21 = vmul.f32 %v503_v18, %v503_v18 }
 0x12b   :  { %v506_v22 = vsub.f32 %v504_v20, %v505_v21 }
 0x12d   :  { %v507_v26 = vmax.f32 %v506_v22, 0.0 }
 0x12f   :  { %v509_v28 = vadd.f32 1e-05, %v507_v26 }
 0x131   :  { %725 = vrsqrt.f32 %v509_v28 }
 0x13e   :  { %v726_v38 = vpop.eup %725 }
 0x13f   :  { %v511_v39 = vmul.f32 %v726_v38, %v508_v33 }
 0x141   :  { %v513_v44 = vmul.f32 %v511_v39, %v503_v18  ;;  %v519_v45 = vrot.slane %v511_v39, %v518_v19 }
 0x143   :  { %v514_v27 = vsub.f32 %v512_v42, %v513_v44  ;;  %v521_v48 = vmul.f32 %v519_v45, %v863_v40  ;;  %v522_v49 = vmul.f32 %v519_v45, %v860_v37  ;;  %v523_v31 = vmul.f32 %v519_v45, %v866_v41 }
 0x144   :  { %v524_v52 = vmul.f32 %v519_v45, %v873_v47  ;;  %v525_v54 = vmul.f32 %v519_v45, %v882_v53  ;;  %v526_v56 = vmul.f32 %v519_v45, %v888_v59  ;;  %v527_v35 = vmul.f32 %v519_v45, %v894_v1 }
 0x145   :  { %v528_v57 = vmul.f32 %v519_v45, %v900_v7  ;;  %v529_v60 = vmul.f32 %v519_v45, %v906_v13  ;;  %v530_v43 = vmul.f32 %v519_v45, %v915_v24  ;;  %v531_v40 = vmul.f32 %v519_v45, %v919_v25 }
 0x146   :  { %v532_v37 = vmul.f32 %v519_v45, %v924_v29  ;;  %v533_v41 = vmul.f32 %v519_v45, %v931_v34  ;;  %v534_v47 = vmul.f32 %v519_v45, %v938_v23  ;;  %v543_v61 = vrot.slane %v514_v27, %v518_v19 }
 0x147   :  { %v535_v53 = vmul.f32 %v519_v45, %v947_v46  ;;  %v536_v59 = vmul.f32 %v519_v45, %v954_v50  ;;  %v537_v1 = vmul.f32 %v519_v45, %v958_v55  ;;  %v538_v7 = vmul.f32 %v519_v45, %v383_v58 }
 0x148   :  { %v545_v63 = vadd.f32 %v543_v61, %v521_v48  ;;  %v546_v13 = vadd.f32 %v543_v61, %v522_v49  ;;  %v547_v51 = vadd.f32 %v543_v61, %v523_v31  ;;  %v548_v24 = vadd.f32 %v543_v61, %v524_v52 }
 0x149   :  { %v549_v0 = vadd.f32 %v543_v61, %v525_v54  ;;  %v550_v25 = vadd.f32 %v543_v61, %v526_v56  ;;  %v551_v2 = vadd.f32 %v543_v61, %v527_v35  ;;  %v552_v29 = vadd.f32 %v543_v61, %v528_v57 }
 0x14a   :  { %v553_v3 = vadd.f32 %v543_v61, %v529_v60  ;;  %v554_v34 = vadd.f32 %v543_v61, %v530_v43  ;;  %v555_v4 = vadd.f32 %v543_v61, %v531_v40  ;;  %v556_v23 = vadd.f32 %v543_v61, %v532_v37 }
 0x14b   :  { %v557_v5 = vadd.f32 %v543_v61, %v533_v41  ;;  %v558_v6 = vadd.f32 %v543_v61, %v534_v47  ;;  %v559_v46 = vadd.f32 %v543_v61, %v535_v53  ;;  %v560_v8 = vadd.f32 %v543_v61, %v536_v59 }
 0x14c   :  { %v561_v50 = vadd.f32 %v543_v61, %v537_v1  ;;  %v562_v9 = vadd.f32 %v543_v61, %v538_v7  ;;  %v563_v55 = vmax.f32 %v545_v63, 0.0  ;;  %v564_v58 = vmax.f32 %v546_v13, 0.0 }
 0x14d   :  { %v565_v36 = vmax.f32 %v547_v51, 0.0  ;;  %v566_v62 = vmax.f32 %v548_v24, 0.0  ;;  %v567_v10 = vmax.f32 %v549_v0, 0.0  ;;  %v568_v11 = vmax.f32 %v550_v25, 0.0 }
 0x14e   :  { %v569_v12 = vmax.f32 %v551_v2, 0.0  ;;  %v570_v14 = vmax.f32 %v552_v29, 0.0  ;;  %v571_v15 = vmax.f32 %v553_v3, 0.0  ;;  %v572_v16 = vmax.f32 %v554_v34, 0.0  ;;  %581 = vst [vmem:[%s1052_s5] sm:$0xff] %v563_v55  ;;  %582 = vst [vmem:[%s1052_s5 + $0x8] sm:$0xff] %v564_v58 }
 0x14f   :  { %v573_v17 = vmax.f32 %v555_v4, 0.0  ;;  %v574_v18 = vmax.f32 %v556_v23, 0.0  ;;  %v575_v20 = vmax.f32 %v557_v5, 0.0  ;;  %v576_v21 = vmax.f32 %v558_v6, 0.0  ;;  %583 = vst [vmem:[%s1052_s5 + $0x10] sm:$0xff] %v565_v36  ;;  %584 = vst [vmem:[%s1052_s5 + $0x18] sm:$0xff] %v566_v62 }
 0x150   :  { %585 = vst [vmem:[%s1052_s5 + $0x20] sm:$0xff] %v567_v10  ;;  %586 = vst [vmem:[%s1052_s5 + $0x28] sm:$0xff] %v568_v11  ;;  %v577_v22 = vmax.f32 %v559_v46, 0.0  ;;  %v578_v26 = vmax.f32 %v560_v8, 0.0  ;;  %v579_v28 = vmax.f32 %v561_v50, 0.0  ;;  %v580_v30 = vmax.f32 %v562_v9, 0.0 }
 0x151   :  { %587 = vst [vmem:[%s1052_s5 + $0x30] sm:$0xff] %v569_v12  ;;  %588 = vst [vmem:[%s1052_s5 + $0x38] sm:$0xff] %v570_v14 }
 0x152   :  { %589 = vst [vmem:[%s1052_s5 + $0x40] sm:$0xff] %v571_v15  ;;  %590 = vst [vmem:[%s1052_s5 + $0x48] sm:$0xff] %v572_v16 }
 0x153   :  { %591 = vst [vmem:[%s1052_s5 + $0x50] sm:$0xff] %v573_v17  ;;  %592 = vst [vmem:[%s1052_s5 + $0x58] sm:$0xff] %v574_v18 }
 0x154   :  { %593 = vst [vmem:[%s1052_s5 + $0x60] sm:$0xff] %v575_v20  ;;  %594 = vst [vmem:[%s1052_s5 + $0x68] sm:$0xff] %v576_v21 }
 0x155   :  { %595 = vst [vmem:[%s1052_s5 + $0x70] sm:$0xff] %v577_v22  ;;  %596 = vst [vmem:[%s1052_s5 + $0x78] sm:$0xff] %v578_v26 }
 0x156   :  { %597 = vst [vmem:[%s1052_s5 + $0x80] sm:$0xff] %v579_v28  ;;  %598 = vst [vmem:[%s1052_s5 + $0x88] sm:$0xff] %v580_v30 }

// kernel: _lambda_.11
= control target key start
LH: loop header
LB: loop body
LE: loop exit
PB: predicated region body
PF: predicated region fallthrough
CT: control target
= control target key end

     0   :  { %s615_s1 = inlined_call_operand.vmem [shape: bf16[256,128], index: 1, kind: input, shape index: {}]   ;;  %s616_s0 = inlined_call_operand.vmem [shape: bf16[48,256], index: 0, kind: input, shape index: {}]   ;;  %s617_s2 = inlined_call_operand.vmem [shape: f32[1,128], index: 2, kind: input, shape index: {}]   ;;  %s618_s3 = inlined_call_operand.vmem [shape: f32[1,128], index: 3, kind: input, shape index: {}]   ;;  %s619_s4 = inlined_call_operand.vmem [shape: f32[1,128], index: 4, kind: input, shape index: {}]   ;;  %s620_s5 = inlined_call_operand.vmem [shape: f32[48,128], index: 5, kind: output, shape index: {}]  }
   0x1   :  { %v465_v0 = vld [vmem:[%s615_s1 + $0x78] sm:$0xff]   ;;  %v467_v2 = vld [vmem:[%s615_s1 + $0x70] sm:$0xff]   ;;  %v469_v4 = vld [vmem:[%s615_s1 + $0x68] sm:$0xff]  }
   0x2   :  { %v466_v1 = vld [vmem:[%s615_s1 + $0x38] sm:$0xff]   ;;  %414 = vmatprep.subr.bf16.mxu0 %v465_v0  ;;  %448 = vmatprep.subr.bf16.mxu1 %v465_v0  ;;  %v468_v3 = vld [vmem:[%s615_s1 + $0x30] sm:$0xff]   ;;  %v470_v5 = vld [vmem:[%s615_s1 + $0x28] sm:$0xff]  }
   0x3   :  { %415 = vmatpush3.bf16.msra.mxu0 %v466_v1  ;;  %456 = vmatpush3.bf16.msra.mxu1 %v466_v1  ;;  %v471_v6 = vld [vmem:[%s615_s1 + $0x60] sm:$0xff]   ;;  %v473_v8 = vld [vmem:[%s615_s1 + $0x58] sm:$0xff]   ;;  %v475_v10 = vld [vmem:[%s615_s1 + $0x50] sm:$0xff]  }
   0x4   :  { %416 = vmatprep.subr.bf16.mxu0 %v467_v2  ;;  %449 = vmatprep.subr.bf16.mxu1 %v467_v2  ;;  %v472_v7 = vld [vmem:[%s615_s1 + $0x20] sm:$0xff]   ;;  %v474_v9 = vld [vmem:[%s615_s1 + $0x18] sm:$0xff]   ;;  %v476_v13 = vld [vmem:[%s615_s1 + $0x10] sm:$0xff]  }
   0x5   :  { %v483_v11 = vld [vmem:[%s616_s0 + $0x4] ss:$8 sps:$4 sm:$0xff]   ;;  %v486_v12 = vld [vmem:[%s616_s0 + $0x14] ss:$8 sps:$4 sm:$0xff]   ;;  %v481_v18 = vld [vmem:[%s616_s0] ss:$8 sps:$4 sm:$0xff]  }
   0x6   :  { %v477_v14 = vld [vmem:[%s615_s1 + $0x48] sm:$0xff]   ;;  %233 = vmatprep.mubr.bf16.mxu0 %v483_v11  ;;  %241 = vmatprep.mubr.bf16.mxu1 %v486_v12  ;;  %v479_v16 = vld [vmem:[%s615_s1 + $0x40] sm:$0xff]   ;;  %v484_v19 = vld [vmem:[%s616_s0 + $0x10] ss:$8 sps:$4 sm:$0xff]  }
   0x7   :  { %417 = vmatpush3.bf16.msra.mxu0 %v468_v3  ;;  %457 = vmatpush3.bf16.msra.mxu1 %v468_v3  ;;  %v478_v15 = vld [vmem:[%s615_s1 + $0x8] sm:$0xff]   ;;  %v480_v17 = vld [vmem:[%s615_s1] sm:$0xff]  }
   0x8   :  { %418 = vmatprep.subr.bf16.mxu0 %v469_v4  ;;  %450 = vmatprep.subr.bf16.mxu1 %v469_v4  ;;  %v487_v20 = vld [vmem:[%s616_s0 + $0x24] ss:$8 sps:$4 sm:$0xff]   ;;  %v489_v21 = vld [vmem:[%s616_s0 + $0x20] ss:$8 sps:$4 sm:$0xff]  }
   0x9   :  { %v413_v30 = vld [vmem:[%s617_s2] ss:$0 sm:$0xff] }
   0xb   :  { %419 = vmatpush3.bf16.msra.mxu0 %v470_v5  ;;  %458 = vmatpush3.bf16.msra.mxu1 %v470_v5 }
   0xc   :  { %420 = vmatprep.subr.bf16.mxu0 %v471_v6  ;;  %451 = vmatprep.subr.bf16.mxu1 %v471_v6 }
   0xf   :  { %421 = vmatpush3.bf16.msra.mxu0 %v472_v7  ;;  %459 = vmatpush3.bf16.msra.mxu1 %v472_v7 }
  0x10   :  { %422 = vmatprep.subr.bf16.mxu0 %v473_v8  ;;  %452 = vmatprep.subr.bf16.mxu1 %v473_v8 }
  0x13   :  { %423 = vmatpush3.bf16.msra.mxu0 %v474_v9  ;;  %460 = vmatpush3.bf16.msra.mxu1 %v474_v9 }
  0x14   :  { %424 = vmatprep.subr.bf16.mxu0 %v475_v10  ;;  %453 = vmatprep.subr.bf16.mxu1 %v475_v10  ;;  %v352_v10 = vlaneseq }
  0x16   :  { %v353_v12 = vshrl.u32 %v352_v10, 7 }
  0x17   :  { %425 = vmatpush3.bf16.msra.mxu0 %v476_v13  ;;  %461 = vmatpush3.bf16.msra.mxu1 %v476_v13 }
  0x18   :  { %426 = vmatprep.subr.bf16.mxu0 %v477_v14  ;;  %454 = vmatprep.subr.bf16.mxu1 %v477_v14  ;;  %v344_v14 = vld [vmem:[%s618_s3] sm:$0x1] }
  0x1b   :  { %427 = vmatpush3.bf16.msra.mxu0 %v478_v15  ;;  %462 = vmatpush3.bf16.msra.mxu1 %v478_v15 }
  0x1c   :  { %428 = vmatprep.subr.bf16.mxu0 %v479_v16  ;;  %455 = vmatprep.subr.bf16.mxu1 %v479_v16  ;;  %v354_v16 = vsub.s32 0, %v353_v12 }
  0x1f   :  { %429 = vmatpush3.bf16.msra.mxu0 %v480_v17  ;;  %463 = vmatpush3.bf16.msra.mxu1 %v480_v17 }
  0x22   :  { %234 = vmatmul.mubr.bf16.vlgmr.msra.gmra.mxu0 %v481_v18  ;;  %242 = vmatmul.mubr.bf16.vlgmr.msra.gmra.mxu1 %v484_v19  ;;  %v348_v19 = vld [vmem:[%s619_s4] sm:$0x1] }
  0x23   :  { %249 = vmatprep.mubr.bf16.mxu1 %v487_v20 }
  0x2a   :  { %250 = vmatmul.mubr.bf16.gmra.mxu1 %v489_v21 }
  0xe2   :  { %v430_v22 = vpop.f32.mrf.mxu0  ;;  %v436_v23 = vpop.f32.mrf.mxu1 }
  0xe4   :  { %v431_v24 = vpop.f32.mrf.mxu0  ;;  %v437_v25 = vpop.f32.mrf.mxu1 }
  0xe5   :  { %v432_v26 = vadd.f32 %v431_v24, %v430_v22  ;;  %v438_v27 = vadd.f32 %v437_v25, %v436_v23 }
  0xe6   :  { %v433_v28 = vpop.f32.mrf.mxu0  ;;  %v439_v29 = vpop.f32.mrf.mxu1 }
  0xe7   :  { %v286_v36 = vadd.f32 %v432_v26, %v413_v30  ;;  %v288_v40 = vadd.f32 %v438_v27, %v413_v30 }
  0xe8   :  { %v434_v31 = vpop.f32.mrf.mxu0  ;;  %v440_v32 = vpop.f32.mrf.mxu1 }
  0xe9   :  { %v435_v33 = vadd.f32 %v434_v31, %v433_v28  ;;  %v441_v34 = vadd.f32 %v440_v32, %v439_v29  ;;  %v322_v41 = vmul.f32 %v286_v36, %v286_v36  ;;  %v324_v47 = vmul.f32 %v288_v40, %v288_v40 }
  0xea   :  { %v442_v35 = vpop.f32.mrf.mxu1 }
  0xeb   :  { %v287_v39 = vadd.f32 %v435_v33, %v413_v30  ;;  %v289_v42 = vadd.f32 %v441_v34, %v413_v30 }
  0xec   :  { %v443_v37 = vpop.f32.mrf.mxu1 }
  0xed   :  { %v444_v38 = vadd.f32 %v443_v37, %v442_v35  ;;  %v311_v43 = vadd.f32 %v287_v39, %v286_v36  ;;  %v323_v44 = vmul.f32 %v287_v39, %v287_v39  ;;  %v325_v50 = vmul.f32 %v289_v42, %v289_v42 }
  0xee   :  { %v445_v11 = vpop.f32.mrf.mxu1 }
  0xef   :  { %v290_v45 = vadd.f32 %v444_v38, %v413_v30  ;;  %v312_v46 = vadd.f32 %v311_v43, %v288_v40  ;;  %v328_v48 = vadd.f32 %v323_v44, %v322_v41 }
  0xf0   :  { %v446_v13 = vpop.f32.mrf.mxu1 }
  0xf1   :  { %v313_v49 = vadd.f32 %v312_v46, %v289_v42  ;;  %v329_v51 = vadd.f32 %v328_v48, %v324_v47  ;;  %v326_v53 = vmul.f32 %v290_v45, %v290_v45  ;;  %v447_v15 = vadd.f32 %v446_v13, %v445_v11 }
  0xf3   :  { %v314_v52 = vadd.f32 %v313_v49, %v290_v45  ;;  %v330_v54 = vadd.f32 %v329_v51, %v325_v50  ;;  %v291_v24 = vadd.f32 %v447_v15, %v413_v30 }
  0xf5   :  { %v316_v55 = vrot.slane %v314_v52, 4  ;;  %v331_v56 = vadd.f32 %v330_v54, %v326_v53 }
  0xf7   :  { %v317_v57 = vadd.f32 %v316_v55, %v314_v52  ;;  %v333_v58 = vrot.slane %v331_v56, 4 }
  0xf9   :  { %v318_v59 = vrot.slane %v317_v57, 2  ;;  %v334_v60 = vadd.f32 %v333_v58, %v331_v56 }
  0xfb   :  { %v319_v61 = vadd.f32 %v318_v59, %v317_v57  ;;  %v335_v62 = vrot.slane %v334_v60, 2 }
  0xfd   :  { %v320_v63 = vrot.slane %v319_v61, 1  ;;  %v336_v0 = vadd.f32 %v335_v62, %v334_v60 }
  0xff   :  { %v321_v1 = vadd.f32 %v320_v63, %v319_v61  ;;  %v337_v2 = vrot.slane %v336_v0, 1 }
 0x101   :  { %v338_v3 = vadd.f32 %v337_v2, %v336_v0  ;;  %v339_v4 = vmul.f32 0.025, %v321_v1 }
 0x103   :  { %v340_v5 = vmul.f32 0.025, %v338_v3  ;;  %v341_v6 = vmul.f32 %v339_v4, %v339_v4 }
 0x105   :  { %v342_v7 = vsub.f32 %v340_v5, %v341_v6 }
 0x107   :  { %v343_v8 = vmax.f32 %v342_v7, 0.0 }
 0x109   :  { %v345_v9 = vadd.f32 1e-05, %v343_v8 }
 0x10b   :  { %490 = vrsqrt.f32 %v345_v9 }
 0x118   :  { %v491_v17 = vpop.eup %490 }
 0x119   :  { %v347_v18 = vmul.f32 %v491_v17, %v344_v14 }
 0x11b   :  { %v349_v20 = vmul.f32 %v347_v18, %v339_v4  ;;  %v355_v21 = vrot.slane %v347_v18, %v354_v16 }
 0x11d   :  { %v350_v22 = vsub.f32 %v348_v19, %v349_v20  ;;  %v357_v23 = vmul.f32 %v355_v21, %v286_v36  ;;  %v358_v25 = vmul.f32 %v355_v21, %v287_v39  ;;  %v359_v26 = vmul.f32 %v355_v21, %v288_v40 }
 0x11e   :  { %v360_v27 = vmul.f32 %v355_v21, %v289_v42  ;;  %v361_v29 = vmul.f32 %v355_v21, %v290_v45  ;;  %v362_v31 = vmul.f32 %v355_v21, %v291_v24 }
 0x11f   :  { %v367_v28 = vrot.slane %v350_v22, %v354_v16 }
 0x121   :  { %v369_v32 = vadd.f32 %v367_v28, %v357_v23  ;;  %v370_v33 = vadd.f32 %v367_v28, %v358_v25  ;;  %v371_v34 = vadd.f32 %v367_v28, %v359_v26  ;;  %v372_v35 = vadd.f32 %v367_v28, %v360_v27 }
 0x122   :  { %v373_v37 = vadd.f32 %v367_v28, %v361_v29  ;;  %v374_v38 = vadd.f32 %v367_v28, %v362_v31 }
 0x123   :  { %v375_v41 = vmax.f32 %v369_v32, 0.0  ;;  %v376_v43 = vmax.f32 %v370_v33, 0.0  ;;  %v377_v44 = vmax.f32 %v371_v34, 0.0  ;;  %v378_v46 = vmax.f32 %v372_v35, 0.0 }
 0x124   :  { %v379_v47 = vmax.f32 %v373_v37, 0.0  ;;  %v380_v48 = vmax.f32 %v374_v38, 0.0 }
 0x125   :  { %381 = vst [vmem:[%s620_s5] sm:$0xff] %v375_v41  ;;  %382 = vst [vmem:[%s620_s5 + $0x8] sm:$0xff] %v376_v43 }
 0x126   :  { %383 = vst [vmem:[%s620_s5 + $0x10] sm:$0xff] %v377_v44  ;;  %384 = vst [vmem:[%s620_s5 + $0x18] sm:$0xff] %v378_v46 }
 0x127   :  { %385 = vst [vmem:[%s620_s5 + $0x20] sm:$0xff] %v379_v47  ;;  %386 = vst [vmem:[%s620_s5 + $0x28] sm:$0xff] %v380_v48 }

// kernel: _lambda_.12
= control target key start
LH: loop header
LB: loop body
LE: loop exit
PB: predicated region body
PF: predicated region fallthrough
CT: control target
= control target key end

     0   :  { %v260_v20 = vlaneseq  ;;  %s540_s1 = inlined_call_operand.vmem [shape: bf16[256,128], index: 1, kind: input, shape index: {}]   ;;  %s541_s0 = inlined_call_operand.vmem [shape: bf16[32,256], index: 0, kind: input, shape index: {}]   ;;  %s542_s2 = inlined_call_operand.vmem [shape: f32[1,128], index: 2, kind: input, shape index: {}]   ;;  %s543_s3 = inlined_call_operand.vmem [shape: f32[1,128], index: 3, kind: input, shape index: {}]   ;;  %s544_s4 = inlined_call_operand.vmem [shape: f32[1,128], index: 4, kind: input, shape index: {}]   ;;  %s545_s5 = inlined_call_operand.vmem [shape: f32[32,128], index: 5, kind: output, shape index: {}]  }
   0x1   :  { %v405_v0 = vld [vmem:[%s540_s1 + $0x78] sm:$0xff]   ;;  %v407_v2 = vld [vmem:[%s540_s1 + $0x70] sm:$0xff]   ;;  %v409_v4 = vld [vmem:[%s540_s1 + $0x68] sm:$0xff]  }
   0x2   :  { %v406_v1 = vld [vmem:[%s540_s1 + $0x38] sm:$0xff]   ;;  %360 = vmatprep.subr.bf16.mxu0 %v405_v0  ;;  %388 = vmatprep.subr.bf16.mxu1 %v405_v0  ;;  %v408_v3 = vld [vmem:[%s540_s1 + $0x30] sm:$0xff]   ;;  %v410_v5 = vld [vmem:[%s540_s1 + $0x28] sm:$0xff]   ;;  %v261_v23 = vshrl.u32 %v260_v20, 7 }
   0x3   :  { %361 = vmatpush3.bf16.msra.mxu0 %v406_v1  ;;  %396 = vmatpush3.bf16.msra.mxu1 %v406_v1  ;;  %v411_v6 = vld [vmem:[%s540_s1 + $0x60] sm:$0xff]   ;;  %v413_v8 = vld [vmem:[%s540_s1 + $0x58] sm:$0xff]   ;;  %v415_v10 = vld [vmem:[%s540_s1 + $0x50] sm:$0xff]  }
   0x4   :  { %362 = vmatprep.subr.bf16.mxu0 %v407_v2  ;;  %389 = vmatprep.subr.bf16.mxu1 %v407_v2  ;;  %v412_v7 = vld [vmem:[%s540_s1 + $0x20] sm:$0xff]   ;;  %v414_v9 = vld [vmem:[%s540_s1 + $0x18] sm:$0xff]   ;;  %v416_v13 = vld [vmem:[%s540_s1 + $0x10] sm:$0xff]   ;;  %v263_v29 = vadd.s32 16, %v261_v23  ;;  %v310_v2 = vsub.s32 0, %v261_v23 }
   0x5   :  { %v423_v11 = vld [vmem:[%s541_s0 + $0x4] ss:$8 sps:$4 sm:$0xff]   ;;  %v426_v12 = vld [vmem:[%s541_s0 + $0x14] ss:$8 sps:$4 sm:$0xff]   ;;  %v421_v18 = vld [vmem:[%s541_s0] ss:$8 sps:$4 sm:$0xff]  }
   0x6   :  { %v417_v14 = vld [vmem:[%s540_s1 + $0x48] sm:$0xff]   ;;  %217 = vmatprep.mubr.bf16.mxu0 %v423_v11  ;;  %225 = vmatprep.mubr.bf16.mxu1 %v426_v12  ;;  %v419_v16 = vld [vmem:[%s540_s1 + $0x40] sm:$0xff]   ;;  %v424_v19 = vld [vmem:[%s541_s0 + $0x10] ss:$8 sps:$4 sm:$0xff]   ;;  %vm267_vm0 = vcmp.lt.s32.totalorder %v263_v29, 18 }
   0x7   :  { %363 = vmatpush3.bf16.msra.mxu0 %v408_v3  ;;  %397 = vmatpush3.bf16.msra.mxu1 %v408_v3  ;;  %v418_v15 = vld [vmem:[%s540_s1 + $0x8] sm:$0xff]   ;;  %v420_v17 = vld [vmem:[%s540_s1] sm:$0xff]  }
   0x8   :  { %364 = vmatprep.subr.bf16.mxu0 %v409_v4  ;;  %390 = vmatprep.subr.bf16.mxu1 %v409_v4  ;;  %v359_v31 = vld [vmem:[%s542_s2] ss:$0 sm:$0xff] }
   0x9   :  { %v300_v1 = vld [vmem:[%s543_s3] sm:$0x1] }
   0xb   :  { %365 = vmatpush3.bf16.msra.mxu0 %v410_v5  ;;  %398 = vmatpush3.bf16.msra.mxu1 %v410_v5  ;;  %v304_v5 = vld [vmem:[%s544_s4] sm:$0x1] }
   0xc   :  { %366 = vmatprep.subr.bf16.mxu0 %v411_v6  ;;  %391 = vmatprep.subr.bf16.mxu1 %v411_v6 }
   0xf   :  { %367 = vmatpush3.bf16.msra.mxu0 %v412_v7  ;;  %399 = vmatpush3.bf16.msra.mxu1 %v412_v7 }
  0x10   :  { %368 = vmatprep.subr.bf16.mxu0 %v413_v8  ;;  %392 = vmatprep.subr.bf16.mxu1 %v413_v8 }
  0x13   :  { %369 = vmatpush3.bf16.msra.mxu0 %v414_v9  ;;  %400 = vmatpush3.bf16.msra.mxu1 %v414_v9 }
  0x14   :  { %370 = vmatprep.subr.bf16.mxu0 %v415_v10  ;;  %393 = vmatprep.subr.bf16.mxu1 %v415_v10 }
  0x17   :  { %371 = vmatpush3.bf16.msra.mxu0 %v416_v13  ;;  %401 = vmatpush3.bf16.msra.mxu1 %v416_v13 }
  0x18   :  { %372 = vmatprep.subr.bf16.mxu0 %v417_v14  ;;  %394 = vmatprep.subr.bf16.mxu1 %v417_v14 }
  0x1b   :  { %373 = vmatpush3.bf16.msra.mxu0 %v418_v15  ;;  %402 = vmatpush3.bf16.msra.mxu1 %v418_v15 }
  0x1c   :  { %374 = vmatprep.subr.bf16.mxu0 %v419_v16  ;;  %395 = vmatprep.subr.bf16.mxu1 %v419_v16 }
  0x1f   :  { %375 = vmatpush3.bf16.msra.mxu0 %v420_v17  ;;  %403 = vmatpush3.bf16.msra.mxu1 %v420_v17 }
  0x22   :  { %218 = vmatmul.mubr.bf16.vlgmr.msra.gmra.mxu0 %v421_v18  ;;  %226 = vmatmul.mubr.bf16.vlgmr.msra.gmra.mxu1 %v424_v19 }
  0xe2   :  { %v376_v21 = vpop.f32.mrf.mxu0  ;;  %v382_v22 = vpop.f32.mrf.mxu1 }
  0xe4   :  { %v377_v24 = vpop.f32.mrf.mxu0  ;;  %v383_v25 = vpop.f32.mrf.mxu1 }
  0xe5   :  { %v378_v26 = vadd.f32 %v377_v24, %v376_v21  ;;  %v384_v27 = vadd.f32 %v383_v25, %v382_v22 }
  0xe6   :  { %v379_v28 = vpop.f32.mrf.mxu0  ;;  %v385_v62 = vpop.f32.mrf.mxu1 }
  0xe7   :  { %v258_v33 = vadd.f32 %v384_v27, %v359_v31  ;;  %v256_v34 = vadd.f32 %v378_v26, %v359_v31 }
  0xe8   :  { %v380_v30 = vpop.f32.mrf.mxu0  ;;  %v386_v63 = vpop.f32.mrf.mxu1 }
  0xe9   :  { %v381_v32 = vadd.f32 %v380_v30, %v379_v28  ;;  %v271_v36 = vsel %vm267_vm0, %v258_v33, 0.0  ;;  %v282_v38 = vmul.f32 %v256_v34, %v256_v34  ;;  %v387_v0 = vadd.f32 %v386_v63, %v385_v62 }
  0xea   :  { %v284_v41 = vmul.f32 %v271_v36, %v271_v36 }
  0xeb   :  { %v257_v35 = vadd.f32 %v381_v32, %v359_v31  ;;  %v259_v9 = vadd.f32 %v387_v0, %v359_v31 }
  0xed   :  { %v273_v37 = vadd.f32 %v257_v35, %v256_v34  ;;  %v283_v39 = vmul.f32 %v257_v35, %v257_v35 }
  0xef   :  { %v274_v40 = vadd.f32 %v273_v37, %v271_v36  ;;  %v286_v42 = vadd.f32 %v283_v39, %v282_v38 }
  0xf1   :  { %v276_v43 = vrot.slane %v274_v40, 4  ;;  %v287_v44 = vadd.f32 %v286_v42, %v284_v41 }
  0xf3   :  { %v277_v45 = vadd.f32 %v276_v43, %v274_v40  ;;  %v289_v46 = vrot.slane %v287_v44, 4 }
  0xf5   :  { %v278_v47 = vrot.slane %v277_v45, 2  ;;  %v290_v48 = vadd.f32 %v289_v46, %v287_v44 }
  0xf7   :  { %v279_v49 = vadd.f32 %v278_v47, %v277_v45  ;;  %v291_v50 = vrot.slane %v290_v48, 2 }
  0xf9   :  { %v280_v51 = vrot.slane %v279_v49, 1  ;;  %v292_v52 = vadd.f32 %v291_v50, %v290_v48 }
  0xfb   :  { %v281_v53 = vadd.f32 %v280_v51, %v279_v49  ;;  %v293_v54 = vrot.slane %v292_v52, 1 }
  0xfd   :  { %v294_v55 = vadd.f32 %v293_v54, %v292_v52  ;;  %v295_v56 = vmul.f32 0.055555556, %v281_v53 }
  0xff   :  { %v296_v57 = vmul.f32 0.055555556, %v294_v55  ;;  %v297_v58 = vmul.f32 %v295_v56, %v295_v56 }
 0x101   :  { %v298_v59 = vsub.f32 %v296_v57, %v297_v58 }
 0x103   :  { %v299_v60 = vmax.f32 %v298_v59, 0.0 }
 0x105   :  { %v301_v61 = vadd.f32 1e-05, %v299_v60 }
 0x107   :  { %427 = vrsqrt.f32 %v301_v61 }
 0x114   :  { %v428_v3 = vpop.eup %427 }
 0x115   :  { %v303_v4 = vmul.f32 %v428_v3, %v300_v1 }
 0x117   :  { %v305_v6 = vmul.f32 %v303_v4, %v295_v56  ;;  %v311_v7 = vrot.slane %v303_v4, %v310_v2 }
 0x119   :  { %v306_v8 = vsub.f32 %v304_v5, %v305_v6  ;;  %v313_v10 = vmul.f32 %v311_v7, %v256_v34  ;;  %v314_v11 = vmul.f32 %v311_v7, %v257_v35  ;;  %v315_v12 = vmul.f32 %v311_v7, %v258_v33 }
 0x11a   :  { %v316_v14 = vmul.f32 %v311_v7, %v259_v9 }
 0x11b   :  { %v321_v13 = vrot.slane %v306_v8, %v310_v2 }
 0x11d   :  { %v323_v15 = vadd.f32 %v321_v13, %v313_v10  ;;  %v324_v16 = vadd.f32 %v321_v13, %v314_v11  ;;  %v325_v17 = vadd.f32 %v321_v13, %v315_v12  ;;  %v326_v18 = vadd.f32 %v321_v13, %v316_v14 }
 0x11f   :  { %v327_v19 = vmax.f32 %v323_v15, 0.0  ;;  %v328_v20 = vmax.f32 %v324_v16, 0.0  ;;  %v329_v21 = vmax.f32 %v325_v17, 0.0  ;;  %v330_v22 = vmax.f32 %v326_v18, 0.0 }
 0x121   :  { %331 = vst [vmem:[%s545_s5] sm:$0xff] %v327_v19  ;;  %332 = vst [vmem:[%s545_s5 + $0x8] sm:$0xff] %v328_v20 }
 0x122   :  { %333 = vst [vmem:[%s545_s5 + $0x10] sm:$0xff] %v329_v21  ;;  %334 = vst [vmem:[%s545_s5 + $0x18] sm:$0xff] %v330_v22 }

// kernel: _lambda_.13
= control target key start
LH: loop header
LB: loop body
LE: loop exit
PB: predicated region body
PF: predicated region fallthrough
CT: control target
= control target key end

     0   :  { %s1130_s18 = smov 0   ;;  %s1132_s19 = smov 0   ;;  %s1341_s0 = inlined_call_operand.vmem [shape: bf16[16,1152], index: 0, kind: input, shape index: {}]   ;;  %s1342_s1 = inlined_call_operand.vmem [shape: bf16[1152,256], index: 1, kind: input, shape index: {}]   ;;  %s1343_s2 = inlined_call_operand.vmem [shape: f32[1,256], index: 2, kind: input, shape index: {}]   ;;  %s1344_s3 = inlined_call_operand.vmem [shape: f32[1,256], index: 3, kind: input, shape index: {}]   ;;  %s1345_s4 = inlined_call_operand.vmem [shape: f32[1,256], index: 4, kind: input, shape index: {}]   ;;  %s1346_s5 = inlined_call_operand.vmem [shape: f32[16,256], index: 5, kind: output, shape index: {}]  }
   0x1   :  { %s1134_s20 = smov 0  }
   0x2 LB: > { %s1146_s21 = sadd.s32 4294967295, %s1095_s20   ;;  %s1149_s22 = sadd.s32 1, %s1095_s20   ;;  %s1095_s20 = sphi %s1134_s20, %s1349_s20   ;;  %s1091_s19 = sphi %s1132_s19, %s1348_s19   ;;  %s1087_s18 = sphi %s1130_s18, %s1347_s18  }
   0x3   : > { %s19_s23 = ssub.s32 %s1095_s20, %s1149_s22  ;;  %s22_s24 = sadd.s32 1, %s1091_s19 }
   0x4   : > { %p20_p0 = scmp.eq.s32.totalorder %s19_s23, 0  ;;  %p29_p1 = scmp.ne.s32.totalorder %s1091_s19, %s1087_s18 }
   0x5   : > { %p30_p2 = scmp.eq.s32.totalorder %s1095_s20, 0  ;;  %p898_p4 = scmp.ge.s32.totalorder %s1095_s20, 3 }
   0x6   : > { %s1158_s25 = scalar_select %p20_p0, %s1091_s19, %s22_s24  }
   0x7   : > { %p31_p3 = por %p30_p2, %p29_p1  ;;  %174 = sbr.rel (%p898_p4) target bundleno = 19 (0x13), region = 28 }
   0xc   : > { %177 = sbr.rel (!%p31_p3) target bundleno = 19 (0x13), region = 32  ;;  %s179_s26 = sand.u32 (%p31_p3), 1, %s1091_s19  }
   0xd   : > { %s962_s27 = smul.u32 (%p31_p3), 12, %s1095_s20 }
   0xe   : > { %s964_s28 = smul.u32 (%p31_p3), 24, %s179_s26 }
   0xf   : > { %s184_s6 = scalar_lea.vmem (%p31_p3), %s1341_s0, %s962_s27 }
  0x10   : > { %v199_v0 = vld [vmem:[%s184_s6] sm:$0xff] (%p31_p3)  ;;  %v900_v2 = vld [vmem:[%s184_s6 + $0x8] sm:$0xf] (%p31_p3)  ;;  %s181_s7 = scalar_lea.vmem (%p31_p3), [#allocation2], %s964_s28  ;;  %v902_v3 = vld [vmem:[%s184_s6 + $0x2c] sm:$0xf] (%p31_p3) }
  0x11   : > { %v201_v1 = vld [vmem:[%s184_s6 + $0x24] sm:$0xff]  ;;  %200 = vst [vmem:[%s181_s7] sm:$0xff] %v199_v0  ;;  %901 = vst [vmem:[%s181_s7 + $0x8] sm:$0xf] %v900_v2 }
  0x12   : > { %202 = vst [vmem:[%s181_s7 + $0xc] sm:$0xff] %v201_v1  ;;  %903 = vst [vmem:[%s181_s7 + $0x14] sm:$0xf] %v902_v3 }
  0x13 PF: > { %p904_p5 = scmp.ge.s32.totalorder %s1095_s20, 1  ;;  %p229_p6 = scmp.lt.s32.totalorder %s1095_s20, 4 }
  0x15   : > { %p230_p7 = pnand %p904_p5, %p229_p6 }
  0x16   : > { %s236_s8 = sand.u32 (!%p230_p7), 1, %s1087_s18   ;;  %s265_s9 = smul.u32 (!%p230_p7), 48, %s1146_s21 }
  0x17   : > { %233 = sbr.rel (%p230_p7) target bundleno = 380 (0x17c), region = 62  ;;  %p907_p9 = scmp.ne.s32.totalorder (!%p230_p7), %s1146_s21, 0 }
  0x18   : > { %s965_s10 = smul.u32 (!%p230_p7), 24, %s236_s8  ;;  %p266_p8 = scmp.lt.s32.totalorder (!%p230_p7), %s265_s9, 143 }
  0x1a   : > { %s1175_s15 = scalar_lea.vmem (!%p230_p7), [#allocation2], %s965_s10 }
  0x1c   : > { %s1351_s9 = smov (!%p266_p8, %s265_s9), 143  ;;  %276 = sbr.rel (%p907_p9) target bundleno = 36 (0x24), region = 70 }
  0x1d   : > { %s963_s11 = sshll.u32 %s1351_s9, 3 }
  0x1e   : > { %s1173_s14 = scalar_lea.vmem %s1342_s1, %s963_s11 }
  0x21   : > { %v1097_v4 = vmov 0.0  }
  0x22   : > { %277 = vst [vmem:[%s1346_s5] sm:$0xff] %v1097_v4  ;;  %278 = vst [vmem:[%s1346_s5 + $0x8] sm:$0xff] %v1097_v4 }
  0x23   : > { %279 = vst [vmem:[%s1346_s5 + $0x10] sm:$0xff] %v1097_v4  ;;  %280 = vst [vmem:[%s1346_s5 + $0x18] sm:$0xff] %v1097_v4 }
  0x24 PF: > { %v993_v5 = vld [vmem:[%s1173_s14 + $0x74] ss:$8 sps:$4 sm:$0xff]   ;;  %v995_v6 = vld [vmem:[%s1173_s14 + $0x70] ss:$8 sps:$4 sm:$0xff]   ;;  %v1098_v7 = vmov 0   ;;  %p959_p10 = scmp.ne.s32.totalorder %s1146_s21, 2 }
  0x25   : > { %668 = vmatprep.mubr.bf16.mxu1 %v1098_v7  ;;  %593 = vmatprep.subr.bf16.mxu0 %v993_v5  ;;  %v996_v8 = vld [vmem:[%s1173_s14 + $0x64] ss:$8 sps:$4 sm:$0xff]   ;;  %v998_v9 = vld [vmem:[%s1173_s14 + $0x60] ss:$8 sps:$4 sm:$0xff]   ;;  %v999_v10 = vld [vmem:[%s1173_s14 + $0x54] ss:$8 sps:$4 sm:$0xff]  }
  0x26   : > { %594 = vmatpush1.bf16.msra.mxu0 %v995_v6  ;;  %v1001_v11 = vld [vmem:[%s1173_s14 + $0x50] ss:$8 sps:$4 sm:$0xff]   ;;  %v1002_v12 = vld [vmem:[%s1173_s14 + $0x44] ss:$8 sps:$4 sm:$0xff]   ;;  %v1014_v13 = vld [vmem:[%s1173_s14 + $0x174] ss:$8 sps:$4 sm:$0xff]  }
  0x27   : > { %595 = vmatprep.subr.bf16.mxu0 %v996_v8  ;;  %v1016_v14 = vld [vmem:[%s1173_s14 + $0x170] ss:$8 sps:$4 sm:$0xff]   ;;  %v1004_v15 = vld [vmem:[%s1173_s14 + $0x40] ss:$8 sps:$4 sm:$0xff]   ;;  %v1005_v16 = vld [vmem:[%s1173_s14 + $0x34] ss:$8 sps:$4 sm:$0xff]   ;;  %636 = vmatprep.subr.bf16.mxu1 %v1014_v13 }
  0x28   : > { %v1020_v17 = vld [vmem:[%s1173_s14 + $0x164] ss:$8 sps:$4 sm:$0xff]   ;;  %637 = vmatpush1.bf16.msra.mxu1 %v1016_v14  ;;  %v1022_v18 = vld [vmem:[%s1173_s14 + $0x160] ss:$8 sps:$4 sm:$0xff]   ;;  %v1007_v19 = vld [vmem:[%s1173_s14 + $0x30] ss:$8 sps:$4 sm:$0xff]  }
  0x29   : > { %638 = vmatprep.subr.bf16.mxu1 %v1020_v17  ;;  %v1026_v20 = vld [vmem:[%s1173_s14 + $0x154] ss:$8 sps:$4 sm:$0xff]   ;;  %v1008_v21 = vld [vmem:[%s1173_s14 + $0x24] ss:$8 sps:$4 sm:$0xff]   ;;  %v1028_v22 = vld [vmem:[%s1173_s14 + $0x150] ss:$8 sps:$4 sm:$0xff]  }
  0x2a   : > { %596 = vmatpush1.bf16.msra.mxu0 %v998_v9  ;;  %v1032_v23 = vld [vmem:[%s1173_s14 + $0x144] ss:$8 sps:$4 sm:$0xff]   ;;  %v1010_v24 = vld [vmem:[%s1173_s14 + $0x20] ss:$8 sps:$4 sm:$0xff]   ;;  %v1011_v25 = vld [vmem:[%s1173_s14 + $0x14] ss:$8 sps:$4 sm:$0xff]  }
  0x2b   : > { %597 = vmatprep.subr.bf16.mxu0 %v999_v10  ;;  %v1034_v26 = vld [vmem:[%s1173_s14 + $0x140] ss:$8 sps:$4 sm:$0xff]   ;;  %v1038_v27 = vld [vmem:[%s1173_s14 + $0x134] ss:$8 sps:$4 sm:$0xff]   ;;  %v1013_v28 = vld [vmem:[%s1173_s14 + $0x10] ss:$8 sps:$4 sm:$0xff]  }
  0x2c   : > { %639 = vmatpush1.bf16.msra.mxu1 %v1022_v18  ;;  %v1017_v29 = vld [vmem:[%s1173_s14 + $0x4] ss:$8 sps:$4 sm:$0xff]   ;;  %v1040_v30 = vld [vmem:[%s1173_s14 + $0x130] ss:$8 sps:$4 sm:$0xff]   ;;  %v1019_v32 = vld [vmem:[%s1173_s14] ss:$8 sps:$4 sm:$0xff]  }
  0x2d   : > { %640 = vmatprep.subr.bf16.mxu1 %v1026_v20  ;;  %v1044_v31 = vld [vmem:[%s1173_s14 + $0x124] ss:$8 sps:$4 sm:$0xff]   ;;  %v1023_v33 = vld [vmem:[%s1173_s14 + $0xf4] ss:$8 sps:$4 sm:$0xff]   ;;  %v1046_v34 = vld [vmem:[%s1173_s14 + $0x120] ss:$8 sps:$4 sm:$0xff]  }
  0x2e   : > { %598 = vmatpush1.bf16.msra.mxu0 %v1001_v11  ;;  %v1050_v35 = vld [vmem:[%s1173_s14 + $0x114] ss:$8 sps:$4 sm:$0xff]   ;;  %v1025_v36 = vld [vmem:[%s1173_s14 + $0xf0] ss:$8 sps:$4 sm:$0xff]   ;;  %v1029_v37 = vld [vmem:[%s1173_s14 + $0xe4] ss:$8 sps:$4 sm:$0xff]  }
  0x2f   : > { %599 = vmatprep.subr.bf16.mxu0 %v1002_v12  ;;  %v1052_v38 = vld [vmem:[%s1173_s14 + $0x110] ss:$8 sps:$4 sm:$0xff]   ;;  %v1056_v39 = vld [vmem:[%s1173_s14 + $0x104] ss:$8 sps:$4 sm:$0xff]   ;;  %v1031_v41 = vld [vmem:[%s1173_s14 + $0xe0] ss:$8 sps:$4 sm:$0xff]  }
  0x30   : > { %641 = vmatpush1.bf16.msra.mxu1 %v1028_v22  ;;  %v1068_v40 = vld [vmem:[%s1175_s15 + $0x4] ss:$12 sps:$4 sm:$0xff]   ;;  %v1062_v46 = vld [vmem:[%s1175_s15 + $0x8] ss:$12 sps:$4 sm:$0xff]   ;;  %v1066_v56 = vld [vmem:[%s1175_s15] ss:$12 sps:$4 sm:$0xff]  }
  0x31   : > { %642 = vmatprep.subr.bf16.mxu1 %v1032_v23  ;;  %v1035_v42 = vld [vmem:[%s1173_s14 + $0xd4] ss:$8 sps:$4 sm:$0xff]   ;;  %625 = vmatprep.mubr.bf16.mxu0 %v1068_v40  ;;  %v1058_v43 = vld [vmem:[%s1173_s14 + $0x100] ss:$8 sps:$4 sm:$0xff]   ;;  %v1037_v44 = vld [vmem:[%s1173_s14 + $0xd0] ss:$8 sps:$4 sm:$0xff]  }
  0x32   : > { %600 = vmatpush1.bf16.msra.mxu0 %v1004_v15  ;;  %v1041_v45 = vld [vmem:[%s1173_s14 + $0xc4] ss:$8 sps:$4 sm:$0xff]   ;;  %v1043_v47 = vld [vmem:[%s1173_s14 + $0xc0] ss:$8 sps:$4 sm:$0xff]   ;;  %v1047_v48 = vld [vmem:[%s1173_s14 + $0xb4] ss:$8 sps:$4 sm:$0xff]  }
  0x33   : > { %601 = vmatprep.subr.bf16.mxu0 %v1005_v16  ;;  %v1049_v49 = vld [vmem:[%s1173_s14 + $0xb0] ss:$8 sps:$4 sm:$0xff]   ;;  %v1053_v50 = vld [vmem:[%s1173_s14 + $0xa4] ss:$8 sps:$4 sm:$0xff]   ;;  %v1055_v51 = vld [vmem:[%s1173_s14 + $0xa0] ss:$8 sps:$4 sm:$0xff]  }
  0x34   : > { %643 = vmatpush1.bf16.msra.mxu1 %v1034_v26  ;;  %v1059_v52 = vld [vmem:[%s1173_s14 + $0x94] ss:$8 sps:$4 sm:$0xff]   ;;  %v1061_v53 = vld [vmem:[%s1173_s14 + $0x90] ss:$8 sps:$4 sm:$0xff]   ;;  %v1063_v54 = vld [vmem:[%s1173_s14 + $0x84] ss:$8 sps:$4 sm:$0xff]  }
  0x35   : > { %644 = vmatprep.subr.bf16.mxu1 %v1038_v27  ;;  %v1065_v55 = vld [vmem:[%s1173_s14 + $0x80] ss:$8 sps:$4 sm:$0xff]   ;;  %v283_v3 = vld [vmem:[%s1346_s5 + $0x10] sm:$0xff]  ;;  %v284_v8 = vld [vmem:[%s1346_s5 + $0x18] sm:$0xff] }
  0x36   : > { %602 = vmatpush1.bf16.msra.mxu0 %v1007_v19  ;;  %v281_v59 = vld [vmem:[%s1346_s5] sm:$0xff]  ;;  %v282_v63 = vld [vmem:[%s1346_s5 + $0x8] sm:$0xff] }
  0x37   : > { %603 = vmatprep.subr.bf16.mxu0 %v1008_v21 }
  0x38   : > { %645 = vmatpush1.bf16.msra.mxu1 %v1040_v30 }
  0x39   : > { %646 = vmatprep.subr.bf16.mxu1 %v1044_v31 }
  0x3a   : > { %604 = vmatpush1.bf16.msra.mxu0 %v1010_v24 }
  0x3b   : > { %605 = vmatprep.subr.bf16.mxu0 %v1011_v25 }
  0x3c   : > { %647 = vmatpush1.bf16.msra.mxu1 %v1046_v34 }
  0x3d   : > { %648 = vmatprep.subr.bf16.mxu1 %v1050_v35 }
  0x3e   : > { %606 = vmatpush1.bf16.msra.mxu0 %v1013_v28 }
  0x3f   : > { %607 = vmatprep.subr.bf16.mxu0 %v1017_v29 }
  0x40   : > { %649 = vmatpush1.bf16.msra.mxu1 %v1052_v38 }
  0x41   : > { %650 = vmatprep.subr.bf16.mxu1 %v1056_v39 }
  0x42   : > { %608 = vmatpush1.bf16.msra.mxu0 %v1019_v32 }
  0x43   : > { %609 = vmatprep.subr.bf16.mxu0 %v1023_v33 }
  0x44   : > { %651 = vmatpush1.bf16.msra.mxu1 %v1058_v43 }
  0x46   : > { %610 = vmatpush2.bf16.msra.mxu0 %v1025_v36 }
  0x47   : > { %611 = vmatprep.subr.bf16.mxu0 %v1029_v37  ;;  %669 = vmatmul.mubr.bf16.vlgmr.msra.gmra.mxu1 %v1062_v46 }
  0x4a   : > { %612 = vmatpush2.bf16.msra.mxu0 %v1031_v41 }
  0x4b   : > { %613 = vmatprep.subr.bf16.mxu0 %v1035_v42 }
  0x4e   : > { %614 = vmatpush2.bf16.msra.mxu0 %v1037_v44 }
  0x4f   : > { %615 = vmatprep.subr.bf16.mxu0 %v1041_v45 }
  0x52   : > { %616 = vmatpush2.bf16.msra.mxu0 %v1043_v47 }
  0x53   : > { %617 = vmatprep.subr.bf16.mxu0 %v1047_v48 }
  0x56   : > { %618 = vmatpush2.bf16.msra.mxu0 %v1049_v49 }
  0x57   : > { %619 = vmatprep.subr.bf16.mxu0 %v1053_v50 }
  0x5a   : > { %620 = vmatpush2.bf16.msra.mxu0 %v1055_v51 }
  0x5b   : > { %621 = vmatprep.subr.bf16.mxu0 %v1059_v52 }
  0x5e   : > { %622 = vmatpush2.bf16.msra.mxu0 %v1061_v53 }
  0x5f   : > { %623 = vmatprep.subr.bf16.mxu0 %v1063_v54 }
  0x62   : > { %624 = vmatpush2.bf16.msra.mxu0 %v1065_v55 }
  0x65   : > { %626 = vmatmul.mubr.bf16.vlgmr.msra.gmra.mxu0 %v1066_v56 }
 0x107   : > { %v670_v57 = vpop.f32.mrf.mxu1 }
 0x109   : > { %v672_v58 = vpop.f32.mrf.mxu1 }
 0x10b   : > { %v674_v62 = vpop.f32.mrf.mxu1 }
 0x10d   : > { %v676_v7 = vpop.f32.mrf.mxu1 }
 0x125   : > { %v627_v60 = vpop.f32.mrf.mxu0 }
 0x126   : > { %v671_v61 = vadd.f32 %v670_v57, %v627_v60 }
 0x127   : > { %v629_v0 = vpop.f32.mrf.mxu0 }
 0x128   : > { %v679_v1 = vadd.f32 %v671_v61, %v281_v59  ;;  %v673_v2 = vadd.f32 %v672_v58, %v629_v0 }
 0x129   : > { %v631_v4 = vpop.f32.mrf.mxu0 }
 0x12a   : > { %683 = vst [vmem:[%s1346_s5] sm:$0xff] %v679_v1  ;;  %v680_v5 = vadd.f32 %v673_v2, %v282_v63  ;;  %v675_v6 = vadd.f32 %v674_v62, %v631_v4 }
 0x12b   : > { %v633_v9 = vpop.f32.mrf.mxu0 }
 0x12c   : > { %684 = vst [vmem:[%s1346_s5 + $0x8] sm:$0xff] %v680_v5  ;;  %v681_v10 = vadd.f32 %v675_v6, %v283_v3  ;;  %v677_v11 = vadd.f32 %v676_v7, %v633_v9  ;;  %690 = sbr.rel (%p959_p10) target bundleno = 380 (0x17c), region = 74 }
 0x12e   : > { %685 = vst [vmem:[%s1346_s5 + $0x10] sm:$0xff] %v681_v10  ;;  %v682_v12 = vadd.f32 %v677_v11, %v284_v8 }
 0x130   : > { %686 = vst [vmem:[%s1346_s5 + $0x18] sm:$0xff] %v682_v12 }
 0x131   : > { %v697_v13 = vlaneseq  ;;  %v695_v15 = vld [vmem:[%s1343_s2] sm:$0x3]  ;;  %v1099_v62 = vmov 1966171168  }
 0x132   : > { %v691_v18 = vld [vmem:[%s1346_s5] sm:$0xff]  ;;  %v771_v63 = vunpack.c.l.s4 %v1099_v62 }
 0x133   : > { %v698_v14 = vshrl.u32 %v697_v13, 7  ;;  %v692_v19 = vld [vmem:[%s1346_s5 + $0x8] sm:$0xff]  ;;  %v762_v6 = vld [vmem:[%s1344_s3] sm:$0x3] }
 0x134   : > { %v772_v0 = vunpack.c.0.s8 %v771_v63 }
 0x135   : > { %v1269_v16 = vsub.s32 0, %v698_v14  ;;  %v1271_v17 = vsub.s32 1, %v698_v14  ;;  %v693_v13 = vld [vmem:[%s1346_s5 + $0x10] sm:$0xff] }
 0x136   : > { %v775_v2 = vsub.s32 %v772_v0, %v698_v14 }
 0x137   : > { %v1280_v20 = vrot.slane %v695_v15, %v1269_v16  ;;  %v1283_v21 = vrot.slane %v695_v15, %v1271_v17  ;;  %v694_v14 = vld [vmem:[%s1346_s5 + $0x18] sm:$0xff] }
 0x139   : > { %v1286_v22 = vadd.f32 %v1280_v20, %v691_v18  ;;  %v1289_v23 = vadd.f32 %v1283_v21, %v692_v19  ;;  %v709_v19 = vadd.f32 %v1280_v20, %v693_v13 }
 0x13b   : > { %v721_v24 = vrot.slane %v1286_v22, 4  ;;  %v728_v25 = vrot.slane %v1289_v23, 4  ;;  %v734_v26 = vmul.f32 %v1286_v22, %v1286_v22  ;;  %v735_v27 = vmul.f32 %v1289_v23, %v1289_v23 }
 0x13d   : > { %v722_v28 = vadd.f32 %v721_v24, %v1286_v22  ;;  %v729_v29 = vadd.f32 %v728_v25, %v1289_v23  ;;  %v739_v30 = vrot.slane %v734_v26, 4  ;;  %v746_v31 = vrot.slane %v735_v27, 4  ;;  %v786_v25 = vld [vmem:[%s1345_s4] sm:$0x3] }
 0x13e   : > { %v710_v24 = vadd.f32 %v1283_v21, %v694_v14 }
 0x13f   : > { %v723_v32 = vrot.slane %v722_v28, 2  ;;  %v730_v33 = vrot.slane %v729_v29, 2  ;;  %v740_v34 = vadd.f32 %v739_v30, %v734_v26  ;;  %v747_v35 = vadd.f32 %v746_v31, %v735_v27 }
 0x141   : > { %v724_v36 = vadd.f32 %v723_v32, %v722_v28  ;;  %v731_v37 = vadd.f32 %v730_v33, %v729_v29  ;;  %v741_v38 = vrot.slane %v740_v34, 2  ;;  %v748_v39 = vrot.slane %v747_v35, 2 }
 0x143   : > { %v725_v40 = vrot.slane %v724_v36, 1  ;;  %v732_v41 = vrot.slane %v731_v37, 1  ;;  %v742_v42 = vadd.f32 %v741_v38, %v740_v34  ;;  %v749_v43 = vadd.f32 %v748_v39, %v747_v35 }
 0x145   : > { %v726_v44 = vadd.f32 %v725_v40, %v724_v36  ;;  %v733_v45 = vadd.f32 %v732_v41, %v731_v37  ;;  %v743_v46 = vrot.slane %v742_v42, 1  ;;  %v750_v47 = vrot.slane %v749_v43, 1 }
 0x147   : > { %v744_v48 = vadd.f32 %v743_v46, %v742_v42  ;;  %v751_v49 = vadd.f32 %v750_v47, %v749_v43  ;;  %v752_v50 = vmul.f32 0.125, %v726_v44  ;;  %v753_v51 = vmul.f32 0.125, %v733_v45 }
 0x149   : > { %v754_v52 = vmul.f32 0.125, %v744_v48  ;;  %v755_v53 = vmul.f32 0.125, %v751_v49  ;;  %v756_v54 = vmul.f32 %v752_v50, %v752_v50  ;;  %v757_v55 = vmul.f32 %v753_v51, %v753_v51 }
 0x14b   : > { %v758_v56 = vsub.f32 %v754_v52, %v756_v54  ;;  %v759_v57 = vsub.f32 %v755_v53, %v757_v55 }
 0x14d   : > { %v760_v58 = vmax.f32 %v758_v56, 0.0  ;;  %v761_v59 = vmax.f32 %v759_v57, 0.0 }
 0x14f   : > { %v763_v60 = vadd.f32 1e-05, %v760_v58  ;;  %v764_v61 = vadd.f32 1e-05, %v761_v59 }
 0x151   : > { %1069 = vrsqrt.f32 %v763_v60 }
 0x152   : > { %1071 = vrsqrt.f32 %v764_v61 }
 0x15e   : > { %v1070_v1 = vpop.eup %1069 }
 0x15f   : > { %v1072_v3 = vpop.eup %1071 }
 0x160   : > { %v769_v4 = vcombine.low %v1070_v1, %v1072_v3 }
 0x162   : > { %v776_v5 = vrot.slane %v769_v4, %v775_v2 }
 0x164   : > { %v783_v7 = vrot.slane %v776_v5, %v775_v2 }
 0x166   : > { %v785_v8 = vmul.f32 %v783_v7, %v762_v6 }
 0x168   : > { %v791_v9 = vrot.slane %v785_v8, %v1269_v16  ;;  %v795_v10 = vrot.slane %v785_v8, %v1271_v17 }
 0x16a   : > { %v798_v11 = vmul.f32 %v791_v9, %v752_v50  ;;  %v799_v12 = vmul.f32 %v795_v10, %v753_v51  ;;  %v819_v27 = vmul.f32 %v791_v9, %v1286_v22  ;;  %v820_v29 = vmul.f32 %v795_v10, %v1289_v23 }
 0x16b   : > { %v821_v30 = vmul.f32 %v791_v9, %v709_v19  ;;  %v822_v31 = vmul.f32 %v795_v10, %v710_v24 }
 0x16c   : > { %v802_v15 = vcombine.low %v798_v11, %v799_v12 }
 0x16e   : > { %v809_v18 = vrot.slane %v802_v15, %v775_v2 }
 0x170   : > { %v816_v26 = vrot.slane %v809_v18, %v775_v2 }
 0x172   : > { %v818_v28 = vsub.f32 %v786_v25, %v816_v26 }
 0x174   : > { %v827_v32 = vrot.slane %v818_v28, %v1269_v16  ;;  %v831_v33 = vrot.slane %v818_v28, %v1271_v17 }
 0x176   : > { %v834_v34 = vadd.f32 %v827_v32, %v819_v27  ;;  %v835_v20 = vadd.f32 %v831_v33, %v820_v29  ;;  %v836_v35 = vadd.f32 %v827_v32, %v821_v30  ;;  %v837_v21 = vadd.f32 %v831_v33, %v822_v31 }
 0x178   : > { %v838_v36 = vmax.f32 %v834_v34, 0.0  ;;  %v839_v37 = vmax.f32 %v835_v20, 0.0  ;;  %v840_v38 = vmax.f32 %v836_v35, 0.0  ;;  %v841_v39 = vmax.f32 %v837_v21, 0.0 }
 0x17a   : > { %842 = vst [vmem:[%s1346_s5] sm:$0xff] %v838_v36  ;;  %843 = vst [vmem:[%s1346_s5 + $0x8] sm:$0xff] %v839_v37 }
 0x17b   : > { %844 = vst [vmem:[%s1346_s5 + $0x10] sm:$0xff] %v840_v38  ;;  %845 = vst [vmem:[%s1346_s5 + $0x18] sm:$0xff] %v841_v39 }
 0x17c PF: > { %p12_p11 = scmp.ge.s32.totalorder %s1149_s22, 5   ;;  %s1347_s18 = smov %s1091_s19 }
 0x17d   : > { %s1348_s19 = smov %s1158_s25  ;;  %s1349_s20 = smov %s1149_s22 }
 0x17e   :  { %14 = sbr.rel (!%p12_p11) target bundleno = 2 (0x2), region = 114 }

// kernel: _lambda_.15
= control target key start
LH: loop header
LB: loop body
LE: loop exit
PB: predicated region body
PF: predicated region fallthrough
CT: control target
= control target key end

     0   :  { %v290_v34 = vlaneseq  ;;  %s535_s1 = inlined_call_operand.vmem [shape: bf16[256,256], index: 1, kind: input, shape index: {}]   ;;  %s536_s0 = inlined_call_operand.vmem [shape: bf16[16,256], index: 0, kind: input, shape index: {}]   ;;  %s537_s2 = inlined_call_operand.vmem [shape: f32[1,256], index: 2, kind: input, shape index: {}]   ;;  %s538_s3 = inlined_call_operand.vmem [shape: f32[16,256], index: 3, kind: output, shape index: {}]  }
   0x1   :  { %v347_v0 = vld [vmem:[%s535_s1 + $0x74] ss:$8 sps:$4 sm:$0xff]   ;;  %v349_v1 = vld [vmem:[%s535_s1 + $0x70] ss:$8 sps:$4 sm:$0xff]   ;;  %v350_v2 = vld [vmem:[%s535_s1 + $0x64] ss:$8 sps:$4 sm:$0xff]  }
   0x2   :  { %230 = vmatprep.subr.bf16.mxu0 %v347_v0  ;;  %v352_v3 = vld [vmem:[%s535_s1 + $0x60] ss:$8 sps:$4 sm:$0xff]   ;;  %v353_v4 = vld [vmem:[%s535_s1 + $0x54] ss:$8 sps:$4 sm:$0xff]   ;;  %v355_v5 = vld [vmem:[%s535_s1 + $0x50] ss:$8 sps:$4 sm:$0xff]  }
   0x3   :  { %231 = vmatpush1.bf16.msra.mxu0 %v349_v1  ;;  %v356_v6 = vld [vmem:[%s535_s1 + $0x44] ss:$8 sps:$4 sm:$0xff]   ;;  %v358_v7 = vld [vmem:[%s535_s1 + $0x40] ss:$8 sps:$4 sm:$0xff]   ;;  %v359_v8 = vld [vmem:[%s535_s1 + $0x34] ss:$8 sps:$4 sm:$0xff]  }
   0x4   :  { %232 = vmatprep.subr.bf16.mxu0 %v350_v2  ;;  %v361_v9 = vld [vmem:[%s535_s1 + $0x30] ss:$8 sps:$4 sm:$0xff]   ;;  %v362_v10 = vld [vmem:[%s535_s1 + $0x24] ss:$8 sps:$4 sm:$0xff]   ;;  %v364_v11 = vld [vmem:[%s535_s1 + $0x20] ss:$8 sps:$4 sm:$0xff]  }
   0x5   :  { %v365_v12 = vld [vmem:[%s535_s1 + $0x14] ss:$8 sps:$4 sm:$0xff]   ;;  %v397_v13 = vld [vmem:[%s536_s0 + $0x4] ss:$8 sps:$4 sm:$0xff]   ;;  %v367_v14 = vld [vmem:[%s535_s1 + $0x10] ss:$8 sps:$4 sm:$0xff]  }
   0x6   :  { %v368_v15 = vld [vmem:[%s535_s1 + $0x4] ss:$8 sps:$4 sm:$0xff]   ;;  %262 = vmatprep.mubr.bf16.mxu0 %v397_v13  ;;  %v370_v16 = vld [vmem:[%s535_s1] ss:$8 sps:$4 sm:$0xff]   ;;  %v371_v17 = vld [vmem:[%s535_s1 + $0xf4] ss:$8 sps:$4 sm:$0xff]  }
   0x7   :  { %233 = vmatpush1.bf16.msra.mxu0 %v352_v3  ;;  %v373_v18 = vld [vmem:[%s535_s1 + $0xf0] ss:$8 sps:$4 sm:$0xff]   ;;  %v374_v19 = vld [vmem:[%s535_s1 + $0xe4] ss:$8 sps:$4 sm:$0xff]   ;;  %v376_v20 = vld [vmem:[%s535_s1 + $0xe0] ss:$8 sps:$4 sm:$0xff]  }
   0x8   :  { %234 = vmatprep.subr.bf16.mxu0 %v353_v4  ;;  %v377_v21 = vld [vmem:[%s535_s1 + $0xd4] ss:$8 sps:$4 sm:$0xff]   ;;  %v379_v22 = vld [vmem:[%s535_s1 + $0xd0] ss:$8 sps:$4 sm:$0xff]   ;;  %v380_v23 = vld [vmem:[%s535_s1 + $0xc4] ss:$8 sps:$4 sm:$0xff]  }
   0x9   :  { %v382_v24 = vld [vmem:[%s535_s1 + $0xc0] ss:$8 sps:$4 sm:$0xff]   ;;  %v383_v25 = vld [vmem:[%s535_s1 + $0xb4] ss:$8 sps:$4 sm:$0xff]   ;;  %v385_v26 = vld [vmem:[%s535_s1 + $0xb0] ss:$8 sps:$4 sm:$0xff]  }
   0xa   :  { %v386_v27 = vld [vmem:[%s535_s1 + $0xa4] ss:$8 sps:$4 sm:$0xff]   ;;  %v388_v28 = vld [vmem:[%s535_s1 + $0xa0] ss:$8 sps:$4 sm:$0xff]   ;;  %v389_v29 = vld [vmem:[%s535_s1 + $0x94] ss:$8 sps:$4 sm:$0xff]  }
   0xb   :  { %235 = vmatpush1.bf16.msra.mxu0 %v355_v5  ;;  %v391_v30 = vld [vmem:[%s535_s1 + $0x90] ss:$8 sps:$4 sm:$0xff]   ;;  %v392_v31 = vld [vmem:[%s535_s1 + $0x84] ss:$8 sps:$4 sm:$0xff]   ;;  %v394_v32 = vld [vmem:[%s535_s1 + $0x80] ss:$8 sps:$4 sm:$0xff]  }
   0xc   :  { %236 = vmatprep.subr.bf16.mxu0 %v356_v6  ;;  %v395_v33 = vld [vmem:[%s536_s0] ss:$8 sps:$4 sm:$0xff]   ;;  %v291_v35 = vshrl.u32 %v290_v34, 7 }
   0xd   :  { %v288_v37 = vld [vmem:[%s537_s2] sm:$0x3] }
   0xe   :  { %v292_v36 = vsub.s32 0, %v291_v35  ;;  %v296_v38 = vsub.s32 1, %v291_v35 }
   0xf   :  { %237 = vmatpush1.bf16.msra.mxu0 %v358_v7 }
  0x10   :  { %238 = vmatprep.subr.bf16.mxu0 %v359_v8  ;;  %v293_v39 = vrot.slane %v288_v37, %v292_v36  ;;  %v297_v41 = vrot.slane %v288_v37, %v296_v38 }
  0x13   :  { %239 = vmatpush1.bf16.msra.mxu0 %v361_v9 }
  0x14   :  { %240 = vmatprep.subr.bf16.mxu0 %v362_v10 }
  0x17   :  { %241 = vmatpush1.bf16.msra.mxu0 %v364_v11 }
  0x18   :  { %242 = vmatprep.subr.bf16.mxu0 %v365_v12 }
  0x1b   :  { %243 = vmatpush1.bf16.msra.mxu0 %v367_v14 }
  0x1c   :  { %244 = vmatprep.subr.bf16.mxu0 %v368_v15 }
  0x1f   :  { %245 = vmatpush1.bf16.msra.mxu0 %v370_v16 }
  0x20   :  { %246 = vmatprep.subr.bf16.mxu0 %v371_v17 }
  0x23   :  { %247 = vmatpush2.bf16.msra.mxu0 %v373_v18 }
  0x24   :  { %248 = vmatprep.subr.bf16.mxu0 %v374_v19 }
  0x27   :  { %249 = vmatpush2.bf16.msra.mxu0 %v376_v20 }
  0x28   :  { %250 = vmatprep.subr.bf16.mxu0 %v377_v21 }
  0x2b   :  { %251 = vmatpush2.bf16.msra.mxu0 %v379_v22 }
  0x2c   :  { %252 = vmatprep.subr.bf16.mxu0 %v380_v23 }
  0x2f   :  { %253 = vmatpush2.bf16.msra.mxu0 %v382_v24 }
  0x30   :  { %254 = vmatprep.subr.bf16.mxu0 %v383_v25 }
  0x33   :  { %255 = vmatpush2.bf16.msra.mxu0 %v385_v26 }
  0x34   :  { %256 = vmatprep.subr.bf16.mxu0 %v386_v27 }
  0x37   :  { %257 = vmatpush2.bf16.msra.mxu0 %v388_v28 }
  0x38   :  { %258 = vmatprep.subr.bf16.mxu0 %v389_v29 }
  0x3b   :  { %259 = vmatpush2.bf16.msra.mxu0 %v391_v30 }
  0x3c   :  { %260 = vmatprep.subr.bf16.mxu0 %v392_v31 }
  0x3f   :  { %261 = vmatpush2.bf16.msra.mxu0 %v394_v32 }
  0x42   :  { %263 = vmatmul.mubr.bf16.vlgmr.msra.gmra.mxu0 %v395_v33 }
 0x102   :  { %v264_v40 = vpop.f32.mrf.mxu0 }
 0x103   :  { %v300_v43 = vadd.f32 %v293_v39, %v264_v40 }
 0x104   :  { %v266_v42 = vpop.f32.mrf.mxu0 }
 0x105   :  { %304 = vst [vmem:[%s538_s3] sm:$0xff] %v300_v43  ;;  %v301_v45 = vadd.f32 %v297_v41, %v266_v42 }
 0x106   :  { %v268_v44 = vpop.f32.mrf.mxu0 }
 0x107   :  { %305 = vst [vmem:[%s538_s3 + $0x8] sm:$0xff] %v301_v45  ;;  %v302_v47 = vadd.f32 %v293_v39, %v268_v44 }
 0x108   :  { %v270_v46 = vpop.f32.mrf.mxu0 }
 0x109   :  { %306 = vst [vmem:[%s538_s3 + $0x10] sm:$0xff] %v302_v47  ;;  %v303_v48 = vadd.f32 %v297_v41, %v270_v46 }
 0x10b   :  { %307 = vst [vmem:[%s538_s3 + $0x18] sm:$0xff] %v303_v48 }

// kernel: _lambda_.14
= control target key start
LH: loop header
LB: loop body
LE: loop exit
PB: predicated region body
PF: predicated region fallthrough
CT: control target
= control target key end

     0   :  { %s1071_s1 = inlined_call_operand.vmem [shape: bf16[256,512], index: 1, kind: input, shape index: {}]   ;;  %s1072_s0 = inlined_call_operand.vmem [shape: bf16[16,256], index: 0, kind: input, shape index: {}]   ;;  %s1073_s2 = inlined_call_operand.vmem [shape: f32[1,512], index: 2, kind: input, shape index: {}]   ;;  %s1074_s4 = inlined_call_operand.vmem [shape: f32[16,512], index: 4, kind: output, shape index: {0}]   ;;  %s1075_s3 = inlined_call_operand.vmem [shape: f32[16,256], index: 3, kind: input, shape index: {}]   ;;  %s1076_s5 = inlined_call_operand.vmem [shape: f32[16,256], index: 5, kind: output, shape index: {1}]  }
   0x1   :  { %v685_v0 = vld [vmem:[%s1071_s1 + $0xec] ss:$16 sps:$4 sm:$0xff]   ;;  %v687_v1 = vld [vmem:[%s1071_s1 + $0xe8] ss:$16 sps:$4 sm:$0xff]   ;;  %v694_v5 = vld [vmem:[%s1071_s1 + $0xe4] ss:$16 sps:$4 sm:$0xff]  }
   0x2   :  { %478 = vmatprep.subr.bf16.mxu1 %v685_v0  ;;  %v688_v2 = vld [vmem:[%s1071_s1 + $0xcc] ss:$16 sps:$4 sm:$0xff]   ;;  %v690_v3 = vld [vmem:[%s1071_s1 + $0xc8] ss:$16 sps:$4 sm:$0xff]   ;;  %435 = vmatprep.subr.bf16.mxu0 %v694_v5  ;;  %v698_v7 = vld [vmem:[%s1071_s1 + $0xe0] ss:$16 sps:$4 sm:$0xff]  }
   0x3   :  { %479 = vmatpush1.bf16.msra.mxu1 %v687_v1  ;;  %v691_v4 = vld [vmem:[%s1071_s1 + $0xac] ss:$16 sps:$4 sm:$0xff]   ;;  %v693_v6 = vld [vmem:[%s1071_s1 + $0xa8] ss:$16 sps:$4 sm:$0xff]   ;;  %v700_v8 = vld [vmem:[%s1071_s1 + $0xc4] ss:$16 sps:$4 sm:$0xff]   ;;  %436 = vmatpush1.bf16.msra.mxu0 %v698_v7 }
   0x4   :  { %480 = vmatprep.subr.bf16.mxu1 %v688_v2  ;;  %v696_v9 = vld [vmem:[%s1071_s1 + $0x8c] ss:$16 sps:$4 sm:$0xff]   ;;  %v704_v10 = vld [vmem:[%s1071_s1 + $0xc0] ss:$16 sps:$4 sm:$0xff]   ;;  %437 = vmatprep.subr.bf16.mxu0 %v700_v8  ;;  %v706_v11 = vld [vmem:[%s1071_s1 + $0xa4] ss:$16 sps:$4 sm:$0xff]   ;;  %v550_v2 = vlaneseq }
   0x5   :  { %v699_v12 = vld [vmem:[%s1071_s1 + $0x88] ss:$16 sps:$4 sm:$0xff]   ;;  %v702_v13 = vld [vmem:[%s1071_s1 + $0x6c] ss:$16 sps:$4 sm:$0xff]   ;;  %v710_v14 = vld [vmem:[%s1071_s1 + $0xa0] ss:$16 sps:$4 sm:$0xff]  }
   0x6   :  { %v712_v15 = vld [vmem:[%s1071_s1 + $0x84] ss:$16 sps:$4 sm:$0xff]   ;;  %v705_v16 = vld [vmem:[%s1071_s1 + $0x68] ss:$16 sps:$4 sm:$0xff]   ;;  %v708_v17 = vld [vmem:[%s1071_s1 + $0x4c] ss:$16 sps:$4 sm:$0xff]  }
   0x7   :  { %481 = vmatpush1.bf16.msra.mxu1 %v690_v3  ;;  %438 = vmatpush1.bf16.msra.mxu0 %v704_v10  ;;  %v716_v18 = vld [vmem:[%s1071_s1 + $0x80] ss:$16 sps:$4 sm:$0xff]   ;;  %v718_v19 = vld [vmem:[%s1071_s1 + $0x64] ss:$16 sps:$4 sm:$0xff]   ;;  %v711_v20 = vld [vmem:[%s1071_s1 + $0x48] ss:$16 sps:$4 sm:$0xff]  }
   0x8   :  { %482 = vmatprep.subr.bf16.mxu1 %v691_v4  ;;  %439 = vmatprep.subr.bf16.mxu0 %v706_v11  ;;  %v714_v21 = vld [vmem:[%s1071_s1 + $0x2c] ss:$16 sps:$4 sm:$0xff]   ;;  %v722_v22 = vld [vmem:[%s1071_s1 + $0x60] ss:$16 sps:$4 sm:$0xff]   ;;  %v724_v23 = vld [vmem:[%s1071_s1 + $0x44] ss:$16 sps:$4 sm:$0xff]  }
   0x9   :  { %v717_v24 = vld [vmem:[%s1071_s1 + $0x28] ss:$16 sps:$4 sm:$0xff]   ;;  %v720_v25 = vld [vmem:[%s1071_s1 + $0xc] ss:$16 sps:$4 sm:$0xff]   ;;  %v728_v26 = vld [vmem:[%s1071_s1 + $0x40] ss:$16 sps:$4 sm:$0xff]  }
   0xa   :  { %v730_v27 = vld [vmem:[%s1071_s1 + $0x24] ss:$16 sps:$4 sm:$0xff]   ;;  %v723_v28 = vld [vmem:[%s1071_s1 + $0x8] ss:$16 sps:$4 sm:$0xff]   ;;  %v726_v29 = vld [vmem:[%s1071_s1 + $0x1ec] ss:$16 sps:$4 sm:$0xff]  }
   0xb   :  { %483 = vmatpush1.bf16.msra.mxu1 %v693_v6  ;;  %440 = vmatpush1.bf16.msra.mxu0 %v710_v14  ;;  %v734_v30 = vld [vmem:[%s1071_s1 + $0x20] ss:$16 sps:$4 sm:$0xff]   ;;  %v736_v31 = vld [vmem:[%s1071_s1 + $0x4] ss:$16 sps:$4 sm:$0xff]   ;;  %v729_v32 = vld [vmem:[%s1071_s1 + $0x1e8] ss:$16 sps:$4 sm:$0xff]  }
   0xc   :  { %484 = vmatprep.subr.bf16.mxu1 %v696_v9  ;;  %441 = vmatprep.subr.bf16.mxu0 %v712_v15  ;;  %v732_v33 = vld [vmem:[%s1071_s1 + $0x1cc] ss:$16 sps:$4 sm:$0xff]   ;;  %v740_v34 = vld [vmem:[%s1071_s1] ss:$16 sps:$4 sm:$0xff]   ;;  %v742_v35 = vld [vmem:[%s1071_s1 + $0x1e4] ss:$16 sps:$4 sm:$0xff]  }
   0xd   :  { %v735_v36 = vld [vmem:[%s1071_s1 + $0x1c8] ss:$16 sps:$4 sm:$0xff]   ;;  %v738_v37 = vld [vmem:[%s1071_s1 + $0x1ac] ss:$16 sps:$4 sm:$0xff]   ;;  %v746_v38 = vld [vmem:[%s1071_s1 + $0x1e0] ss:$16 sps:$4 sm:$0xff]  }
   0xe   :  { %v748_v39 = vld [vmem:[%s1071_s1 + $0x1c4] ss:$16 sps:$4 sm:$0xff]   ;;  %v741_v40 = vld [vmem:[%s1071_s1 + $0x1a8] ss:$16 sps:$4 sm:$0xff]   ;;  %v744_v41 = vld [vmem:[%s1071_s1 + $0x18c] ss:$16 sps:$4 sm:$0xff]  }
   0xf   :  { %485 = vmatpush1.bf16.msra.mxu1 %v699_v12  ;;  %442 = vmatpush1.bf16.msra.mxu0 %v716_v18  ;;  %v774_v42 = vld [vmem:[%s1072_s0 + $0x4] ss:$8 sps:$4 sm:$0xff]   ;;  %v752_v43 = vld [vmem:[%s1071_s1 + $0x1c0] ss:$16 sps:$4 sm:$0xff]   ;;  %v747_v45 = vld [vmem:[%s1071_s1 + $0x188] ss:$16 sps:$4 sm:$0xff]  }
  0x10   :  { %486 = vmatprep.subr.bf16.mxu1 %v702_v13  ;;  %443 = vmatprep.subr.bf16.mxu0 %v718_v19  ;;  %v754_v44 = vld [vmem:[%s1071_s1 + $0x1a4] ss:$16 sps:$4 sm:$0xff]   ;;  %v750_v46 = vld [vmem:[%s1071_s1 + $0x16c] ss:$16 sps:$4 sm:$0xff]   ;;  %v758_v47 = vld [vmem:[%s1071_s1 + $0x1a0] ss:$16 sps:$4 sm:$0xff]  }
  0x11   :  { %510 = vmatprep.mubr.bf16.mxu1 %v774_v42  ;;  %467 = vmatprep.mubr.bf16.mxu0 %v774_v42  ;;  %v760_v48 = vld [vmem:[%s1071_s1 + $0x184] ss:$16 sps:$4 sm:$0xff]   ;;  %v753_v49 = vld [vmem:[%s1071_s1 + $0x168] ss:$16 sps:$4 sm:$0xff]   ;;  %v756_v50 = vld [vmem:[%s1071_s1 + $0x14c] ss:$16 sps:$4 sm:$0xff]  }
  0x12   :  { %v764_v51 = vld [vmem:[%s1071_s1 + $0x180] ss:$16 sps:$4 sm:$0xff]   ;;  %v766_v52 = vld [vmem:[%s1071_s1 + $0x164] ss:$16 sps:$4 sm:$0xff]   ;;  %v759_v53 = vld [vmem:[%s1071_s1 + $0x148] ss:$16 sps:$4 sm:$0xff]  }
  0x13   :  { %487 = vmatpush1.bf16.msra.mxu1 %v705_v16  ;;  %444 = vmatpush1.bf16.msra.mxu0 %v722_v22  ;;  %v762_v54 = vld [vmem:[%s1071_s1 + $0x12c] ss:$16 sps:$4 sm:$0xff]   ;;  %v770_v55 = vld [vmem:[%s1071_s1 + $0x160] ss:$16 sps:$4 sm:$0xff]   ;;  %v775_v56 = vld [vmem:[%s1071_s1 + $0x144] ss:$16 sps:$4 sm:$0xff]  }
  0x14   :  { %488 = vmatprep.subr.bf16.mxu1 %v708_v17  ;;  %445 = vmatprep.subr.bf16.mxu0 %v724_v23  ;;  %v765_v57 = vld [vmem:[%s1071_s1 + $0x128] ss:$16 sps:$4 sm:$0xff]   ;;  %v768_v58 = vld [vmem:[%s1071_s1 + $0x10c] ss:$16 sps:$4 sm:$0xff]   ;;  %v777_v59 = vld [vmem:[%s1071_s1 + $0x140] ss:$16 sps:$4 sm:$0xff]  }
  0x15   :  { %v778_v60 = vld [vmem:[%s1071_s1 + $0x124] ss:$16 sps:$4 sm:$0xff]   ;;  %v771_v61 = vld [vmem:[%s1071_s1 + $0x108] ss:$16 sps:$4 sm:$0xff]   ;;  %v780_v62 = vld [vmem:[%s1071_s1 + $0x120] ss:$16 sps:$4 sm:$0xff]  }
  0x16   :  { %v781_v63 = vld [vmem:[%s1071_s1 + $0x104] ss:$16 sps:$4 sm:$0xff]   ;;  %v772_v0 = vld [vmem:[%s1072_s0] ss:$8 sps:$4 sm:$0xff]   ;;  %v551_v3 = vshrl.u32 %v550_v2, 7  ;;  %v597_v42 = vld [vmem:[%s1075_s3 + $0x18] sm:$0xff] }
  0x17   :  { %489 = vmatpush1.bf16.msra.mxu1 %v711_v20  ;;  %446 = vmatpush1.bf16.msra.mxu0 %v728_v26  ;;  %v783_v1 = vld [vmem:[%s1071_s1 + $0x100] ss:$16 sps:$4 sm:$0xff]  }
  0x18   :  { %490 = vmatprep.subr.bf16.mxu1 %v714_v21  ;;  %447 = vmatprep.subr.bf16.mxu0 %v730_v27  ;;  %v560_v4 = vsub.s32 2, %v551_v3  ;;  %v548_v5 = vld [vmem:[%s1073_s2] sm:$0xf]  ;;  %v564_v6 = vsub.s32 3, %v551_v3  ;;  %v552_v9 = vsub.s32 0, %v551_v3  ;;  %v556_v12 = vsub.s32 1, %v551_v3 }
  0x1a   :  { %v561_v7 = vrot.slane %v548_v5, %v560_v4  ;;  %v565_v10 = vrot.slane %v548_v5, %v564_v6  ;;  %v553_v15 = vrot.slane %v548_v5, %v552_v9  ;;  %v557_v20 = vrot.slane %v548_v5, %v556_v12 }
  0x1b   :  { %491 = vmatpush1.bf16.msra.mxu1 %v717_v24  ;;  %448 = vmatpush1.bf16.msra.mxu0 %v734_v30 }
  0x1c   :  { %492 = vmatprep.subr.bf16.mxu1 %v720_v25  ;;  %449 = vmatprep.subr.bf16.mxu0 %v736_v31 }
  0x1f   :  { %493 = vmatpush1.bf16.msra.mxu1 %v723_v28  ;;  %450 = vmatpush1.bf16.msra.mxu0 %v740_v34 }
  0x20   :  { %494 = vmatprep.subr.bf16.mxu1 %v726_v29  ;;  %451 = vmatprep.subr.bf16.mxu0 %v742_v35  ;;  %v595_v35 = vld [vmem:[%s1075_s3 + $0x8] sm:$0xff] }
  0x23   :  { %495 = vmatpush2.bf16.msra.mxu1 %v729_v32  ;;  %452 = vmatpush2.bf16.msra.mxu0 %v746_v38  ;;  %v596_v38 = vld [vmem:[%s1075_s3 + $0x10] sm:$0xff] }
  0x24   :  { %496 = vmatprep.subr.bf16.mxu1 %v732_v33  ;;  %453 = vmatprep.subr.bf16.mxu0 %v748_v39  ;;  %v594_v33 = vld [vmem:[%s1075_s3] sm:$0xff] }
  0x27   :  { %497 = vmatpush2.bf16.msra.mxu1 %v735_v36  ;;  %454 = vmatpush2.bf16.msra.mxu0 %v752_v43 }
  0x28   :  { %498 = vmatprep.subr.bf16.mxu1 %v738_v37  ;;  %455 = vmatprep.subr.bf16.mxu0 %v754_v44 }
  0x2b   :  { %499 = vmatpush2.bf16.msra.mxu1 %v741_v40  ;;  %456 = vmatpush2.bf16.msra.mxu0 %v758_v47 }
  0x2c   :  { %500 = vmatprep.subr.bf16.mxu1 %v744_v41  ;;  %457 = vmatprep.subr.bf16.mxu0 %v760_v48 }
  0x2f   :  { %501 = vmatpush2.bf16.msra.mxu1 %v747_v45  ;;  %458 = vmatpush2.bf16.msra.mxu0 %v764_v51 }
  0x30   :  { %502 = vmatprep.subr.bf16.mxu1 %v750_v46  ;;  %459 = vmatprep.subr.bf16.mxu0 %v766_v52 }
  0x33   :  { %503 = vmatpush2.bf16.msra.mxu1 %v753_v49  ;;  %460 = vmatpush2.bf16.msra.mxu0 %v770_v55 }
  0x34   :  { %504 = vmatprep.subr.bf16.mxu1 %v756_v50  ;;  %461 = vmatprep.subr.bf16.mxu0 %v775_v56 }
  0x37   :  { %505 = vmatpush2.bf16.msra.mxu1 %v759_v53  ;;  %462 = vmatpush2.bf16.msra.mxu0 %v777_v59 }
  0x38   :  { %506 = vmatprep.subr.bf16.mxu1 %v762_v54  ;;  %463 = vmatprep.subr.bf16.mxu0 %v778_v60 }
  0x3b   :  { %507 = vmatpush2.bf16.msra.mxu1 %v765_v57  ;;  %464 = vmatpush2.bf16.msra.mxu0 %v780_v62 }
  0x3c   :  { %508 = vmatprep.subr.bf16.mxu1 %v768_v58  ;;  %465 = vmatprep.subr.bf16.mxu0 %v781_v63 }
  0x3f   :  { %509 = vmatpush2.bf16.msra.mxu1 %v771_v61  ;;  %466 = vmatpush2.bf16.msra.mxu0 %v783_v1 }
  0x42   :  { %511 = vmatmul.mubr.bf16.vlgmr.msra.gmra.mxu1 %v772_v0  ;;  %468 = vmatmul.mubr.bf16.vlgmr.msra.gmra.mxu0 %v772_v0 }
 0x102   :  { %v512_v8 = vpop.f32.mrf.mxu1  ;;  %v469_v18 = vpop.f32.mrf.mxu0 }
 0x103   :  { %v572_v13 = vadd.f32 %v561_v7, %v512_v8  ;;  %v570_v24 = vadd.f32 %v553_v15, %v469_v18 }
 0x104   :  { %v514_v11 = vpop.f32.mrf.mxu1  ;;  %v471_v23 = vpop.f32.mrf.mxu0 }
 0x105   :  { %580 = vst [vmem:[%s1074_s4 + $0x10] sm:$0xff] %v572_v13  ;;  %v586_v16 = vmul.f32 1.442695, %v572_v13  ;;  %v573_v17 = vadd.f32 %v565_v10, %v514_v11  ;;  %578 = vst [vmem:[%s1074_s4] sm:$0xff] %v570_v24  ;;  %v571_v28 = vadd.f32 %v557_v20, %v471_v23 }
 0x106   :  { %v516_v14 = vpop.f32.mrf.mxu1  ;;  %v473_v27 = vpop.f32.mrf.mxu0 }
 0x107   :  { %784 = vpow2.f32 %v586_v16  ;;  %581 = vst [vmem:[%s1074_s4 + $0x18] sm:$0xff] %v573_v17  ;;  %v588_v21 = vmul.f32 1.442695, %v573_v17  ;;  %v576_v22 = vadd.f32 %v561_v7, %v516_v14  ;;  %579 = vst [vmem:[%s1074_s4 + $0x8] sm:$0xff] %v571_v28  ;;  %v574_v31 = vadd.f32 %v553_v15, %v473_v27 }
 0x108   :  { %v518_v19 = vpop.f32.mrf.mxu1  ;;  %v475_v30 = vpop.f32.mrf.mxu0 }
 0x109   :  { %786 = vpow2.f32 %v588_v21  ;;  %584 = vst [vmem:[%s1074_s4 + $0x30] sm:$0xff] %v576_v22  ;;  %v590_v25 = vmul.f32 1.442695, %v576_v22  ;;  %v577_v26 = vadd.f32 %v565_v10, %v518_v19  ;;  %582 = vst [vmem:[%s1074_s4 + $0x20] sm:$0xff] %v574_v31  ;;  %v575_v32 = vadd.f32 %v557_v20, %v475_v30 }
 0x10b   :  { %788 = vpow2.f32 %v590_v25  ;;  %585 = vst [vmem:[%s1074_s4 + $0x38] sm:$0xff] %v577_v26  ;;  %v592_v29 = vmul.f32 1.442695, %v577_v26  ;;  %583 = vst [vmem:[%s1074_s4 + $0x28] sm:$0xff] %v575_v32 }
 0x10d   :  { %790 = vpow2.f32 %v592_v29 }
 0x114   :  { %v785_v34 = vpop.eup %784 }
 0x115   :  { %v598_v36 = vmul.f32 %v785_v34, %v594_v33 }
 0x116   :  { %v787_v37 = vpop.eup %786 }
 0x117   :  { %v602_v39 = vadd.f32 %v598_v36, %v570_v24  ;;  %v599_v40 = vmul.f32 %v787_v37, %v595_v35 }
 0x118   :  { %v789_v41 = vpop.eup %788 }
 0x119   :  { %606 = vst [vmem:[%s1076_s5] sm:$0xff] %v602_v39  ;;  %v603_v43 = vadd.f32 %v599_v40, %v571_v28  ;;  %v600_v44 = vmul.f32 %v789_v41, %v596_v38 }
 0x11a   :  { %v791_v45 = vpop.eup %790 }
 0x11b   :  { %607 = vst [vmem:[%s1076_s5 + $0x8] sm:$0xff] %v603_v43  ;;  %v604_v46 = vadd.f32 %v600_v44, %v574_v31  ;;  %v601_v47 = vmul.f32 %v791_v45, %v597_v42 }
 0x11d   :  { %608 = vst [vmem:[%s1076_s5 + $0x10] sm:$0xff] %v604_v46  ;;  %v605_v48 = vadd.f32 %v601_v47, %v575_v32 }
 0x11f   :  { %609 = vst [vmem:[%s1076_s5 + $0x18] sm:$0xff] %v605_v48 }

// kernel: _lambda_.16
= control target key start
LH: loop header
LB: loop body
LE: loop exit
PB: predicated region body
PF: predicated region fallthrough
CT: control target
= control target key end

     0   :  { %s1361_s18 = smov 0   ;;  %s1363_s19 = smov 0   ;;  %s1549_s0 = inlined_call_operand.vmem [shape: bf16[32,2304], index: 0, kind: input, shape index: {}]   ;;  %s1550_s1 = inlined_call_operand.vmem [shape: bf16[2304,128], index: 1, kind: input, shape index: {}]   ;;  %s1551_s2 = inlined_call_operand.vmem [shape: f32[1,128], index: 2, kind: input, shape index: {}]   ;;  %s1552_s3 = inlined_call_operand.vmem [shape: f32[1,128], index: 3, kind: input, shape index: {}]   ;;  %s1553_s4 = inlined_call_operand.vmem [shape: f32[1,128], index: 4, kind: input, shape index: {}]   ;;  %s1554_s5 = inlined_call_operand.vmem [shape: f32[32,128], index: 5, kind: output, shape index: {}]  }
   0x1   :  { %s1365_s20 = smov 0  }
   0x2 LB: > { %s1377_s21 = sadd.s32 4294967295, %s1328_s20   ;;  %s1380_s22 = sadd.s32 1, %s1328_s20   ;;  %s1328_s20 = sphi %s1365_s20, %s1557_s20   ;;  %s1324_s19 = sphi %s1363_s19, %s1556_s19   ;;  %s1320_s18 = sphi %s1361_s18, %s1555_s18  }
   0x3   : > { %s19_s23 = ssub.s32 %s1328_s20, %s1380_s22  ;;  %s22_s24 = sadd.s32 1, %s1324_s19 }
   0x4   : > { %p20_p0 = scmp.eq.s32.totalorder %s19_s23, 0  ;;  %p29_p1 = scmp.ne.s32.totalorder %s1324_s19, %s1320_s18 }
   0x5   : > { %p30_p2 = scmp.eq.s32.totalorder %s1328_s20, 0  ;;  %p1041_p4 = scmp.ge.s32.totalorder %s1328_s20, 3 }
   0x6   : > { %s1389_s25 = scalar_select %p20_p0, %s1324_s19, %s22_s24  }
   0x7   : > { %p31_p3 = por %p30_p2, %p29_p1  ;;  %174 = sbr.rel (%p1041_p4) target bundleno = 23 (0x17), region = 28 }
   0xc   : > { %177 = sbr.rel (!%p31_p3) target bundleno = 23 (0x17), region = 32  ;;  %s179_s26 = sand.u32 (%p31_p3), 1, %s1324_s19  }
   0xd   : > { %s1110_s27 = smul.u32 (%p31_p3), 24, %s1328_s20 }
   0xe   : > { %s1211_s28 = smul.u32 (%p31_p3), 96, %s179_s26 }
   0xf   : > { %s184_s6 = scalar_lea.vmem (%p31_p3), %s1549_s0, %s1110_s27 }
  0x10   : > { %v197_v0 = vld [vmem:[%s184_s6] sm:$0xff] (%p31_p3)  ;;  %v199_v1 = vld [vmem:[%s184_s6 + $0x8] sm:$0xff] (%p31_p3)  ;;  %v201_v2 = vld [vmem:[%s184_s6 + $0x10] sm:$0xff] (%p31_p3)  ;;  %s181_s7 = scalar_lea.vmem (%p31_p3), [#allocation2], %s1211_s28 }
  0x11   : > { %198 = vst [vmem:[%s181_s7] sm:$0xff] %v197_v0  ;;  %200 = vst [vmem:[%s181_s7 + $0x8] sm:$0xff] %v199_v1  ;;  %v203_v3 = vld [vmem:[%s184_s6 + $0x48] sm:$0xff]  ;;  %v205_v4 = vld [vmem:[%s184_s6 + $0x50] sm:$0xff] }
  0x12   : > { %202 = vst [vmem:[%s181_s7 + $0x10] sm:$0xff] %v201_v2  ;;  %v207_v5 = vld [vmem:[%s184_s6 + $0x58] sm:$0xff]  ;;  %204 = vst [vmem:[%s181_s7 + $0x18] sm:$0xff] %v203_v3  ;;  %v209_v6 = vld [vmem:[%s184_s6 + $0x90] sm:$0xff] }
  0x13   : > { %206 = vst [vmem:[%s181_s7 + $0x20] sm:$0xff] %v205_v4  ;;  %208 = vst [vmem:[%s181_s7 + $0x28] sm:$0xff] %v207_v5  ;;  %v211_v7 = vld [vmem:[%s184_s6 + $0x98] sm:$0xff]  ;;  %v213_v8 = vld [vmem:[%s184_s6 + $0xa0] sm:$0xff] }
  0x14   : > { %210 = vst [vmem:[%s181_s7 + $0x30] sm:$0xff] %v209_v6  ;;  %212 = vst [vmem:[%s181_s7 + $0x38] sm:$0xff] %v211_v7  ;;  %v215_v9 = vld [vmem:[%s184_s6 + $0xd8] sm:$0xff]  ;;  %v217_v10 = vld [vmem:[%s184_s6 + $0xe0] sm:$0xff] }
  0x15   : > { %214 = vst [vmem:[%s181_s7 + $0x40] sm:$0xff] %v213_v8  ;;  %v219_v11 = vld [vmem:[%s184_s6 + $0xe8] sm:$0xff]  ;;  %216 = vst [vmem:[%s181_s7 + $0x48] sm:$0xff] %v215_v9 }
  0x16   : > { %218 = vst [vmem:[%s181_s7 + $0x50] sm:$0xff] %v217_v10  ;;  %220 = vst [vmem:[%s181_s7 + $0x58] sm:$0xff] %v219_v11 }
  0x17 PF: > { %p1043_p5 = scmp.ge.s32.totalorder %s1328_s20, 1  ;;  %p234_p6 = scmp.lt.s32.totalorder %s1328_s20, 4 }
  0x19   : > { %p235_p7 = pnand %p1043_p5, %p234_p6 }
  0x1a   : > { %s241_s8 = sand.u32 (!%p235_p7), 1, %s1320_s18   ;;  %s269_s9 = smul.u32 (!%p235_p7), 96, %s1377_s21 }
  0x1b   : > { %238 = sbr.rel (%p235_p7) target bundleno = 375 (0x177), region = 59  ;;  %p1045_p9 = scmp.ne.s32.totalorder (!%p235_p7), %s1377_s21, 0 }
  0x1c   : > { %s1212_s10 = smul.u32 (!%p235_p7), 96, %s241_s8  ;;  %p270_p8 = scmp.lt.s32.totalorder (!%p235_p7), %s269_s9, 287 }
  0x1e   : > { %s1406_s15 = scalar_lea.vmem (!%p235_p7), [#allocation2], %s1212_s10 }
  0x20   : > { %s1559_s9 = smov (!%p270_p8, %s269_s9), 287  ;;  %279 = sbr.rel (%p1045_p9) target bundleno = 40 (0x28), region = 67 }
  0x21   : > { %s1044_s11 = sshll.u32 %s1559_s9, 2 }
  0x22   : > { %s1404_s14 = scalar_lea.vmem %s1550_s1, %s1044_s11 }
  0x25   : > { %v1330_v12 = vmov 0.0  }
  0x26   : > { %280 = vst [vmem:[%s1554_s5] sm:$0xff] %v1330_v12  ;;  %281 = vst [vmem:[%s1554_s5 + $0x8] sm:$0xff] %v1330_v12 }
  0x27   : > { %282 = vst [vmem:[%s1554_s5 + $0x10] sm:$0xff] %v1330_v12  ;;  %283 = vst [vmem:[%s1554_s5 + $0x18] sm:$0xff] %v1330_v12 }
  0x28 PF: > { %v1238_v13 = vld [vmem:[%s1404_s14 + $0x78] sm:$0xff]   ;;  %v1242_v17 = vld [vmem:[%s1404_s14 + $0x70] sm:$0xff]   ;;  %v1246_v21 = vld [vmem:[%s1404_s14 + $0x68] sm:$0xff]   ;;  %p1106_p10 = scmp.ne.s32.totalorder %s1377_s21, 2 }
  0x29   : > { %v1239_v14 = vld [vmem:[%s1404_s14 + $0xf8] sm:$0xff]   ;;  %1111 = vmatprep.subr.bf16.mxu0 %v1238_v13  ;;  %v1243_v18 = vld [vmem:[%s1404_s14 + $0xf0] sm:$0xff]   ;;  %v1247_v22 = vld [vmem:[%s1404_s14 + $0xe8] sm:$0xff]  }
  0x2a   : > { %v1240_v15 = vld [vmem:[%s1404_s14 + $0x38] sm:$0xff]   ;;  %1139 = vmatprep.subr.bf16.mxu1 %v1239_v14  ;;  %v1244_v19 = vld [vmem:[%s1404_s14 + $0x30] sm:$0xff]   ;;  %v1248_v23 = vld [vmem:[%s1404_s14 + $0x28] sm:$0xff]  }
  0x2b   : > { %v1241_v16 = vld [vmem:[%s1404_s14 + $0xb8] sm:$0xff]   ;;  %1112 = vmatpush3.bf16.msra.mxu0 %v1240_v15  ;;  %v1245_v20 = vld [vmem:[%s1404_s14 + $0xb0] sm:$0xff]   ;;  %v1249_v24 = vld [vmem:[%s1404_s14 + $0xa8] sm:$0xff]  }
  0x2c   : > { %1140 = vmatpush3.bf16.msra.mxu1 %v1241_v16  ;;  %1113 = vmatprep.subr.bf16.mxu0 %v1242_v17  ;;  %v1250_v25 = vld [vmem:[%s1404_s14 + $0x60] sm:$0xff]   ;;  %v1254_v29 = vld [vmem:[%s1404_s14 + $0x58] sm:$0xff]   ;;  %v1258_v33 = vld [vmem:[%s1404_s14 + $0x50] sm:$0xff]  }
  0x2d   : > { %1141 = vmatprep.subr.bf16.mxu1 %v1243_v18  ;;  %v1251_v26 = vld [vmem:[%s1404_s14 + $0xe0] sm:$0xff]   ;;  %v1255_v30 = vld [vmem:[%s1404_s14 + $0xd8] sm:$0xff]   ;;  %v1259_v34 = vld [vmem:[%s1404_s14 + $0xd0] sm:$0xff]  }
  0x2e   : > { %v1252_v27 = vld [vmem:[%s1404_s14 + $0x20] sm:$0xff]   ;;  %v1256_v31 = vld [vmem:[%s1404_s14 + $0x18] sm:$0xff]   ;;  %v1260_v35 = vld [vmem:[%s1404_s14 + $0x10] sm:$0xff]  }
  0x2f   : > { %1114 = vmatpush3.bf16.msra.mxu0 %v1244_v19  ;;  %v1253_v28 = vld [vmem:[%s1404_s14 + $0xa0] sm:$0xff]   ;;  %v1257_v32 = vld [vmem:[%s1404_s14 + $0x98] sm:$0xff]   ;;  %v1261_v36 = vld [vmem:[%s1404_s14 + $0x90] sm:$0xff]  }
  0x30   : > { %1142 = vmatpush3.bf16.msra.mxu1 %v1245_v20  ;;  %1115 = vmatprep.subr.bf16.mxu0 %v1246_v21  ;;  %v1262_v37 = vld [vmem:[%s1404_s14 + $0x48] sm:$0xff]   ;;  %v1266_v41 = vld [vmem:[%s1404_s14 + $0x40] sm:$0xff]   ;;  %v1276_v49 = vld [vmem:[%s1404_s14 + $0x178] sm:$0xff]  }
  0x31   : > { %1143 = vmatprep.subr.bf16.mxu1 %v1247_v22  ;;  %v1263_v38 = vld [vmem:[%s1404_s14 + $0xc8] sm:$0xff]   ;;  %v1267_v42 = vld [vmem:[%s1404_s14 + $0xc0] sm:$0xff]   ;;  %v1277_v50 = vld [vmem:[%s1404_s14 + $0x138] sm:$0xff]  }
  0x32   : > { %v1264_v39 = vld [vmem:[%s1404_s14 + $0x8] sm:$0xff]   ;;  %v1268_v43 = vld [vmem:[%s1404_s14] sm:$0xff]   ;;  %v1278_v51 = vld [vmem:[%s1404_s14 + $0x170] sm:$0xff]  }
  0x33   : > { %1116 = vmatpush3.bf16.msra.mxu0 %v1248_v23  ;;  %v1265_v40 = vld [vmem:[%s1404_s14 + $0x88] sm:$0xff]   ;;  %v1269_v44 = vld [vmem:[%s1404_s14 + $0x80] sm:$0xff]   ;;  %v1279_v52 = vld [vmem:[%s1404_s14 + $0x130] sm:$0xff]  }
  0x34   : > { %1144 = vmatpush3.bf16.msra.mxu1 %v1249_v24  ;;  %1117 = vmatprep.subr.bf16.mxu0 %v1250_v25  ;;  %v1270_v45 = vld [vmem:[%s1406_s15] ss:$24 sps:$4 sm:$0xff]   ;;  %v1272_v46 = vld [vmem:[%s1406_s15 + $0x4] ss:$24 sps:$4 sm:$0xff]   ;;  %v1280_v53 = vld [vmem:[%s1404_s14 + $0x168] sm:$0xff]  }
  0x35   : > { %1145 = vmatprep.subr.bf16.mxu1 %v1251_v26  ;;  %v1273_v47 = vld [vmem:[%s1406_s15 + $0x8] ss:$24 sps:$4 sm:$0xff]   ;;  %v1275_v48 = vld [vmem:[%s1406_s15 + $0xc] ss:$24 sps:$4 sm:$0xff]   ;;  %776 = vmatprep.mubr.bf16.mxu0 %v1272_v46  ;;  %v1287_v58 = vld [vmem:[%s1406_s15 + $0x3c] ss:$24 sps:$4 sm:$0xff]  }
  0x36   : > { %825 = vmatprep.mubr.bf16.mxu1 %v1275_v48  ;;  %v1281_v54 = vld [vmem:[%s1404_s14 + $0x128] sm:$0xff]   ;;  %v1282_v55 = vld [vmem:[%s1404_s14 + $0x160] sm:$0xff]   ;;  %v1284_v59 = vld [vmem:[%s1404_s14 + $0x158] sm:$0xff]  }
  0x37   : > { %1118 = vmatpush3.bf16.msra.mxu0 %v1252_v27  ;;  %v1283_v56 = vld [vmem:[%s1404_s14 + $0x120] sm:$0xff]   ;;  %v1285_v57 = vld [vmem:[%s1406_s15 + $0x34] ss:$24 sps:$4 sm:$0xff]   ;;  %v1290_v60 = vld [vmem:[%s1406_s15 + $0x30] ss:$24 sps:$4 sm:$0xff]  }
  0x38   : > { %1146 = vmatpush3.bf16.msra.mxu1 %v1253_v28  ;;  %1119 = vmatprep.subr.bf16.mxu0 %v1254_v29  ;;  %v1291_v61 = vld [vmem:[%s1406_s15 + $0x38] ss:$24 sps:$4 sm:$0xff]   ;;  %v1300_v1 = vld [vmem:[%s1406_s15 + $0x14] ss:$24 sps:$4 sm:$0xff]   ;;  %v1303_v3 = vld [vmem:[%s1406_s15 + $0x44] ss:$24 sps:$4 sm:$0xff]  }
  0x39   : > { %1147 = vmatprep.subr.bf16.mxu1 %v1255_v30  ;;  %v1289_v62 = vld [vmem:[%s1404_s14 + $0x118] sm:$0xff]   ;;  %v1292_v63 = vld [vmem:[%s1404_s14 + $0x150] sm:$0xff]   ;;  %v1294_v2 = vld [vmem:[%s1404_s14 + $0x148] sm:$0xff]  }
  0x3a   : > { %v1293_v0 = vld [vmem:[%s1404_s14 + $0x110] sm:$0xff]   ;;  %v1295_v4 = vld [vmem:[%s1404_s14 + $0x108] sm:$0xff]   ;;  %v1296_v5 = vld [vmem:[%s1404_s14 + $0x140] sm:$0xff]  }
  0x3b   : > { %1120 = vmatpush3.bf16.msra.mxu0 %v1256_v31  ;;  %v1297_v6 = vld [vmem:[%s1404_s14 + $0x100] sm:$0xff]   ;;  %v1298_v7 = vld [vmem:[%s1406_s15 + $0x10] ss:$24 sps:$4 sm:$0xff]  }
  0x3c   : > { %1148 = vmatpush3.bf16.msra.mxu1 %v1257_v32  ;;  %1121 = vmatprep.subr.bf16.mxu0 %v1258_v33  ;;  %v1301_v8 = vld [vmem:[%s1406_s15 + $0x40] ss:$24 sps:$4 sm:$0xff]  }
  0x3d   : > { %1149 = vmatprep.subr.bf16.mxu1 %v1259_v34 }
  0x3f   : > { %1122 = vmatpush3.bf16.msra.mxu0 %v1260_v35 }
  0x40   : > { %1150 = vmatpush3.bf16.msra.mxu1 %v1261_v36  ;;  %1123 = vmatprep.subr.bf16.mxu0 %v1262_v37 }
  0x41   : > { %1151 = vmatprep.subr.bf16.mxu1 %v1263_v38 }
  0x43   : > { %1124 = vmatpush3.bf16.msra.mxu0 %v1264_v39 }
  0x44   : > { %1152 = vmatpush3.bf16.msra.mxu1 %v1265_v40  ;;  %1125 = vmatprep.subr.bf16.mxu0 %v1266_v41  ;;  %v284_v40 = vld [vmem:[%s1554_s5] sm:$0xff] }
  0x45   : > { %1153 = vmatprep.subr.bf16.mxu1 %v1267_v42 }
  0x47   : > { %1126 = vmatpush3.bf16.msra.mxu0 %v1268_v43 }
  0x48   : > { %1154 = vmatpush3.bf16.msra.mxu1 %v1269_v44  ;;  %1167 = vmatprep.subr.bf16.mxu0 %v1276_v49  ;;  %v286_v44 = vld [vmem:[%s1554_s5 + $0x10] sm:$0xff] }
  0x49   : > { %1195 = vmatprep.subr.bf16.mxu1 %v1276_v49 }
  0x4a   : > { %777 = vmatmul.mubr.bf16.vlgmr.msra.gmra.mxu0 %v1270_v45 }
  0x4b   : > { %826 = vmatmul.mubr.bf16.vlgmr.msra.gmra.mxu1 %v1273_v47  ;;  %1168 = vmatpush3.bf16.msra.mxu0 %v1277_v50 }
  0x4c   : > { %1203 = vmatpush3.bf16.msra.mxu1 %v1277_v50  ;;  %1169 = vmatprep.subr.bf16.mxu0 %v1278_v51 }
  0x4d   : > { %1196 = vmatprep.subr.bf16.mxu1 %v1278_v51  ;;  %784 = vmatprep.mubr.bf16.mxu0 %v1285_v57  ;;  %v287_v57 = vld [vmem:[%s1554_s5 + $0x18] sm:$0xff] }
  0x4e   : > { %833 = vmatprep.mubr.bf16.mxu1 %v1287_v58 }
  0x4f   : > { %1170 = vmatpush3.bf16.msra.mxu0 %v1279_v52 }
  0x50   : > { %1204 = vmatpush3.bf16.msra.mxu1 %v1279_v52  ;;  %1171 = vmatprep.subr.bf16.mxu0 %v1280_v53 }
  0x51   : > { %1197 = vmatprep.subr.bf16.mxu1 %v1280_v53 }
  0x52   : > { %785 = vmatmul.mubr.bf16.gmra.mxu0 %v1290_v60 }
  0x53   : > { %1172 = vmatpush3.bf16.msra.mxu0 %v1281_v54  ;;  %834 = vmatmul.mubr.bf16.gmra.mxu1 %v1291_v61 }
  0x54   : > { %1205 = vmatpush3.bf16.msra.mxu1 %v1281_v54  ;;  %1173 = vmatprep.subr.bf16.mxu0 %v1282_v55  ;;  %v285_v54 = vld [vmem:[%s1554_s5 + $0x8] sm:$0xff] }
  0x55   : > { %1198 = vmatprep.subr.bf16.mxu1 %v1282_v55  ;;  %874 = vmatprep.mubr.bf16.mxu0 %v1300_v1 }
  0x56   : > { %882 = vmatprep.mubr.bf16.mxu1 %v1303_v3 }
  0x57   : > { %1174 = vmatpush3.bf16.msra.mxu0 %v1283_v56 }
  0x58   : > { %1206 = vmatpush3.bf16.msra.mxu1 %v1283_v56  ;;  %1175 = vmatprep.subr.bf16.mxu0 %v1284_v59 }
  0x59   : > { %1199 = vmatprep.subr.bf16.mxu1 %v1284_v59 }
  0x5b   : > { %1176 = vmatpush3.bf16.msra.mxu0 %v1289_v62 }
  0x5c   : > { %1207 = vmatpush3.bf16.msra.mxu1 %v1289_v62  ;;  %1177 = vmatprep.subr.bf16.mxu0 %v1292_v63 }
  0x5d   : > { %1200 = vmatprep.subr.bf16.mxu1 %v1292_v63 }
  0x5f   : > { %1178 = vmatpush3.bf16.msra.mxu0 %v1293_v0 }
  0x60   : > { %1208 = vmatpush3.bf16.msra.mxu1 %v1293_v0  ;;  %1179 = vmatprep.subr.bf16.mxu0 %v1294_v2 }
  0x61   : > { %1201 = vmatprep.subr.bf16.mxu1 %v1294_v2 }
  0x63   : > { %1180 = vmatpush3.bf16.msra.mxu0 %v1295_v4 }
  0x64   : > { %1209 = vmatpush3.bf16.msra.mxu1 %v1295_v4  ;;  %1181 = vmatprep.subr.bf16.mxu0 %v1296_v5 }
  0x65   : > { %1202 = vmatprep.subr.bf16.mxu1 %v1296_v5 }
  0x67   : > { %1182 = vmatpush3.bf16.msra.mxu0 %v1297_v6 }
  0x68   : > { %1210 = vmatpush3.bf16.msra.mxu1 %v1297_v6 }
  0x6a   : > { %875 = vmatmul.mubr.bf16.vlgmr.msra.gmra.mxu0 %v1298_v7 }
  0x6b   : > { %883 = vmatmul.mubr.bf16.vlgmr.msra.gmra.mxu1 %v1301_v8 }
 0x10a   : > { %v1127_v9 = vpop.f32.mrf.mxu0 }
 0x10b   : > { %v1155_v10 = vpop.f32.mrf.mxu1 }
 0x10c   : > { %v1128_v11 = vpop.f32.mrf.mxu0 }
 0x10d   : > { %v1156_v12 = vpop.f32.mrf.mxu1  ;;  %v1129_v24 = vadd.f32 %v1128_v11, %v1127_v9 }
 0x10e   : > { %v1130_v13 = vpop.f32.mrf.mxu0  ;;  %v1157_v25 = vadd.f32 %v1156_v12, %v1155_v10 }
 0x10f   : > { %v1158_v14 = vpop.f32.mrf.mxu1 }
 0x110   : > { %v1131_v15 = vpop.f32.mrf.mxu0  ;;  %v828_v32 = vadd.f32 %v1157_v25, %v1129_v24 }
 0x111   : > { %v1159_v16 = vpop.f32.mrf.mxu1  ;;  %v1132_v33 = vadd.f32 %v1131_v15, %v1130_v13 }
 0x112   : > { %v1133_v17 = vpop.f32.mrf.mxu0  ;;  %v1160_v34 = vadd.f32 %v1159_v16, %v1158_v14 }
 0x113   : > { %v1161_v18 = vpop.f32.mrf.mxu1 }
 0x114   : > { %v1134_v19 = vpop.f32.mrf.mxu0  ;;  %v831_v48 = vadd.f32 %v1160_v34, %v1132_v33 }
 0x115   : > { %v1162_v20 = vpop.f32.mrf.mxu1  ;;  %v1135_v27 = vadd.f32 %v1134_v19, %v1133_v17 }
 0x116   : > { %v1136_v21 = vpop.f32.mrf.mxu0  ;;  %v1163_v28 = vadd.f32 %v1162_v20, %v1161_v18 }
 0x117   : > { %v1164_v22 = vpop.f32.mrf.mxu1 }
 0x118   : > { %v1137_v23 = vpop.f32.mrf.mxu0  ;;  %v836_v37 = vadd.f32 %v1163_v28, %v1135_v27 }
 0x119   : > { %v1165_v26 = vpop.f32.mrf.mxu1  ;;  %v1138_v38 = vadd.f32 %v1137_v23, %v1136_v21 }
 0x11a   : > { %v1166_v39 = vadd.f32 %v1165_v26, %v1164_v22 }
 0x11c   : > { %v839_v52 = vadd.f32 %v1166_v39, %v1138_v38 }
 0x12a   : > { %v1183_v29 = vpop.f32.mrf.mxu0 }
 0x12b   : > { %v1189_v30 = vpop.f32.mrf.mxu1 }
 0x12c   : > { %v1184_v31 = vpop.f32.mrf.mxu0 }
 0x12d   : > { %v1185_v35 = vadd.f32 %v1184_v31, %v1183_v29  ;;  %v1190_v36 = vpop.f32.mrf.mxu1 }
 0x12e   : > { %v1191_v41 = vadd.f32 %v1190_v36, %v1189_v30  ;;  %v1186_v42 = vpop.f32.mrf.mxu0 }
 0x12f   : > { %v877_v43 = vadd.f32 %v1185_v35, %v828_v32  ;;  %v1192_v45 = vpop.f32.mrf.mxu1 }
 0x130   : > { %v885_v46 = vadd.f32 %v1191_v41, %v836_v37  ;;  %v1187_v47 = vpop.f32.mrf.mxu0 }
 0x131   : > { %v891_v49 = vadd.f32 %v877_v43, %v284_v40  ;;  %v1188_v50 = vadd.f32 %v1187_v47, %v1186_v42  ;;  %v1193_v51 = vpop.f32.mrf.mxu1 }
 0x132   : > { %v893_v53 = vadd.f32 %v885_v46, %v286_v44  ;;  %v1194_v55 = vadd.f32 %v1193_v51, %v1192_v45 }
 0x133   : > { %895 = vst [vmem:[%s1554_s5] sm:$0xff] %v891_v49  ;;  %v880_v56 = vadd.f32 %v1188_v50, %v831_v48 }
 0x134   : > { %897 = vst [vmem:[%s1554_s5 + $0x10] sm:$0xff] %v893_v53  ;;  %v888_v58 = vadd.f32 %v1194_v55, %v839_v52  ;;  %902 = sbr.rel (%p1106_p10) target bundleno = 375 (0x177), region = 71 }
 0x135   : > { %v892_v59 = vadd.f32 %v880_v56, %v285_v54 }
 0x136   : > { %v894_v60 = vadd.f32 %v888_v58, %v287_v57 }
 0x137   : > { %896 = vst [vmem:[%s1554_s5 + $0x8] sm:$0xff] %v892_v59 }
 0x138   : > { %898 = vst [vmem:[%s1554_s5 + $0x18] sm:$0xff] %v894_v60 }
 0x139   : > { %v918_v0 = vlaneseq  ;;  %v1107_v1 = vld [vmem:[%s1551_s2] ss:$0 sm:$0xff] }
 0x13a   : > { %v903_v61 = vld [vmem:[%s1554_s5] sm:$0xff] }
 0x13b   : > { %v905_v63 = vld [vmem:[%s1554_s5 + $0x10] sm:$0xff]  ;;  %v914_v2 = vadd.f32 %v1107_v1, %v903_v61  ;;  %v919_v4 = vshrl.u32 %v918_v0, 7  ;;  %v958_v33 = vld [vmem:[%s1552_s3] sm:$0x1] }
 0x13c   : > { %v916_v5 = vadd.f32 %v1107_v1, %v905_v63  ;;  %v962_v38 = vld [vmem:[%s1553_s4] sm:$0x1] }
 0x13d   : > { %v921_v6 = vadd.s32 16, %v919_v4  ;;  %v940_v8 = vmul.f32 %v914_v2, %v914_v2  ;;  %v968_v34 = vsub.s32 0, %v919_v4 }
 0x13e   : > { %v904_v62 = vld [vmem:[%s1554_s5 + $0x8] sm:$0xff] }
 0x13f   : > { %v915_v3 = vadd.f32 %v1107_v1, %v904_v62  ;;  %vm925_vm0 = vcmp.lt.s32.totalorder %v921_v6, 18  ;;  %v906_v35 = vld [vmem:[%s1554_s5 + $0x18] sm:$0xff] }
 0x140   : > { %v929_v11 = vsel %vm925_vm0, %v916_v5, 0.0  ;;  %v917_v39 = vadd.f32 %v1107_v1, %v906_v35 }
 0x141   : > { %v931_v7 = vadd.f32 %v915_v3, %v914_v2  ;;  %v941_v9 = vmul.f32 %v915_v3, %v915_v3  ;;  %v942_v13 = vmul.f32 %v929_v11, %v929_v11 }
 0x143   : > { %v944_v10 = vadd.f32 %v941_v9, %v940_v8  ;;  %v932_v12 = vadd.f32 %v931_v7, %v929_v11 }
 0x145   : > { %v934_v14 = vrot.slane %v932_v12, 4  ;;  %v945_v15 = vadd.f32 %v944_v10, %v942_v13 }
 0x147   : > { %v935_v16 = vadd.f32 %v934_v14, %v932_v12  ;;  %v947_v17 = vrot.slane %v945_v15, 4 }
 0x149   : > { %v936_v18 = vrot.slane %v935_v16, 2  ;;  %v948_v19 = vadd.f32 %v947_v17, %v945_v15 }
 0x14b   : > { %v937_v20 = vadd.f32 %v936_v18, %v935_v16  ;;  %v949_v21 = vrot.slane %v948_v19, 2 }
 0x14d   : > { %v938_v22 = vrot.slane %v937_v20, 1  ;;  %v950_v23 = vadd.f32 %v949_v21, %v948_v19 }
 0x14f   : > { %v939_v24 = vadd.f32 %v938_v22, %v937_v20  ;;  %v951_v25 = vrot.slane %v950_v23, 1 }
 0x151   : > { %v952_v26 = vadd.f32 %v951_v25, %v950_v23  ;;  %v953_v27 = vmul.f32 0.055555556, %v939_v24 }
 0x153   : > { %v954_v28 = vmul.f32 0.055555556, %v952_v26  ;;  %v955_v29 = vmul.f32 %v953_v27, %v953_v27 }
 0x155   : > { %v956_v30 = vsub.f32 %v954_v28, %v955_v29 }
 0x157   : > { %v957_v31 = vmax.f32 %v956_v30, 0.0 }
 0x159   : > { %v959_v32 = vadd.f32 1e-05, %v957_v31 }
 0x15b   : > { %1304 = vrsqrt.f32 %v959_v32 }
 0x168   : > { %v1305_v36 = vpop.eup %1304 }
 0x169   : > { %v961_v37 = vmul.f32 %v1305_v36, %v958_v33 }
 0x16b   : > { %v963_v40 = vmul.f32 %v961_v37, %v953_v27  ;;  %v969_v41 = vrot.slane %v961_v37, %v968_v34 }
 0x16d   : > { %v964_v42 = vsub.f32 %v962_v38, %v963_v40  ;;  %v971_v43 = vmul.f32 %v969_v41, %v914_v2  ;;  %v972_v44 = vmul.f32 %v969_v41, %v915_v3  ;;  %v973_v45 = vmul.f32 %v969_v41, %v916_v5 }
 0x16e   : > { %v974_v46 = vmul.f32 %v969_v41, %v917_v39 }
 0x16f   : > { %v979_v47 = vrot.slane %v964_v42, %v968_v34 }
 0x171   : > { %v981_v48 = vadd.f32 %v979_v47, %v971_v43  ;;  %v982_v49 = vadd.f32 %v979_v47, %v972_v44  ;;  %v983_v50 = vadd.f32 %v979_v47, %v973_v45  ;;  %v984_v51 = vadd.f32 %v979_v47, %v974_v46 }
 0x173   : > { %v985_v52 = vmax.f32 %v981_v48, 0.0  ;;  %v986_v53 = vmax.f32 %v982_v49, 0.0  ;;  %v987_v54 = vmax.f32 %v983_v50, 0.0  ;;  %v988_v55 = vmax.f32 %v984_v51, 0.0 }
 0x175   : > { %989 = vst [vmem:[%s1554_s5] sm:$0xff] %v985_v52  ;;  %990 = vst [vmem:[%s1554_s5 + $0x8] sm:$0xff] %v986_v53 }
 0x176   : > { %991 = vst [vmem:[%s1554_s5 + $0x10] sm:$0xff] %v987_v54  ;;  %992 = vst [vmem:[%s1554_s5 + $0x18] sm:$0xff] %v988_v55 }
 0x177 PF: > { %p12_p11 = scmp.ge.s32.totalorder %s1380_s22, 5   ;;  %s1555_s18 = smov %s1324_s19 }
 0x178   : > { %s1556_s19 = smov %s1389_s25  ;;  %s1557_s20 = smov %s1380_s22 }
 0x179   :  { %14 = sbr.rel (!%p12_p11) target bundleno = 2 (0x2), region = 105 }

// kernel: _lambda_.17
= control target key start
LH: loop header
LB: loop body
LE: loop exit
PB: predicated region body
PF: predicated region fallthrough
CT: control target
= control target key end

     0   :  { %s855_s1 = inlined_call_operand.vmem [shape: bf16[512,128], index: 1, kind: input, shape index: {}]   ;;  %s856_s0 = inlined_call_operand.vmem [shape: bf16[32,512], index: 0, kind: input, shape index: {}]   ;;  %s857_s2 = inlined_call_operand.vmem [shape: f32[1,128], index: 2, kind: input, shape index: {}]   ;;  %s858_s3 = inlined_call_operand.vmem [shape: f32[1,128], index: 3, kind: input, shape index: {}]   ;;  %s859_s4 = inlined_call_operand.vmem [shape: f32[1,128], index: 4, kind: input, shape index: {}]   ;;  %s860_s5 = inlined_call_operand.vmem [shape: f32[32,128], index: 5, kind: output, shape index: {}]  }
   0x1   :  { %v638_v0 = vld [vmem:[%s855_s1 + $0x78] sm:$0xff]   ;;  %v642_v4 = vld [vmem:[%s855_s1 + $0x70] sm:$0xff]   ;;  %v646_v8 = vld [vmem:[%s855_s1 + $0x68] sm:$0xff]  }
   0x2   :  { %v639_v1 = vld [vmem:[%s855_s1 + $0xf8] sm:$0xff]   ;;  %581 = vmatprep.subr.bf16.mxu0 %v638_v0  ;;  %v643_v5 = vld [vmem:[%s855_s1 + $0xf0] sm:$0xff]   ;;  %v647_v9 = vld [vmem:[%s855_s1 + $0xe8] sm:$0xff]  }
   0x3   :  { %v640_v2 = vld [vmem:[%s855_s1 + $0x38] sm:$0xff]   ;;  %609 = vmatprep.subr.bf16.mxu1 %v639_v1  ;;  %v644_v6 = vld [vmem:[%s855_s1 + $0x30] sm:$0xff]   ;;  %v648_v10 = vld [vmem:[%s855_s1 + $0x28] sm:$0xff]  }
   0x4   :  { %v641_v3 = vld [vmem:[%s855_s1 + $0xb8] sm:$0xff]   ;;  %582 = vmatpush3.bf16.msra.mxu0 %v640_v2  ;;  %v645_v7 = vld [vmem:[%s855_s1 + $0xb0] sm:$0xff]   ;;  %v649_v11 = vld [vmem:[%s855_s1 + $0xa8] sm:$0xff]  }
   0x5   :  { %610 = vmatpush3.bf16.msra.mxu1 %v641_v3  ;;  %583 = vmatprep.subr.bf16.mxu0 %v642_v4  ;;  %v650_v12 = vld [vmem:[%s855_s1 + $0x60] sm:$0xff]   ;;  %v654_v16 = vld [vmem:[%s855_s1 + $0x58] sm:$0xff]   ;;  %v658_v20 = vld [vmem:[%s855_s1 + $0x50] sm:$0xff]  }
   0x6   :  { %611 = vmatprep.subr.bf16.mxu1 %v643_v5  ;;  %v651_v13 = vld [vmem:[%s855_s1 + $0xe0] sm:$0xff]   ;;  %v655_v17 = vld [vmem:[%s855_s1 + $0xd8] sm:$0xff]   ;;  %v659_v21 = vld [vmem:[%s855_s1 + $0xd0] sm:$0xff]  }
   0x7   :  { %v652_v14 = vld [vmem:[%s855_s1 + $0x20] sm:$0xff]   ;;  %v656_v18 = vld [vmem:[%s855_s1 + $0x18] sm:$0xff]   ;;  %v660_v22 = vld [vmem:[%s855_s1 + $0x10] sm:$0xff]  }
   0x8   :  { %584 = vmatpush3.bf16.msra.mxu0 %v644_v6  ;;  %v653_v15 = vld [vmem:[%s855_s1 + $0xa0] sm:$0xff]   ;;  %v657_v19 = vld [vmem:[%s855_s1 + $0x98] sm:$0xff]   ;;  %v661_v23 = vld [vmem:[%s855_s1 + $0x90] sm:$0xff]  }
   0x9   :  { %612 = vmatpush3.bf16.msra.mxu1 %v645_v7  ;;  %585 = vmatprep.subr.bf16.mxu0 %v646_v8  ;;  %v662_v24 = vld [vmem:[%s855_s1 + $0x48] sm:$0xff]   ;;  %v666_v28 = vld [vmem:[%s855_s1 + $0x40] sm:$0xff]  }
   0xa   :  { %613 = vmatprep.subr.bf16.mxu1 %v647_v9  ;;  %v663_v25 = vld [vmem:[%s855_s1 + $0xc8] sm:$0xff]   ;;  %v667_v29 = vld [vmem:[%s855_s1 + $0xc0] sm:$0xff]  }
   0xb   :  { %v664_v26 = vld [vmem:[%s855_s1 + $0x8] sm:$0xff]   ;;  %v668_v30 = vld [vmem:[%s855_s1] sm:$0xff]  }
   0xc   :  { %586 = vmatpush3.bf16.msra.mxu0 %v648_v10  ;;  %v665_v27 = vld [vmem:[%s855_s1 + $0x88] sm:$0xff]   ;;  %v669_v31 = vld [vmem:[%s855_s1 + $0x80] sm:$0xff]  }
   0xd   :  { %614 = vmatpush3.bf16.msra.mxu1 %v649_v11  ;;  %587 = vmatprep.subr.bf16.mxu0 %v650_v12  ;;  %v670_v32 = vld [vmem:[%s856_s0] ss:$16 sps:$4 sm:$0xff]   ;;  %v672_v33 = vld [vmem:[%s856_s0 + $0x4] ss:$16 sps:$4 sm:$0xff]   ;;  %v673_v34 = vld [vmem:[%s856_s0 + $0x8] ss:$16 sps:$4 sm:$0xff]  }
   0xe   :  { %615 = vmatprep.subr.bf16.mxu1 %v651_v13  ;;  %v675_v35 = vld [vmem:[%s856_s0 + $0xc] ss:$16 sps:$4 sm:$0xff]   ;;  %369 = vmatprep.mubr.bf16.mxu0 %v672_v33  ;;  %v676_v36 = vld [vmem:[%s856_s0 + $0x24] ss:$16 sps:$4 sm:$0xff]   ;;  %v680_v38 = vld [vmem:[%s856_s0 + $0x20] ss:$16 sps:$4 sm:$0xff]  }
   0xf   :  { %418 = vmatprep.mubr.bf16.mxu1 %v675_v35  ;;  %v678_v37 = vld [vmem:[%s856_s0 + $0x2c] ss:$16 sps:$4 sm:$0xff]   ;;  %v681_v39 = vld [vmem:[%s856_s0 + $0x28] ss:$16 sps:$4 sm:$0xff]   ;;  %v580_v62 = vld [vmem:[%s857_s2] ss:$0 sm:$0xff] }
  0x10   :  { %588 = vmatpush3.bf16.msra.mxu0 %v652_v14 }
  0x11   :  { %616 = vmatpush3.bf16.msra.mxu1 %v653_v15  ;;  %589 = vmatprep.subr.bf16.mxu0 %v654_v16 }
  0x12   :  { %617 = vmatprep.subr.bf16.mxu1 %v655_v17 }
  0x14   :  { %590 = vmatpush3.bf16.msra.mxu0 %v656_v18 }
  0x15   :  { %618 = vmatpush3.bf16.msra.mxu1 %v657_v19  ;;  %591 = vmatprep.subr.bf16.mxu0 %v658_v20 }
  0x16   :  { %619 = vmatprep.subr.bf16.mxu1 %v659_v21 }
  0x18   :  { %592 = vmatpush3.bf16.msra.mxu0 %v660_v22 }
  0x19   :  { %620 = vmatpush3.bf16.msra.mxu1 %v661_v23  ;;  %593 = vmatprep.subr.bf16.mxu0 %v662_v24 }
  0x1a   :  { %621 = vmatprep.subr.bf16.mxu1 %v663_v25 }
  0x1c   :  { %594 = vmatpush3.bf16.msra.mxu0 %v664_v26 }
  0x1d   :  { %622 = vmatpush3.bf16.msra.mxu1 %v665_v27  ;;  %595 = vmatprep.subr.bf16.mxu0 %v666_v28 }
  0x1e   :  { %623 = vmatprep.subr.bf16.mxu1 %v667_v29 }
  0x20   :  { %596 = vmatpush3.bf16.msra.mxu0 %v668_v30 }
  0x21   :  { %624 = vmatpush3.bf16.msra.mxu1 %v669_v31 }
  0x23   :  { %370 = vmatmul.mubr.bf16.vlgmr.msra.gmra.mxu0 %v670_v32 }
  0x24   :  { %419 = vmatmul.mubr.bf16.vlgmr.msra.gmra.mxu1 %v673_v34  ;;  %377 = vmatprep.mubr.bf16.mxu0 %v676_v36 }
  0x25   :  { %426 = vmatprep.mubr.bf16.mxu1 %v678_v37  ;;  %v509_v37 = vlaneseq }
  0x2b   :  { %378 = vmatmul.mubr.bf16.gmra.mxu0 %v680_v38  ;;  %v510_v38 = vshrl.u32 %v509_v37, 7 }
  0x2c   :  { %427 = vmatmul.mubr.bf16.gmra.mxu1 %v681_v39  ;;  %v501_v39 = vld [vmem:[%s858_s3] sm:$0x1] }
  0xe3   :  { %v597_v40 = vpop.f32.mrf.mxu0 }
  0xe4   :  { %v625_v41 = vpop.f32.mrf.mxu1 }
  0xe5   :  { %v598_v42 = vpop.f32.mrf.mxu0 }
  0xe6   :  { %v626_v43 = vpop.f32.mrf.mxu1  ;;  %v599_v44 = vadd.f32 %v598_v42, %v597_v40  ;;  %v511_v40 = vsub.s32 0, %v510_v38 }
  0xe7   :  { %v627_v45 = vadd.f32 %v626_v43, %v625_v41  ;;  %v600_v46 = vpop.f32.mrf.mxu0  ;;  %v505_v43 = vld [vmem:[%s859_s4] sm:$0x1] }
  0xe8   :  { %v628_v47 = vpop.f32.mrf.mxu1 }
  0xe9   :  { %v601_v48 = vpop.f32.mrf.mxu0  ;;  %v421_v51 = vadd.f32 %v627_v45, %v599_v44 }
  0xea   :  { %v602_v49 = vadd.f32 %v601_v48, %v600_v46  ;;  %v629_v50 = vpop.f32.mrf.mxu1 }
  0xeb   :  { %v630_v52 = vadd.f32 %v629_v50, %v628_v47  ;;  %v603_v53 = vpop.f32.mrf.mxu0  ;;  %v457_v5 = vadd.f32 %v580_v62, %v421_v51 }
  0xec   :  { %v631_v54 = vpop.f32.mrf.mxu1 }
  0xed   :  { %v424_v55 = vadd.f32 %v630_v52, %v602_v49  ;;  %v604_v56 = vpop.f32.mrf.mxu0  ;;  %v483_v10 = vmul.f32 %v457_v5, %v457_v5 }
  0xee   :  { %v605_v57 = vadd.f32 %v604_v56, %v603_v53  ;;  %v632_v58 = vpop.f32.mrf.mxu1 }
  0xef   :  { %v633_v59 = vadd.f32 %v632_v58, %v631_v54  ;;  %v606_v60 = vpop.f32.mrf.mxu0  ;;  %v458_v1 = vadd.f32 %v580_v62, %v424_v55 }
  0xf0   :  { %v634_v61 = vpop.f32.mrf.mxu1 }
  0xf1   :  { %v429_v63 = vadd.f32 %v633_v59, %v605_v57  ;;  %v607_v0 = vpop.f32.mrf.mxu0  ;;  %v484_v8 = vmul.f32 %v458_v1, %v458_v1  ;;  %v474_v9 = vadd.f32 %v458_v1, %v457_v5 }
  0xf2   :  { %v608_v2 = vadd.f32 %v607_v0, %v606_v60  ;;  %v635_v3 = vpop.f32.mrf.mxu1 }
  0xf3   :  { %v636_v4 = vadd.f32 %v635_v3, %v634_v61  ;;  %v459_v7 = vadd.f32 %v580_v62, %v429_v63  ;;  %v487_v14 = vadd.f32 %v484_v8, %v483_v10 }
  0xf5   :  { %v432_v6 = vadd.f32 %v636_v4, %v608_v2  ;;  %v485_v11 = vmul.f32 %v459_v7, %v459_v7  ;;  %v475_v13 = vadd.f32 %v474_v9, %v459_v7 }
  0xf7   :  { %v460_v12 = vadd.f32 %v580_v62, %v432_v6  ;;  %v488_v17 = vadd.f32 %v487_v14, %v485_v11 }
  0xf9   :  { %v476_v15 = vadd.f32 %v475_v13, %v460_v12  ;;  %v486_v16 = vmul.f32 %v460_v12, %v460_v12 }
  0xfb   :  { %v477_v18 = vrot.slane %v476_v15, 4  ;;  %v489_v19 = vadd.f32 %v488_v17, %v486_v16 }
  0xfd   :  { %v478_v20 = vadd.f32 %v477_v18, %v476_v15  ;;  %v490_v21 = vrot.slane %v489_v19, 4 }
  0xff   :  { %v479_v22 = vrot.slane %v478_v20, 2  ;;  %v491_v23 = vadd.f32 %v490_v21, %v489_v19 }
 0x101   :  { %v480_v24 = vadd.f32 %v479_v22, %v478_v20  ;;  %v492_v25 = vrot.slane %v491_v23, 2 }
 0x103   :  { %v481_v26 = vrot.slane %v480_v24, 1  ;;  %v493_v27 = vadd.f32 %v492_v25, %v491_v23 }
 0x105   :  { %v482_v28 = vadd.f32 %v481_v26, %v480_v24  ;;  %v494_v29 = vrot.slane %v493_v27, 1 }
 0x107   :  { %v495_v30 = vadd.f32 %v494_v29, %v493_v27  ;;  %v496_v31 = vmul.f32 0.03125, %v482_v28 }
 0x109   :  { %v497_v32 = vmul.f32 0.03125, %v495_v30  ;;  %v498_v33 = vmul.f32 %v496_v31, %v496_v31 }
 0x10b   :  { %v499_v34 = vsub.f32 %v497_v32, %v498_v33 }
 0x10d   :  { %v500_v35 = vmax.f32 %v499_v34, 0.0 }
 0x10f   :  { %v502_v36 = vadd.f32 1e-05, %v500_v35 }
 0x111   :  { %682 = vrsqrt.f32 %v502_v36 }
 0x11e   :  { %v683_v41 = vpop.eup %682 }
 0x11f   :  { %v504_v42 = vmul.f32 %v683_v41, %v501_v39 }
 0x121   :  { %v506_v44 = vmul.f32 %v504_v42, %v496_v31  ;;  %v512_v45 = vrot.slane %v504_v42, %v511_v40 }
 0x123   :  { %v507_v46 = vsub.f32 %v505_v43, %v506_v44  ;;  %v514_v47 = vmul.f32 %v512_v45, %v457_v5  ;;  %v515_v48 = vmul.f32 %v512_v45, %v458_v1  ;;  %v516_v49 = vmul.f32 %v512_v45, %v459_v7 }
 0x124   :  { %v517_v50 = vmul.f32 %v512_v45, %v460_v12 }
 0x125   :  { %v522_v51 = vrot.slane %v507_v46, %v511_v40 }
 0x127   :  { %v524_v52 = vadd.f32 %v522_v51, %v514_v47  ;;  %v525_v53 = vadd.f32 %v522_v51, %v515_v48  ;;  %v526_v54 = vadd.f32 %v522_v51, %v516_v49  ;;  %v527_v55 = vadd.f32 %v522_v51, %v517_v50 }
 0x129   :  { %v528_v56 = vmax.f32 %v524_v52, 0.0  ;;  %v529_v57 = vmax.f32 %v525_v53, 0.0  ;;  %v530_v58 = vmax.f32 %v526_v54, 0.0  ;;  %v531_v59 = vmax.f32 %v527_v55, 0.0 }
 0x12b   :  { %532 = vst [vmem:[%s860_s5] sm:$0xff] %v528_v56  ;;  %533 = vst [vmem:[%s860_s5 + $0x8] sm:$0xff] %v529_v57 }
 0x12c   :  { %534 = vst [vmem:[%s860_s5 + $0x10] sm:$0xff] %v530_v58  ;;  %535 = vst [vmem:[%s860_s5 + $0x18] sm:$0xff] %v531_v59 }

// kernel: _lambda_.18
= control target key start
LH: loop header
LB: loop body
LE: loop exit
PB: predicated region body
PF: predicated region fallthrough
CT: control target
= control target key end

     0   :  { %v1027_v0 = vmov 0.0   ;;  %vm1028_vm0 = vmmov 0   ;;  %s1355_s1 = inlined_call_operand.vmem [shape: bf16[384,128], index: 1, kind: input, shape index: {}]   ;;  %s1356_s0 = inlined_call_operand.vmem [shape: bf16[112,384], index: 0, kind: input, shape index: {}]   ;;  %s1357_s2 = inlined_call_operand.vmem [shape: f32[1,128], index: 2, kind: input, shape index: {}]   ;;  %s1358_s3 = inlined_call_operand.vmem [shape: f32[1,128], index: 3, kind: input, shape index: {}]   ;;  %s1359_s4 = inlined_call_operand.vmem [shape: f32[1,128], index: 4, kind: input, shape index: {}]   ;;  %s1360_s5 = inlined_call_operand.vmem [shape: f32[112,128], index: 5, kind: output, shape index: {}]  }
   0x1   :  { %927 = vmatprep.subr.bf16.mxu1 %v1027_v0  ;;  %v973_v1 = vld [vmem:[%s1355_s1 + $0x78] sm:$0xff]   ;;  %943 = vmatprep.mubr.msk.bf16.mxu1 %vm1028_vm0, %v1027_v0  ;;  %v976_v4 = vld [vmem:[%s1355_s1 + $0x70] sm:$0xff]   ;;  %v979_v7 = vld [vmem:[%s1355_s1 + $0x68] sm:$0xff]  }
   0x2   :  { %v974_v2 = vld [vmem:[%s1355_s1 + $0xb8] sm:$0xff]   ;;  %854 = vmatprep.subr.bf16.mxu0 %v973_v1  ;;  %v977_v5 = vld [vmem:[%s1355_s1 + $0xb0] sm:$0xff]   ;;  %v980_v8 = vld [vmem:[%s1355_s1 + $0xa8] sm:$0xff]  }
   0x3   :  { %v975_v3 = vld [vmem:[%s1355_s1 + $0x38] sm:$0xff]   ;;  %928 = vmatpush3.bf16.msra.mxu1 %v974_v2  ;;  %v978_v6 = vld [vmem:[%s1355_s1 + $0x30] sm:$0xff]   ;;  %v981_v9 = vld [vmem:[%s1355_s1 + $0x28] sm:$0xff]  }
   0x4   :  { %855 = vmatpush3.bf16.msra.mxu0 %v975_v3  ;;  %929 = vmatprep.subr.bf16.mxu1 %v1027_v0  ;;  %v982_v10 = vld [vmem:[%s1355_s1 + $0x60] sm:$0xff]   ;;  %v985_v13 = vld [vmem:[%s1355_s1 + $0x58] sm:$0xff]   ;;  %v988_v16 = vld [vmem:[%s1355_s1 + $0x50] sm:$0xff]  }
   0x5   :  { %856 = vmatprep.subr.bf16.mxu0 %v976_v4  ;;  %v983_v11 = vld [vmem:[%s1355_s1 + $0xa0] sm:$0xff]   ;;  %v986_v14 = vld [vmem:[%s1355_s1 + $0x98] sm:$0xff]   ;;  %v989_v17 = vld [vmem:[%s1355_s1 + $0x90] sm:$0xff]  }
   0x6   :  { %v984_v12 = vld [vmem:[%s1355_s1 + $0x20] sm:$0xff]   ;;  %v987_v15 = vld [vmem:[%s1355_s1 + $0x18] sm:$0xff]   ;;  %v990_v18 = vld [vmem:[%s1355_s1 + $0x10] sm:$0xff]  }
   0x7   :  { %930 = vmatpush3.bf16.msra.mxu1 %v977_v5  ;;  %v991_v19 = vld [vmem:[%s1355_s1 + $0x48] sm:$0xff]   ;;  %v994_v22 = vld [vmem:[%s1355_s1 + $0x40] sm:$0xff]   ;;  %v1008_v33 = vld [vmem:[%s1356_s0 + $0x30] ss:$12 sps:$4 sm:$0xff]  }
   0x8   :  { %857 = vmatpush3.bf16.msra.mxu0 %v978_v6  ;;  %931 = vmatprep.subr.bf16.mxu1 %v1027_v0  ;;  %v992_v20 = vld [vmem:[%s1355_s1 + $0x88] sm:$0xff]   ;;  %v999_v23 = vld [vmem:[%s1356_s0 + $0x4] ss:$12 sps:$4 sm:$0xff]   ;;  %v1005_v31 = vld [vmem:[%s1356_s0 + $0x34] ss:$12 sps:$4 sm:$0xff]  }
   0x9   :  { %858 = vmatprep.subr.bf16.mxu0 %v979_v7  ;;  %v993_v21 = vld [vmem:[%s1355_s1 + $0x8] sm:$0xff]   ;;  %v995_v24 = vld [vmem:[%s1355_s1 + $0x80] sm:$0xff]   ;;  %417 = vmatprep.mubr.bf16.mxu0 %v999_v23  ;;  %v1011_v35 = vld [vmem:[%s1356_s0 + $0x50] ss:$12 sps:$4 sm:$0xff]  }
   0xa   :  { %v996_v25 = vld [vmem:[%s1355_s1] sm:$0xff]   ;;  %v1000_v26 = vld [vmem:[%s1356_s0 + $0x8] ss:$12 sps:$4 sm:$0xff]   ;;  %v1009_v34 = vld [vmem:[%s1356_s0 + $0x4c] ss:$12 sps:$4 sm:$0xff]  }
   0xb   :  { %932 = vmatpush3.bf16.msra.mxu1 %v980_v8  ;;  %v997_v27 = vld [vmem:[%s1356_s0] ss:$12 sps:$4 sm:$0xff]   ;;  %v1001_v28 = vld [vmem:[%s1356_s0 + $0x1c] ss:$12 sps:$4 sm:$0xff]   ;;  %v1004_v30 = vld [vmem:[%s1356_s0 + $0x18] ss:$12 sps:$4 sm:$0xff]  }
   0xc   :  { %859 = vmatpush3.bf16.msra.mxu0 %v981_v9  ;;  %933 = vmatprep.subr.bf16.mxu1 %v1027_v0  ;;  %v1003_v29 = vld [vmem:[%s1356_s0 + $0x20] ss:$12 sps:$4 sm:$0xff]   ;;  %v1007_v32 = vld [vmem:[%s1356_s0 + $0x38] ss:$12 sps:$4 sm:$0xff]   ;;  %v1012_v36 = vld [vmem:[%s1356_s0 + $0x48] ss:$12 sps:$4 sm:$0xff]  }
   0xd   :  { %860 = vmatprep.subr.bf16.mxu0 %v982_v10  ;;  %v1013_v37 = vld [vmem:[%s1356_s0 + $0x64] ss:$12 sps:$4 sm:$0xff]   ;;  %v1015_v38 = vld [vmem:[%s1356_s0 + $0x68] ss:$12 sps:$4 sm:$0xff]   ;;  %v1016_v39 = vld [vmem:[%s1356_s0 + $0x60] ss:$12 sps:$4 sm:$0xff]  }
   0xe   :  { %v1017_v40 = vld [vmem:[%s1356_s0 + $0x7c] ss:$12 sps:$4 sm:$0xff]   ;;  %v1019_v41 = vld [vmem:[%s1356_s0 + $0x80] ss:$12 sps:$4 sm:$0xff]   ;;  %v1020_v42 = vld [vmem:[%s1356_s0 + $0x78] ss:$12 sps:$4 sm:$0xff]  }
   0xf   :  { %934 = vmatpush3.bf16.msra.mxu1 %v983_v11  ;;  %v1021_v43 = vld [vmem:[%s1356_s0 + $0x94] ss:$12 sps:$4 sm:$0xff]   ;;  %v1023_v44 = vld [vmem:[%s1356_s0 + $0x98] ss:$12 sps:$4 sm:$0xff]   ;;  %v1024_v45 = vld [vmem:[%s1356_s0 + $0x90] ss:$12 sps:$4 sm:$0xff]  }
  0x10   :  { %861 = vmatpush3.bf16.msra.mxu0 %v984_v12  ;;  %935 = vmatprep.subr.bf16.mxu1 %v1027_v0  ;;  %v1219_v23 = vld [vmem:[%s1357_s2] ss:$0 sm:$0xff] }
  0x11   :  { %862 = vmatprep.subr.bf16.mxu0 %v985_v13 }
  0x13   :  { %936 = vmatpush3.bf16.msra.mxu1 %v986_v14 }
  0x14   :  { %863 = vmatpush3.bf16.msra.mxu0 %v987_v15  ;;  %937 = vmatprep.subr.bf16.mxu1 %v1027_v0 }
  0x15   :  { %864 = vmatprep.subr.bf16.mxu0 %v988_v16 }
  0x17   :  { %938 = vmatpush3.bf16.msra.mxu1 %v989_v17 }
  0x18   :  { %865 = vmatpush3.bf16.msra.mxu0 %v990_v18  ;;  %939 = vmatprep.subr.bf16.mxu1 %v1027_v0 }
  0x19   :  { %866 = vmatprep.subr.bf16.mxu0 %v991_v19 }
  0x1b   :  { %940 = vmatpush3.bf16.msra.mxu1 %v992_v20 }
  0x1c   :  { %867 = vmatpush3.bf16.msra.mxu0 %v993_v21  ;;  %941 = vmatprep.subr.bf16.mxu1 %v1027_v0 }
  0x1d   :  { %868 = vmatprep.subr.bf16.mxu0 %v994_v22 }
  0x1f   :  { %942 = vmatpush3.bf16.msra.mxu1 %v995_v24 }
  0x20   :  { %869 = vmatpush3.bf16.msra.mxu0 %v996_v25 }
  0x22   :  { %944 = vmatmul.mubr.bf16.vlgmr.msra.gmra.mxu1 %v1000_v26 }
  0x23   :  { %418 = vmatmul.mubr.bf16.vlgmr.msra.gmra.mxu0 %v997_v27  ;;  %947 = vmatprep.mubr.msk.bf16.mxu1 %vm1028_vm0, %v1027_v0 }
  0x24   :  { %425 = vmatprep.mubr.bf16.mxu0 %v1001_v28 }
  0x2a   :  { %948 = vmatmul.mubr.bf16.gmra.mxu1 %v1003_v29 }
  0x2b   :  { %426 = vmatmul.mubr.bf16.gmra.mxu0 %v1004_v30  ;;  %951 = vmatprep.mubr.msk.bf16.mxu1 %vm1028_vm0, %v1027_v0 }
  0x2c   :  { %433 = vmatprep.mubr.bf16.mxu0 %v1005_v31 }
  0x32   :  { %952 = vmatmul.mubr.bf16.gmra.mxu1 %v1007_v32 }
  0x33   :  { %434 = vmatmul.mubr.bf16.gmra.mxu0 %v1008_v33  ;;  %955 = vmatprep.mubr.msk.bf16.mxu1 %vm1028_vm0, %v1027_v0 }
  0x34   :  { %441 = vmatprep.mubr.bf16.mxu0 %v1009_v34 }
  0x3a   :  { %956 = vmatmul.mubr.bf16.gmra.mxu1 %v1011_v35 }
  0x3b   :  { %442 = vmatmul.mubr.bf16.gmra.mxu0 %v1012_v36  ;;  %959 = vmatprep.mubr.msk.bf16.mxu1 %vm1028_vm0, %v1027_v0 }
  0x3c   :  { %449 = vmatprep.mubr.bf16.mxu0 %v1013_v37 }
  0x42   :  { %960 = vmatmul.mubr.bf16.gmra.mxu1 %v1015_v38 }
  0x43   :  { %450 = vmatmul.mubr.bf16.gmra.mxu0 %v1016_v39  ;;  %963 = vmatprep.mubr.msk.bf16.mxu1 %vm1028_vm0, %v1027_v0 }
  0x44   :  { %457 = vmatprep.mubr.bf16.mxu0 %v1017_v40 }
  0x4a   :  { %964 = vmatmul.mubr.bf16.gmra.mxu1 %v1019_v41 }
  0x4b   :  { %458 = vmatmul.mubr.bf16.gmra.mxu0 %v1020_v42  ;;  %967 = vmatprep.mubr.msk.bf16.mxu1 %vm1028_vm0, %v1027_v0 }
  0x4c   :  { %465 = vmatprep.mubr.bf16.mxu0 %v1021_v43 }
  0x52   :  { %968 = vmatmul.mubr.bf16.gmra.mxu1 %v1023_v44 }
  0x53   :  { %466 = vmatmul.mubr.bf16.gmra.mxu0 %v1024_v45 }
  0xe2   :  { %v508_v46 = vpop.f32.mrf.mxu1 }
  0xe3   :  { %v870_v47 = vpop.f32.mrf.mxu0 }
  0xe4   :  { %v945_v48 = vpop.f32.mrf.mxu1 }
  0xe5   :  { %v871_v49 = vpop.f32.mrf.mxu0 }
  0xe6   :  { %v511_v50 = vpop.f32.mrf.mxu1  ;;  %v872_v5 = vadd.f32 %v871_v49, %v870_v47 }
  0xe7   :  { %v873_v51 = vpop.f32.mrf.mxu0 }
  0xe8   :  { %v946_v52 = vpop.f32.mrf.mxu1  ;;  %v509_v13 = vadd.f32 %v872_v5, %v508_v46 }
  0xe9   :  { %v874_v53 = vpop.f32.mrf.mxu0 }
  0xea   :  { %v516_v54 = vpop.f32.mrf.mxu1  ;;  %v875_v3 = vadd.f32 %v874_v53, %v873_v51  ;;  %v1225_v32 = vadd.f32 %v1219_v23, %v509_v13 }
  0xeb   :  { %v876_v55 = vpop.f32.mrf.mxu0 }
  0xec   :  { %v949_v56 = vpop.f32.mrf.mxu1  ;;  %v512_v10 = vadd.f32 %v875_v3, %v511_v50  ;;  %v691_v43 = vmul.f32 %v1225_v32, %v1225_v32 }
  0xed   :  { %v877_v57 = vpop.f32.mrf.mxu0 }
  0xee   :  { %v519_v58 = vpop.f32.mrf.mxu1  ;;  %v878_v7 = vadd.f32 %v877_v57, %v876_v55  ;;  %v1222_v28 = vadd.f32 %v1219_v23, %v512_v10 }
  0xef   :  { %v879_v59 = vpop.f32.mrf.mxu0 }
  0xf0   :  { %v950_v60 = vpop.f32.mrf.mxu1  ;;  %v517_v15 = vadd.f32 %v878_v7, %v516_v54  ;;  %v692_v39 = vmul.f32 %v1222_v28, %v1222_v28  ;;  %v672_v51 = vadd.f32 %v1222_v28, %v1225_v32 }
  0xf1   :  { %v880_v61 = vpop.f32.mrf.mxu0 }
  0xf2   :  { %v524_v62 = vpop.f32.mrf.mxu1  ;;  %v881_v11 = vadd.f32 %v880_v61, %v879_v59  ;;  %v1228_v34 = vadd.f32 %v1219_v23, %v517_v15  ;;  %v705_v55 = vadd.f32 %v692_v39, %v691_v43 }
  0xf3   :  { %v882_v63 = vpop.f32.mrf.mxu0 }
  0xf4   :  { %v953_v0 = vpop.f32.mrf.mxu1  ;;  %v520_v19 = vadd.f32 %v881_v11, %v519_v58  ;;  %v693_v45 = vmul.f32 %v1228_v34, %v1228_v34  ;;  %v673_v58 = vadd.f32 %v672_v51, %v1228_v34 }
  0xf5   :  { %v883_v1 = vpop.f32.mrf.mxu0 }
  0xf6   :  { %v527_v2 = vpop.f32.mrf.mxu1  ;;  %v884_v16 = vadd.f32 %v883_v1, %v882_v63  ;;  %v1233_v40 = vadd.f32 %v1219_v23, %v520_v19 }
  0xf7   :  { %v885_v4 = vpop.f32.mrf.mxu0 }
  0xf8   :  { %v954_v6 = vpop.f32.mrf.mxu1  ;;  %v525_v24 = vadd.f32 %v884_v16, %v524_v62  ;;  %v694_v54 = vmul.f32 %v1233_v40, %v1233_v40  ;;  %v706_v62 = vadd.f32 %v705_v55, %v693_v45  ;;  %v674_v1 = vadd.f32 %v673_v58, %v1233_v40 }
  0xf9   :  { %v886_v8 = vpop.f32.mrf.mxu0 }
  0xfa   :  { %v532_v9 = vpop.f32.mrf.mxu1  ;;  %v887_v20 = vadd.f32 %v886_v8, %v885_v4  ;;  %v1240_v46 = vadd.f32 %v1219_v23, %v525_v24  ;;  %v707_v5 = vadd.f32 %v706_v62, %v694_v54 }
  0xfb   :  { %v888_v12 = vpop.f32.mrf.mxu0 }
  0xfc   :  { %v957_v14 = vpop.f32.mrf.mxu1  ;;  %v528_v29 = vadd.f32 %v887_v20, %v527_v2  ;;  %v695_v61 = vmul.f32 %v1240_v46, %v1240_v46  ;;  %v675_v8 = vadd.f32 %v674_v1, %v1240_v46 }
  0xfd   :  { %v889_v17 = vpop.f32.mrf.mxu0 }
  0xfe   :  { %v535_v18 = vpop.f32.mrf.mxu1  ;;  %v890_v25 = vadd.f32 %v889_v17, %v888_v12  ;;  %v1245_v52 = vadd.f32 %v1219_v23, %v528_v29  ;;  %v708_v12 = vadd.f32 %v707_v5, %v695_v61 }
  0xff   :  { %v891_v21 = vpop.f32.mrf.mxu0 }
 0x100   :  { %v958_v22 = vpop.f32.mrf.mxu1  ;;  %v533_v35 = vadd.f32 %v890_v25, %v532_v9  ;;  %v696_v4 = vmul.f32 %v1245_v52, %v1245_v52  ;;  %v676_v15 = vadd.f32 %v675_v8, %v1245_v52 }
 0x101   :  { %v892_v26 = vpop.f32.mrf.mxu0 }
 0x102   :  { %v540_v27 = vpop.f32.mrf.mxu1  ;;  %v893_v30 = vadd.f32 %v892_v26, %v891_v21  ;;  %v1251_v60 = vadd.f32 %v1219_v23, %v533_v35  ;;  %v709_v19 = vadd.f32 %v708_v12, %v696_v4 }
 0x103   :  { %v894_v31 = vpop.f32.mrf.mxu0 }
 0x104   :  { %v961_v33 = vpop.f32.mrf.mxu1  ;;  %v536_v41 = vadd.f32 %v893_v30, %v535_v18  ;;  %v697_v11 = vmul.f32 %v1251_v60, %v1251_v60  ;;  %v677_v22 = vadd.f32 %v676_v15, %v1251_v60 }
 0x105   :  { %v895_v36 = vpop.f32.mrf.mxu0 }
 0x106   :  { %v896_v37 = vadd.f32 %v895_v36, %v894_v31  ;;  %v543_v38 = vpop.f32.mrf.mxu1  ;;  %v1257_v3 = vadd.f32 %v1219_v23, %v536_v41  ;;  %v710_v26 = vadd.f32 %v709_v19, %v697_v11 }
 0x107   :  { %v897_v42 = vpop.f32.mrf.mxu0 }
 0x108   :  { %v962_v44 = vpop.f32.mrf.mxu1  ;;  %v541_v47 = vadd.f32 %v896_v37, %v540_v27  ;;  %v698_v18 = vmul.f32 %v1257_v3, %v1257_v3  ;;  %v678_v31 = vadd.f32 %v677_v22, %v1257_v3 }
 0x109   :  { %v898_v48 = vpop.f32.mrf.mxu0 }
 0x10a   :  { %v899_v49 = vadd.f32 %v898_v48, %v897_v42  ;;  %v548_v50 = vpop.f32.mrf.mxu1  ;;  %v1263_v10 = vadd.f32 %v1219_v23, %v541_v47  ;;  %v711_v36 = vadd.f32 %v710_v26, %v698_v18 }
 0x10b   :  { %v900_v53 = vpop.f32.mrf.mxu0 }
 0x10c   :  { %v544_v56 = vadd.f32 %v899_v49, %v543_v38  ;;  %v965_v57 = vpop.f32.mrf.mxu1  ;;  %v699_v25 = vmul.f32 %v1263_v10, %v1263_v10  ;;  %v679_v41 = vadd.f32 %v678_v31, %v1263_v10 }
 0x10d   :  { %v901_v59 = vpop.f32.mrf.mxu0 }
 0x10e   :  { %v902_v63 = vadd.f32 %v901_v59, %v900_v53  ;;  %v551_v0 = vpop.f32.mrf.mxu1  ;;  %v1269_v17 = vadd.f32 %v1219_v23, %v544_v56  ;;  %v712_v43 = vadd.f32 %v711_v36, %v699_v25 }
 0x10f   :  { %v903_v2 = vpop.f32.mrf.mxu0 }
 0x110   :  { %v549_v6 = vadd.f32 %v902_v63, %v548_v50  ;;  %v966_v7 = vpop.f32.mrf.mxu1  ;;  %v700_v35 = vmul.f32 %v1269_v17, %v1269_v17  ;;  %v680_v45 = vadd.f32 %v679_v41, %v1269_v17 }
 0x111   :  { %v904_v9 = vpop.f32.mrf.mxu0 }
 0x112   :  { %v905_v13 = vadd.f32 %v904_v9, %v903_v2  ;;  %v556_v14 = vpop.f32.mrf.mxu1  ;;  %v1277_v30 = vadd.f32 %v1219_v23, %v549_v6  ;;  %v713_v48 = vadd.f32 %v712_v43, %v700_v35 }
 0x113   :  { %v906_v16 = vpop.f32.mrf.mxu0 }
 0x114   :  { %v552_v20 = vadd.f32 %v905_v13, %v551_v0  ;;  %v969_v21 = vpop.f32.mrf.mxu1  ;;  %v701_v47 = vmul.f32 %v1277_v30, %v1277_v30  ;;  %v681_v51 = vadd.f32 %v680_v45, %v1277_v30 }
 0x115   :  { %v907_v24 = vpop.f32.mrf.mxu0  ;;  %v737_v21 = vlaneseq }
 0x116   :  { %v908_v27 = vadd.f32 %v907_v24, %v906_v16  ;;  %v559_v29 = vpop.f32.mrf.mxu1  ;;  %v1283_v39 = vadd.f32 %v1219_v23, %v552_v20  ;;  %v714_v56 = vadd.f32 %v713_v48, %v701_v47  ;;  %v729_v24 = vld [vmem:[%s1358_s3] sm:$0x1] }
 0x117   :  { %v909_v33 = vpop.f32.mrf.mxu0  ;;  %v738_v22 = vshrl.u32 %v737_v21, 7 }
 0x118   :  { %v557_v37 = vadd.f32 %v908_v27, %v556_v14  ;;  %v970_v38 = vpop.f32.mrf.mxu1  ;;  %v702_v53 = vmul.f32 %v1283_v39, %v1283_v39  ;;  %v682_v54 = vadd.f32 %v681_v51, %v1283_v39 }
 0x119   :  { %v910_v42 = vpop.f32.mrf.mxu0  ;;  %v739_v25 = vsub.s32 0, %v738_v22 }
 0x11a   :  { %v911_v44 = vadd.f32 %v910_v42, %v909_v33  ;;  %v627_v50 = vadd.f32 %v1219_v23, %v557_v37  ;;  %v715_v59 = vadd.f32 %v714_v56, %v702_v53 }
 0x11c   :  { %v560_v49 = vadd.f32 %v911_v44, %v559_v29  ;;  %v703_v55 = vmul.f32 %v627_v50, %v627_v50  ;;  %v683_v58 = vadd.f32 %v682_v54, %v627_v50  ;;  %v733_v29 = vld [vmem:[%s1359_s4] sm:$0x1] }
 0x11e   :  { %v628_v57 = vadd.f32 %v1219_v23, %v560_v49  ;;  %v716_v63 = vadd.f32 %v715_v59, %v703_v55 }
 0x120   :  { %v684_v61 = vadd.f32 %v683_v58, %v628_v57  ;;  %v704_v62 = vmul.f32 %v628_v57, %v628_v57 }
 0x122   :  { %v685_v0 = vrot.slane %v684_v61, 4  ;;  %v717_v1 = vadd.f32 %v716_v63, %v704_v62 }
 0x124   :  { %v686_v2 = vadd.f32 %v685_v0, %v684_v61  ;;  %v718_v4 = vrot.slane %v717_v1, 4 }
 0x126   :  { %v687_v5 = vrot.slane %v686_v2, 2  ;;  %v719_v6 = vadd.f32 %v718_v4, %v717_v1 }
 0x128   :  { %v688_v7 = vadd.f32 %v687_v5, %v686_v2  ;;  %v720_v8 = vrot.slane %v719_v6, 2 }
 0x12a   :  { %v689_v9 = vrot.slane %v688_v7, 1  ;;  %v721_v11 = vadd.f32 %v720_v8, %v719_v6 }
 0x12c   :  { %v690_v12 = vadd.f32 %v689_v9, %v688_v7  ;;  %v722_v13 = vrot.slane %v721_v11, 1 }
 0x12e   :  { %v723_v14 = vadd.f32 %v722_v13, %v721_v11  ;;  %v724_v15 = vmul.f32 0.008928572, %v690_v12 }
 0x130   :  { %v725_v23 = vmul.f32 0.008928572, %v723_v14  ;;  %v726_v16 = vmul.f32 %v724_v15, %v724_v15 }
 0x132   :  { %v727_v18 = vsub.f32 %v725_v23, %v726_v16 }
 0x134   :  { %v728_v19 = vmax.f32 %v727_v18, 0.0 }
 0x136   :  { %v730_v20 = vadd.f32 1e-05, %v728_v19 }
 0x138   :  { %1025 = vrsqrt.f32 %v730_v20 }
 0x145   :  { %v1026_v26 = vpop.eup %1025 }
 0x146   :  { %v732_v27 = vmul.f32 %v1026_v26, %v729_v24 }
 0x148   :  { %v734_v31 = vmul.f32 %v732_v27, %v724_v15  ;;  %v740_v33 = vrot.slane %v732_v27, %v739_v25 }
 0x14a   :  { %v735_v35 = vsub.f32 %v733_v29, %v734_v31  ;;  %v742_v36 = vmul.f32 %v740_v33, %v1225_v32  ;;  %v743_v37 = vmul.f32 %v740_v33, %v1222_v28  ;;  %v744_v38 = vmul.f32 %v740_v33, %v1228_v34 }
 0x14b   :  { %v745_v41 = vmul.f32 %v740_v33, %v1233_v40  ;;  %v746_v42 = vmul.f32 %v740_v33, %v1240_v46  ;;  %v747_v43 = vmul.f32 %v740_v33, %v1245_v52  ;;  %v748_v44 = vmul.f32 %v740_v33, %v1251_v60 }
 0x14c   :  { %v749_v45 = vmul.f32 %v740_v33, %v1257_v3  ;;  %v750_v47 = vmul.f32 %v740_v33, %v1263_v10  ;;  %v751_v48 = vmul.f32 %v740_v33, %v1269_v17  ;;  %v760_v49 = vrot.slane %v735_v35, %v739_v25 }
 0x14d   :  { %v752_v32 = vmul.f32 %v740_v33, %v1277_v30  ;;  %v753_v28 = vmul.f32 %v740_v33, %v1283_v39  ;;  %v754_v34 = vmul.f32 %v740_v33, %v627_v50  ;;  %v755_v51 = vmul.f32 %v740_v33, %v628_v57 }
 0x14e   :  { %v762_v40 = vadd.f32 %v760_v49, %v742_v36  ;;  %v763_v53 = vadd.f32 %v760_v49, %v743_v37  ;;  %v764_v46 = vadd.f32 %v760_v49, %v744_v38  ;;  %v765_v54 = vadd.f32 %v760_v49, %v745_v41 }
 0x14f   :  { %v766_v52 = vadd.f32 %v760_v49, %v746_v42  ;;  %v767_v55 = vadd.f32 %v760_v49, %v747_v43  ;;  %v768_v60 = vadd.f32 %v760_v49, %v748_v44  ;;  %v769_v56 = vadd.f32 %v760_v49, %v749_v45 }
 0x150   :  { %v770_v3 = vadd.f32 %v760_v49, %v750_v47  ;;  %v771_v58 = vadd.f32 %v760_v49, %v751_v48  ;;  %v772_v10 = vadd.f32 %v760_v49, %v752_v32  ;;  %v773_v59 = vadd.f32 %v760_v49, %v753_v28 }
 0x151   :  { %v774_v17 = vadd.f32 %v760_v49, %v754_v34  ;;  %v775_v61 = vadd.f32 %v760_v49, %v755_v51  ;;  %v776_v62 = vmax.f32 %v762_v40, 0.0  ;;  %v777_v30 = vmax.f32 %v763_v53, 0.0 }
 0x152   :  { %v778_v63 = vmax.f32 %v764_v46, 0.0  ;;  %v779_v39 = vmax.f32 %v765_v54, 0.0  ;;  %v780_v50 = vmax.f32 %v766_v52, 0.0  ;;  %v781_v57 = vmax.f32 %v767_v55, 0.0 }
 0x153   :  { %v782_v0 = vmax.f32 %v768_v60, 0.0  ;;  %v783_v1 = vmax.f32 %v769_v56, 0.0  ;;  %v784_v2 = vmax.f32 %v770_v3, 0.0  ;;  %v785_v4 = vmax.f32 %v771_v58, 0.0  ;;  %790 = vst [vmem:[%s1360_s5] sm:$0xff] %v776_v62  ;;  %791 = vst [vmem:[%s1360_s5 + $0x8] sm:$0xff] %v777_v30 }
 0x154   :  { %v786_v5 = vmax.f32 %v772_v10, 0.0  ;;  %v787_v6 = vmax.f32 %v773_v59, 0.0  ;;  %v788_v7 = vmax.f32 %v774_v17, 0.0  ;;  %v789_v8 = vmax.f32 %v775_v61, 0.0  ;;  %792 = vst [vmem:[%s1360_s5 + $0x10] sm:$0xff] %v778_v63  ;;  %793 = vst [vmem:[%s1360_s5 + $0x18] sm:$0xff] %v779_v39 }
 0x155   :  { %794 = vst [vmem:[%s1360_s5 + $0x20] sm:$0xff] %v780_v50  ;;  %795 = vst [vmem:[%s1360_s5 + $0x28] sm:$0xff] %v781_v57 }
 0x156   :  { %796 = vst [vmem:[%s1360_s5 + $0x30] sm:$0xff] %v782_v0  ;;  %797 = vst [vmem:[%s1360_s5 + $0x38] sm:$0xff] %v783_v1 }
 0x157   :  { %798 = vst [vmem:[%s1360_s5 + $0x40] sm:$0xff] %v784_v2  ;;  %799 = vst [vmem:[%s1360_s5 + $0x48] sm:$0xff] %v785_v4 }
 0x158   :  { %800 = vst [vmem:[%s1360_s5 + $0x50] sm:$0xff] %v786_v5  ;;  %801 = vst [vmem:[%s1360_s5 + $0x58] sm:$0xff] %v787_v6 }
 0x159   :  { %802 = vst [vmem:[%s1360_s5 + $0x60] sm:$0xff] %v788_v7  ;;  %803 = vst [vmem:[%s1360_s5 + $0x68] sm:$0xff] %v789_v8 }

// kernel: _lambda_.19
= control target key start
LH: loop header
LB: loop body
LE: loop exit
PB: predicated region body
PF: predicated region fallthrough
CT: control target
= control target key end

     0   :  { %v1615_v0 = vmov 0   ;;  %s2523_s1 = inlined_call_operand.vmem [shape: bf16[256,128], index: 1, kind: input, shape index: {}]   ;;  %s2524_s0 = inlined_call_operand.vmem [shape: bf16[368,256], index: 0, kind: input, shape index: {}]   ;;  %s2525_s2 = inlined_call_operand.vmem [shape: f32[1,128], index: 2, kind: input, shape index: {}]   ;;  %s2526_s3 = inlined_call_operand.vmem [shape: f32[1,128], index: 3, kind: input, shape index: {}]   ;;  %s2527_s4 = inlined_call_operand.vmem [shape: f32[1,128], index: 4, kind: input, shape index: {}]   ;;  %s2528_s5 = inlined_call_operand.vmem [shape: f32[368,128], index: 5, kind: output, shape index: {}]  }
   0x1   :  { %521 = vmatprep.subr.bf16.mxu0 %v1615_v0  ;;  %v1528_v1 = vld [vmem:[%s2523_s1 + $0x38] sm:$0xff]   ;;  %1494 = vmatprep.subr.bf16.mxu1 %v1615_v0  ;;  %v1529_v2 = vld [vmem:[%s2523_s1 + $0x30] sm:$0xff]   ;;  %v1530_v3 = vld [vmem:[%s2523_s1 + $0x28] sm:$0xff]  }
   0x2   :  { %522 = vmatpush1.bf16.msra.mxu0 %v1528_v1  ;;  %1510 = vmatpush1.bf16.msra.mxu1 %v1528_v1  ;;  %v1531_v4 = vld [vmem:[%s2523_s1 + $0x20] sm:$0xff]   ;;  %v1532_v5 = vld [vmem:[%s2523_s1 + $0x18] sm:$0xff]   ;;  %v1533_v7 = vld [vmem:[%s2523_s1 + $0x10] sm:$0xff]  }
   0x3   :  { %523 = vmatprep.subr.bf16.mxu0 %v1615_v0  ;;  %1495 = vmatprep.subr.bf16.mxu1 %v1615_v0  ;;  %v1546_v6 = vld [vmem:[%s2524_s0 + $0x4] ss:$8 sps:$4 sm:$0xff]   ;;  %v1536_v11 = vld [vmem:[%s2523_s1 + $0x78] sm:$0xff]   ;;  %v1537_v12 = vld [vmem:[%s2523_s1 + $0x70] sm:$0xff]  }
   0x4   :  { %553 = vmatprep.mubr.bf16.mxu0 %v1546_v6  ;;  %v1534_v8 = vld [vmem:[%s2523_s1 + $0x8] sm:$0xff]   ;;  %v1535_v10 = vld [vmem:[%s2523_s1] sm:$0xff]   ;;  %v1540_v15 = vld [vmem:[%s2523_s1 + $0x58] sm:$0xff]  }
   0x5   :  { %v1564_v9 = vld [vmem:[%s2524_s0 + $0xc4] ss:$8 sps:$4 sm:$0xff]   ;;  %v1541_v16 = vld [vmem:[%s2523_s1 + $0x50] sm:$0xff]   ;;  %v1544_v19 = vld [vmem:[%s2524_s0] ss:$8 sps:$4 sm:$0xff]  }
   0x6   :  { %524 = vmatpush1.bf16.msra.mxu0 %v1529_v2  ;;  %1511 = vmatpush1.bf16.msra.mxu1 %v1529_v2  ;;  %v1538_v13 = vld [vmem:[%s2523_s1 + $0x68] sm:$0xff]   ;;  %v1539_v14 = vld [vmem:[%s2523_s1 + $0x60] sm:$0xff]   ;;  %v1547_v21 = vld [vmem:[%s2524_s0 + $0x14] ss:$8 sps:$4 sm:$0xff]  }
   0x7   :  { %525 = vmatprep.subr.bf16.mxu0 %v1615_v0  ;;  %1496 = vmatprep.subr.bf16.mxu1 %v1615_v0  ;;  %v1542_v17 = vld [vmem:[%s2523_s1 + $0x48] sm:$0xff]   ;;  %v1543_v18 = vld [vmem:[%s2523_s1 + $0x40] sm:$0xff]   ;;  %v1568_v22 = vld [vmem:[%s2524_s0 + $0xd4] ss:$8 sps:$4 sm:$0xff]  }
   0x8   :  { %649 = vmatprep.mubr.bf16.mxu1 %v1564_v9  ;;  %v1562_v20 = vld [vmem:[%s2524_s0 + $0xc0] ss:$8 sps:$4 sm:$0xff]   ;;  %v1549_v23 = vld [vmem:[%s2524_s0 + $0x10] ss:$8 sps:$4 sm:$0xff]   ;;  %v1550_v25 = vld [vmem:[%s2524_s0 + $0x24] ss:$8 sps:$4 sm:$0xff]  }
   0x9   :  { %v1570_v24 = vld [vmem:[%s2524_s0 + $0xd0] ss:$8 sps:$4 sm:$0xff]   ;;  %v1574_v26 = vld [vmem:[%s2524_s0 + $0xe4] ss:$8 sps:$4 sm:$0xff]   ;;  %v1552_v27 = vld [vmem:[%s2524_s0 + $0x20] ss:$8 sps:$4 sm:$0xff]  }
   0xa   :  { %526 = vmatpush1.bf16.msra.mxu0 %v1530_v3  ;;  %1512 = vmatpush1.bf16.msra.mxu1 %v1530_v3  ;;  %v1576_v28 = vld [vmem:[%s2524_s0 + $0xe0] ss:$8 sps:$4 sm:$0xff]   ;;  %v1553_v29 = vld [vmem:[%s2524_s0 + $0x34] ss:$8 sps:$4 sm:$0xff]   ;;  %v1555_v31 = vld [vmem:[%s2524_s0 + $0x30] ss:$8 sps:$4 sm:$0xff]  }
   0xb   :  { %527 = vmatprep.subr.bf16.mxu0 %v1615_v0  ;;  %1497 = vmatprep.subr.bf16.mxu1 %v1615_v0  ;;  %v1580_v30 = vld [vmem:[%s2524_s0 + $0xf4] ss:$8 sps:$4 sm:$0xff]   ;;  %v1582_v32 = vld [vmem:[%s2524_s0 + $0xf0] ss:$8 sps:$4 sm:$0xff]   ;;  %v1556_v33 = vld [vmem:[%s2524_s0 + $0x44] ss:$8 sps:$4 sm:$0xff]  }
   0xc   :  { %v1586_v34 = vld [vmem:[%s2524_s0 + $0x104] ss:$8 sps:$4 sm:$0xff]   ;;  %v1558_v35 = vld [vmem:[%s2524_s0 + $0x40] ss:$8 sps:$4 sm:$0xff]   ;;  %v1559_v37 = vld [vmem:[%s2524_s0 + $0x54] ss:$8 sps:$4 sm:$0xff]  }
   0xd   :  { %v1588_v36 = vld [vmem:[%s2524_s0 + $0x100] ss:$8 sps:$4 sm:$0xff]   ;;  %v1592_v38 = vld [vmem:[%s2524_s0 + $0x114] ss:$8 sps:$4 sm:$0xff]   ;;  %v1561_v39 = vld [vmem:[%s2524_s0 + $0x50] ss:$8 sps:$4 sm:$0xff]  }
   0xe   :  { %528 = vmatpush1.bf16.msra.mxu0 %v1531_v4  ;;  %1513 = vmatpush1.bf16.msra.mxu1 %v1531_v4  ;;  %v1594_v40 = vld [vmem:[%s2524_s0 + $0x110] ss:$8 sps:$4 sm:$0xff]   ;;  %v1565_v41 = vld [vmem:[%s2524_s0 + $0x64] ss:$8 sps:$4 sm:$0xff]   ;;  %v1567_v43 = vld [vmem:[%s2524_s0 + $0x60] ss:$8 sps:$4 sm:$0xff]  }
   0xf   :  { %529 = vmatprep.subr.bf16.mxu0 %v1615_v0  ;;  %1498 = vmatprep.subr.bf16.mxu1 %v1615_v0  ;;  %v1598_v42 = vld [vmem:[%s2524_s0 + $0x124] ss:$8 sps:$4 sm:$0xff]   ;;  %v1600_v44 = vld [vmem:[%s2524_s0 + $0x120] ss:$8 sps:$4 sm:$0xff]   ;;  %v1571_v45 = vld [vmem:[%s2524_s0 + $0x74] ss:$8 sps:$4 sm:$0xff]  }
  0x10   :  { %v1601_v46 = vld [vmem:[%s2524_s0 + $0x134] ss:$8 sps:$4 sm:$0xff]   ;;  %v1573_v47 = vld [vmem:[%s2524_s0 + $0x70] ss:$8 sps:$4 sm:$0xff]   ;;  %v1577_v49 = vld [vmem:[%s2524_s0 + $0x84] ss:$8 sps:$4 sm:$0xff]  }
  0x11   :  { %v1603_v48 = vld [vmem:[%s2524_s0 + $0x130] ss:$8 sps:$4 sm:$0xff]   ;;  %v1604_v50 = vld [vmem:[%s2524_s0 + $0x144] ss:$8 sps:$4 sm:$0xff]   ;;  %v1579_v51 = vld [vmem:[%s2524_s0 + $0x80] ss:$8 sps:$4 sm:$0xff]  }
  0x12   :  { %530 = vmatpush1.bf16.msra.mxu0 %v1532_v5  ;;  %1514 = vmatpush1.bf16.msra.mxu1 %v1532_v5  ;;  %v1606_v52 = vld [vmem:[%s2524_s0 + $0x140] ss:$8 sps:$4 sm:$0xff]   ;;  %v1583_v53 = vld [vmem:[%s2524_s0 + $0x94] ss:$8 sps:$4 sm:$0xff]   ;;  %v1585_v55 = vld [vmem:[%s2524_s0 + $0x90] ss:$8 sps:$4 sm:$0xff]  }
  0x13   :  { %531 = vmatprep.subr.bf16.mxu0 %v1615_v0  ;;  %1499 = vmatprep.subr.bf16.mxu1 %v1615_v0  ;;  %v1607_v54 = vld [vmem:[%s2524_s0 + $0x154] ss:$8 sps:$4 sm:$0xff]   ;;  %v1609_v56 = vld [vmem:[%s2524_s0 + $0x150] ss:$8 sps:$4 sm:$0xff]   ;;  %v1589_v57 = vld [vmem:[%s2524_s0 + $0xa4] ss:$8 sps:$4 sm:$0xff]  }
  0x14   :  { %v1610_v58 = vld [vmem:[%s2524_s0 + $0x164] ss:$8 sps:$4 sm:$0xff]   ;;  %v1591_v59 = vld [vmem:[%s2524_s0 + $0xa0] ss:$8 sps:$4 sm:$0xff]   ;;  %v1595_v61 = vld [vmem:[%s2524_s0 + $0xb4] ss:$8 sps:$4 sm:$0xff]  }
  0x15   :  { %v1612_v60 = vld [vmem:[%s2524_s0 + $0x160] ss:$8 sps:$4 sm:$0xff]   ;;  %v1597_v62 = vld [vmem:[%s2524_s0 + $0xb0] ss:$8 sps:$4 sm:$0xff]  }
  0x16   :  { %532 = vmatpush1.bf16.msra.mxu0 %v1533_v7  ;;  %1515 = vmatpush1.bf16.msra.mxu1 %v1533_v7 }
  0x17   :  { %533 = vmatprep.subr.bf16.mxu0 %v1615_v0  ;;  %1500 = vmatprep.subr.bf16.mxu1 %v1615_v0 }
  0x1a   :  { %534 = vmatpush1.bf16.msra.mxu0 %v1534_v8  ;;  %1516 = vmatpush1.bf16.msra.mxu1 %v1534_v8 }
  0x1b   :  { %535 = vmatprep.subr.bf16.mxu0 %v1615_v0  ;;  %1501 = vmatprep.subr.bf16.mxu1 %v1615_v0 }
  0x1e   :  { %536 = vmatpush1.bf16.msra.mxu0 %v1535_v10  ;;  %1517 = vmatpush1.bf16.msra.mxu1 %v1535_v10 }
  0x1f   :  { %537 = vmatprep.subr.bf16.mxu0 %v1615_v0  ;;  %1502 = vmatprep.subr.bf16.mxu1 %v1615_v0 }
  0x22   :  { %538 = vmatpush2.bf16.msra.mxu0 %v1536_v11  ;;  %1518 = vmatpush2.bf16.msra.mxu1 %v1536_v11 }
  0x23   :  { %539 = vmatprep.subr.bf16.mxu0 %v1615_v0  ;;  %1503 = vmatprep.subr.bf16.mxu1 %v1615_v0 }
  0x26   :  { %540 = vmatpush2.bf16.msra.mxu0 %v1537_v12  ;;  %1519 = vmatpush2.bf16.msra.mxu1 %v1537_v12 }
  0x27   :  { %541 = vmatprep.subr.bf16.mxu0 %v1615_v0  ;;  %1504 = vmatprep.subr.bf16.mxu1 %v1615_v0 }
  0x2a   :  { %542 = vmatpush2.bf16.msra.mxu0 %v1538_v13  ;;  %1520 = vmatpush2.bf16.msra.mxu1 %v1538_v13 }
  0x2b   :  { %543 = vmatprep.subr.bf16.mxu0 %v1615_v0  ;;  %1505 = vmatprep.subr.bf16.mxu1 %v1615_v0 }
  0x2e   :  { %544 = vmatpush2.bf16.msra.mxu0 %v1539_v14  ;;  %1521 = vmatpush2.bf16.msra.mxu1 %v1539_v14 }
  0x2f   :  { %545 = vmatprep.subr.bf16.mxu0 %v1615_v0  ;;  %1506 = vmatprep.subr.bf16.mxu1 %v1615_v0 }
  0x32   :  { %546 = vmatpush2.bf16.msra.mxu0 %v1540_v15  ;;  %1522 = vmatpush2.bf16.msra.mxu1 %v1540_v15 }
  0x33   :  { %547 = vmatprep.subr.bf16.mxu0 %v1615_v0  ;;  %1507 = vmatprep.subr.bf16.mxu1 %v1615_v0 }
  0x36   :  { %548 = vmatpush2.bf16.msra.mxu0 %v1541_v16  ;;  %1523 = vmatpush2.bf16.msra.mxu1 %v1541_v16 }
  0x37   :  { %549 = vmatprep.subr.bf16.mxu0 %v1615_v0  ;;  %1508 = vmatprep.subr.bf16.mxu1 %v1615_v0 }
  0x3a   :  { %550 = vmatpush2.bf16.msra.mxu0 %v1542_v17  ;;  %1524 = vmatpush2.bf16.msra.mxu1 %v1542_v17 }
  0x3b   :  { %551 = vmatprep.subr.bf16.mxu0 %v1615_v0  ;;  %1509 = vmatprep.subr.bf16.mxu1 %v1615_v0 }
  0x3e   :  { %552 = vmatpush2.bf16.msra.mxu0 %v1543_v18  ;;  %1525 = vmatpush2.bf16.msra.mxu1 %v1543_v18 }
  0x41   :  { %554 = vmatmul.mubr.bf16.vlgmr.msra.gmra.mxu0 %v1544_v19  ;;  %650 = vmatmul.mubr.bf16.vlgmr.msra.gmra.mxu1 %v1562_v20 }
  0x42   :  { %561 = vmatprep.mubr.bf16.mxu0 %v1547_v21  ;;  %657 = vmatprep.mubr.bf16.mxu1 %v1568_v22 }
  0x49   :  { %562 = vmatmul.mubr.bf16.gmra.mxu0 %v1549_v23  ;;  %658 = vmatmul.mubr.bf16.gmra.mxu1 %v1570_v24 }
  0x4a   :  { %569 = vmatprep.mubr.bf16.mxu0 %v1550_v25  ;;  %665 = vmatprep.mubr.bf16.mxu1 %v1574_v26 }
  0x51   :  { %570 = vmatmul.mubr.bf16.gmra.mxu0 %v1552_v27  ;;  %666 = vmatmul.mubr.bf16.gmra.mxu1 %v1576_v28 }
  0x52   :  { %577 = vmatprep.mubr.bf16.mxu0 %v1553_v29  ;;  %673 = vmatprep.mubr.bf16.mxu1 %v1580_v30 }
  0x59   :  { %578 = vmatmul.mubr.bf16.gmra.mxu0 %v1555_v31  ;;  %674 = vmatmul.mubr.bf16.gmra.mxu1 %v1582_v32 }
  0x5a   :  { %585 = vmatprep.mubr.bf16.mxu0 %v1556_v33  ;;  %681 = vmatprep.mubr.bf16.mxu1 %v1586_v34 }
  0x61   :  { %586 = vmatmul.mubr.bf16.gmra.mxu0 %v1558_v35  ;;  %682 = vmatmul.mubr.bf16.gmra.mxu1 %v1588_v36 }
  0x62   :  { %593 = vmatprep.mubr.bf16.mxu0 %v1559_v37  ;;  %689 = vmatprep.mubr.bf16.mxu1 %v1592_v38 }
  0x69   :  { %594 = vmatmul.mubr.bf16.gmra.mxu0 %v1561_v39  ;;  %690 = vmatmul.mubr.bf16.gmra.mxu1 %v1594_v40 }
  0x6a   :  { %601 = vmatprep.mubr.bf16.mxu0 %v1565_v41  ;;  %697 = vmatprep.mubr.bf16.mxu1 %v1598_v42 }
  0x71   :  { %602 = vmatmul.mubr.bf16.gmra.mxu0 %v1567_v43  ;;  %698 = vmatmul.mubr.bf16.gmra.mxu1 %v1600_v44 }
  0x72   :  { %609 = vmatprep.mubr.bf16.mxu0 %v1571_v45  ;;  %705 = vmatprep.mubr.bf16.mxu1 %v1601_v46  ;;  %v1891_v45 = vld [vmem:[%s2525_s2] ss:$0 sm:$0xff] }
  0x79   :  { %610 = vmatmul.mubr.bf16.gmra.mxu0 %v1573_v47  ;;  %706 = vmatmul.mubr.bf16.gmra.mxu1 %v1603_v48 }
  0x7a   :  { %617 = vmatprep.mubr.bf16.mxu0 %v1577_v49  ;;  %713 = vmatprep.mubr.bf16.mxu1 %v1604_v50 }
  0x81   :  { %618 = vmatmul.mubr.bf16.gmra.mxu0 %v1579_v51  ;;  %714 = vmatmul.mubr.bf16.gmra.mxu1 %v1606_v52 }
  0x82   :  { %625 = vmatprep.mubr.bf16.mxu0 %v1583_v53  ;;  %721 = vmatprep.mubr.bf16.mxu1 %v1607_v54 }
  0x89   :  { %626 = vmatmul.mubr.bf16.gmra.mxu0 %v1585_v55  ;;  %722 = vmatmul.mubr.bf16.gmra.mxu1 %v1609_v56 }
  0x8a   :  { %633 = vmatprep.mubr.bf16.mxu0 %v1589_v57  ;;  %729 = vmatprep.mubr.bf16.mxu1 %v1610_v58 }
  0x91   :  { %634 = vmatmul.mubr.bf16.gmra.mxu0 %v1591_v59  ;;  %730 = vmatmul.mubr.bf16.gmra.mxu1 %v1612_v60 }
  0x92   :  { %641 = vmatprep.mubr.bf16.mxu0 %v1595_v61 }
  0x99   :  { %642 = vmatmul.mubr.bf16.gmra.mxu0 %v1597_v62 }
 0x101   :  { %v555_v63 = vpop.f32.mrf.mxu0  ;;  %v1864_v0 = vpop.f32.mrf.mxu1 }
 0x102   :  { %v1897_v49 = vadd.f32 %v1891_v45, %v555_v63 }
 0x103   :  { %v557_v1 = vpop.f32.mrf.mxu0  ;;  %v653_v2 = vpop.f32.mrf.mxu1 }
 0x104   :  { %v1122_v57 = vmul.f32 %v1897_v49, %v1897_v49 }
 0x105   :  { %v558_v3 = vpop.f32.mrf.mxu0  ;;  %v1866_v4 = vpop.f32.mrf.mxu1 }
 0x106   :  { %v1894_v46 = vadd.f32 %v1891_v45, %v558_v3 }
 0x107   :  { %v560_v5 = vpop.f32.mrf.mxu0  ;;  %v656_v6 = vpop.f32.mrf.mxu1 }
 0x108   :  { %v1123_v53 = vmul.f32 %v1894_v46, %v1894_v46  ;;  %v1071_v62 = vadd.f32 %v1894_v46, %v1897_v49 }
 0x109   :  { %v563_v7 = vpop.f32.mrf.mxu0  ;;  %v1868_v8 = vpop.f32.mrf.mxu1 }
 0x10a   :  { %v1900_v50 = vadd.f32 %v1891_v45, %v563_v7  ;;  %v1168_v63 = vadd.f32 %v1123_v53, %v1122_v57 }
 0x10b   :  { %v565_v9 = vpop.f32.mrf.mxu0  ;;  %v661_v10 = vpop.f32.mrf.mxu1 }
 0x10c   :  { %v1124_v58 = vmul.f32 %v1900_v50, %v1900_v50  ;;  %v1072_v6 = vadd.f32 %v1071_v62, %v1900_v50 }
 0x10d   :  { %v566_v11 = vpop.f32.mrf.mxu0  ;;  %v1870_v12 = vpop.f32.mrf.mxu1 }
 0x10e   :  { %v1907_v54 = vadd.f32 %v1891_v45, %v566_v11  ;;  %v1169_v7 = vadd.f32 %v1168_v63, %v1124_v58 }
 0x10f   :  { %v568_v13 = vpop.f32.mrf.mxu0  ;;  %v664_v14 = vpop.f32.mrf.mxu1 }
 0x110   :  { %v1125_v1 = vmul.f32 %v1907_v54, %v1907_v54  ;;  %v1073_v14 = vadd.f32 %v1072_v6, %v1907_v54 }
 0x111   :  { %v571_v15 = vpop.f32.mrf.mxu0  ;;  %v1872_v16 = vpop.f32.mrf.mxu1 }
 0x112   :  { %v1914_v59 = vadd.f32 %v1891_v45, %v571_v15  ;;  %v1170_v15 = vadd.f32 %v1169_v7, %v1125_v1 }
 0x113   :  { %v573_v17 = vpop.f32.mrf.mxu0  ;;  %v669_v18 = vpop.f32.mrf.mxu1 }
 0x114   :  { %v1126_v9 = vmul.f32 %v1914_v59, %v1914_v59 }
 0x115   :  { %v574_v19 = vpop.f32.mrf.mxu0  ;;  %v1874_v20 = vpop.f32.mrf.mxu1 }
 0x116   :  { %v1923_v2 = vadd.f32 %v1891_v45, %v574_v19 }
 0x117   :  { %v576_v21 = vpop.f32.mrf.mxu0  ;;  %v672_v22 = vpop.f32.mrf.mxu1 }
 0x118   :  { %v1127_v17 = vmul.f32 %v1923_v2, %v1923_v2  ;;  %v1074_v22 = vadd.f32 %v1073_v14, %v1914_v59 }
 0x119   :  { %v579_v23 = vpop.f32.mrf.mxu0  ;;  %v1876_v24 = vpop.f32.mrf.mxu1 }
 0x11a   :  { %v1929_v10 = vadd.f32 %v1891_v45, %v579_v23 }
 0x11b   :  { %v581_v25 = vpop.f32.mrf.mxu0  ;;  %v677_v26 = vpop.f32.mrf.mxu1 }
 0x11c   :  { %v1171_v25 = vadd.f32 %v1170_v15, %v1126_v9  ;;  %v1128_v23 = vmul.f32 %v1929_v10, %v1929_v10 }
 0x11d   :  { %v582_v27 = vpop.f32.mrf.mxu0  ;;  %v1878_v28 = vpop.f32.mrf.mxu1 }
 0x11e   :  { %v1937_v18 = vadd.f32 %v1891_v45, %v582_v27 }
 0x11f   :  { %v584_v29 = vpop.f32.mrf.mxu0  ;;  %v680_v30 = vpop.f32.mrf.mxu1 }
 0x120   :  { %v1129_v27 = vmul.f32 %v1937_v18, %v1937_v18 }
 0x121   :  { %v587_v31 = vpop.f32.mrf.mxu0  ;;  %v1880_v32 = vpop.f32.mrf.mxu1 }
 0x122   :  { %v1943_v26 = vadd.f32 %v1891_v45, %v587_v31 }
 0x123   :  { %v589_v33 = vpop.f32.mrf.mxu0  ;;  %v685_v34 = vpop.f32.mrf.mxu1 }
 0x124   :  { %v1075_v33 = vadd.f32 %v1074_v22, %v1923_v2  ;;  %v1172_v34 = vadd.f32 %v1171_v25, %v1127_v17  ;;  %v1130_v31 = vmul.f32 %v1943_v26, %v1943_v26 }
 0x125   :  { %v590_v35 = vpop.f32.mrf.mxu0  ;;  %v1882_v36 = vpop.f32.mrf.mxu1 }
 0x127   :  { %v592_v37 = vpop.f32.mrf.mxu0  ;;  %v688_v38 = vpop.f32.mrf.mxu1 }
 0x128   :  { %v1951_v37 = vadd.f32 %v1891_v45, %v590_v35 }
 0x129   :  { %v595_v39 = vpop.f32.mrf.mxu0  ;;  %v1884_v40 = vpop.f32.mrf.mxu1 }
 0x12a   :  { %v1131_v35 = vmul.f32 %v1951_v37, %v1951_v37 }
 0x12b   :  { %v597_v41 = vpop.f32.mrf.mxu0  ;;  %v693_v42 = vpop.f32.mrf.mxu1 }
 0x12c   :  { %v1076_v42 = vadd.f32 %v1075_v33, %v1929_v10 }
 0x12d   :  { %v598_v43 = vpop.f32.mrf.mxu0  ;;  %v1886_v44 = vpop.f32.mrf.mxu1 }
 0x12e   :  { %v1965_v58 = vadd.f32 %v1891_v45, %v598_v43 }
 0x12f   :  { %v600_v47 = vpop.f32.mrf.mxu0  ;;  %v696_v48 = vpop.f32.mrf.mxu1 }
 0x130   :  { %v1173_v47 = vadd.f32 %v1172_v34, %v1128_v23  ;;  %v1957_v48 = vadd.f32 %v1891_v45, %v595_v39  ;;  %v1133_v43 = vmul.f32 %v1965_v58, %v1965_v58 }
 0x131   :  { %v603_v51 = vpop.f32.mrf.mxu0  ;;  %v1902_v52 = vpop.f32.mrf.mxu1 }
 0x132   :  { %v1174_v57 = vadd.f32 %v1173_v47, %v1129_v27  ;;  %v1132_v39 = vmul.f32 %v1957_v48, %v1957_v48 }
 0x133   :  { %v605_v55 = vpop.f32.mrf.mxu0  ;;  %v701_v56 = vpop.f32.mrf.mxu1 }
 0x134   :  { %v1077_v56 = vadd.f32 %v1076_v42, %v1937_v18 }
 0x135   :  { %v606_v60 = vpop.f32.mrf.mxu0  ;;  %v1916_v61 = vpop.f32.mrf.mxu1 }
 0x136   :  { %v1078_v1 = vadd.f32 %v1077_v56, %v1943_v26  ;;  %v1979_v15 = vadd.f32 %v1891_v45, %v606_v60 }
 0x137   :  { %v608_v3 = vpop.f32.mrf.mxu0  ;;  %v704_v5 = vpop.f32.mrf.mxu1 }
 0x138   :  { %v1175_v3 = vadd.f32 %v1174_v57, %v1130_v31  ;;  %v1971_v5 = vadd.f32 %v1891_v45, %v603_v51  ;;  %v1079_v9 = vadd.f32 %v1078_v1, %v1951_v37  ;;  %v1135_v60 = vmul.f32 %v1979_v15, %v1979_v15 }
 0x139   :  { %v611_v11 = vpop.f32.mrf.mxu0  ;;  %v1931_v13 = vpop.f32.mrf.mxu1 }
 0x13a   :  { %v1176_v14 = vadd.f32 %v1175_v3, %v1131_v35  ;;  %v1134_v51 = vmul.f32 %v1971_v5, %v1971_v5  ;;  %v1985_v25 = vadd.f32 %v1891_v45, %v611_v11 }
 0x13b   :  { %v613_v19 = vpop.f32.mrf.mxu0  ;;  %v709_v21 = vpop.f32.mrf.mxu1 }
 0x13c   :  { %v1080_v21 = vadd.f32 %v1079_v9, %v1957_v48  ;;  %v1177_v22 = vadd.f32 %v1176_v14, %v1132_v39  ;;  %v1136_v11 = vmul.f32 %v1985_v25, %v1985_v25 }
 0x13d   :  { %v614_v29 = vpop.f32.mrf.mxu0  ;;  %v1945_v30 = vpop.f32.mrf.mxu1 }
 0x13e   :  { %v1081_v34 = vadd.f32 %v1080_v21, %v1965_v58  ;;  %v1178_v27 = vadd.f32 %v1177_v22, %v1133_v43 }
 0x13f   :  { %v616_v38 = vpop.f32.mrf.mxu0  ;;  %v712_v41 = vpop.f32.mrf.mxu1 }
 0x140   :  { %v1993_v38 = vadd.f32 %v1891_v45, %v614_v29  ;;  %v1082_v47 = vadd.f32 %v1081_v34, %v1971_v5  ;;  %v1179_v31 = vadd.f32 %v1178_v27, %v1134_v51 }
 0x141   :  { %v619_v53 = vpop.f32.mrf.mxu0  ;;  %v1959_v55 = vpop.f32.mrf.mxu1 }
 0x142   :  { %v1999_v56 = vadd.f32 %v1891_v45, %v619_v53  ;;  %v1137_v29 = vmul.f32 %v1993_v38, %v1993_v38 }
 0x143   :  { %v621_v62 = vpop.f32.mrf.mxu0  ;;  %v717_v63 = vpop.f32.mrf.mxu1 }
 0x144   :  { %v1083_v62 = vadd.f32 %v1082_v47, %v1979_v15  ;;  %v1180_v63 = vadd.f32 %v1179_v31, %v1135_v60  ;;  %v1138_v53 = vmul.f32 %v1999_v56, %v1999_v56 }
 0x145   :  { %v622_v6 = vpop.f32.mrf.mxu0  ;;  %v1973_v7 = vpop.f32.mrf.mxu1 }
 0x146   :  { %v1084_v39 = vadd.f32 %v1083_v62, %v1985_v25  ;;  %v2008_v9 = vadd.f32 %v1891_v45, %v622_v6  ;;  %v1181_v14 = vadd.f32 %v1180_v63, %v1136_v11 }
 0x147   :  { %v624_v17 = vpop.f32.mrf.mxu0  ;;  %v720_v19 = vpop.f32.mrf.mxu1 }
 0x148   :  { %v1085_v19 = vadd.f32 %v1084_v39, %v1993_v38  ;;  %v1182_v22 = vadd.f32 %v1181_v14, %v1137_v29  ;;  %v1139_v6 = vmul.f32 %v2008_v9, %v2008_v9 }
 0x149   :  { %v627_v23 = vpop.f32.mrf.mxu0  ;;  %v1987_v33 = vpop.f32.mrf.mxu1 }
 0x14a   :  { %v2016_v21 = vadd.f32 %v1891_v45, %v627_v23  ;;  %v1086_v27 = vadd.f32 %v1085_v19, %v1999_v56 }
 0x14b   :  { %v629_v41 = vpop.f32.mrf.mxu0  ;;  %v725_v42 = vpop.f32.mrf.mxu1 }
 0x14c   :  { %v1183_v41 = vadd.f32 %v1182_v22, %v1138_v53  ;;  %v1087_v31 = vadd.f32 %v1086_v27, %v2008_v9  ;;  %v1140_v23 = vmul.f32 %v2016_v21, %v2016_v21 }
 0x14d   :  { %v630_v57 = vpop.f32.mrf.mxu0  ;;  %v2001_v35 = vpop.f32.mrf.mxu1 }
 0x14e   :  { %v2022_v60 = vadd.f32 %v1891_v45, %v630_v57  ;;  %v1184_v29 = vadd.f32 %v1183_v41, %v1139_v6 }
 0x14f   :  { %v632_v1 = vpop.f32.mrf.mxu0  ;;  %v728_v3 = vpop.f32.mrf.mxu1 }
 0x150   :  { %v1088_v1 = vadd.f32 %v1087_v31, %v2016_v21  ;;  %v1141_v57 = vmul.f32 %v2022_v60, %v2022_v60  ;;  %v1185_v14 = vadd.f32 %v1184_v29, %v1140_v23  ;;  %v2052_v23 = vadd.f32 %v1891_v45, %v1864_v0 }
 0x151   :  { %v635_v43 = vpop.f32.mrf.mxu0  ;;  %v2012_v17 = vpop.f32.mrf.mxu1 }
 0x152   :  { %v2030_v11 = vadd.f32 %v1891_v45, %v635_v43  ;;  %v1089_v53 = vadd.f32 %v1088_v1, %v2022_v60  ;;  %v1186_v22 = vadd.f32 %v1185_v14, %v1141_v57  ;;  %v2060_v57 = vadd.f32 %v1891_v45, %v1866_v4 }
 0x153   :  { %v637_v51 = vpop.f32.mrf.mxu0  ;;  %v733_v34 = vpop.f32.mrf.mxu1  ;;  %v1146_v0 = vmul.f32 %v2052_v23, %v2052_v23  ;;  %v2074_v4 = vadd.f32 %v1891_v45, %v1870_v12 }
 0x154   :  { %v1142_v19 = vmul.f32 %v2030_v11, %v2030_v11  ;;  %v1090_v51 = vadd.f32 %v1089_v53, %v2030_v11 }
 0x155   :  { %v638_v42 = vpop.f32.mrf.mxu0  ;;  %v2024_v47 = vpop.f32.mrf.mxu1  ;;  %v1149_v12 = vmul.f32 %v2074_v4, %v2074_v4 }
 0x156   :  { %v2036_v3 = vadd.f32 %v1891_v45, %v638_v42  ;;  %v1187_v41 = vadd.f32 %v1186_v22, %v1142_v19  ;;  %v2069_v19 = vadd.f32 %v1891_v45, %v1868_v8 }
 0x157   :  { %v640_v62 = vpop.f32.mrf.mxu0  ;;  %v736_v63 = vpop.f32.mrf.mxu1 }
 0x158   :  { %v1143_v34 = vmul.f32 %v2036_v3, %v2036_v3  ;;  %v1091_v42 = vadd.f32 %v1090_v51, %v2036_v3  ;;  %v1147_v51 = vmul.f32 %v2060_v57, %v2060_v57  ;;  %v1148_v8 = vmul.f32 %v2069_v19, %v2069_v19 }
 0x159   :  { %v643_v39 = vpop.f32.mrf.mxu0 }
 0x15a   :  { %v2045_v27 = vadd.f32 %v1891_v45, %v643_v39  ;;  %v1188_v63 = vadd.f32 %v1187_v41, %v1143_v34  ;;  %v2081_v41 = vadd.f32 %v1891_v45, %v1872_v16 }
 0x15b   :  { %v645_v43 = vpop.f32.mrf.mxu0 }
 0x15c   :  { %v1144_v31 = vmul.f32 %v2045_v27, %v2045_v27  ;;  %v1092_v29 = vadd.f32 %v1091_v42, %v2045_v27  ;;  %v1150_v16 = vmul.f32 %v2081_v41, %v2081_v41 }
 0x15d   :  { %v646_v6 = vpop.f32.mrf.mxu0 }
 0x15e   :  { %v2056_v1 = vadd.f32 %v1891_v45, %v646_v6  ;;  %v1189_v39 = vadd.f32 %v1188_v63, %v1144_v31 }
 0x15f   :  { %v648_v62 = vpop.f32.mrf.mxu0 }
 0x160   :  { %v1093_v14 = vadd.f32 %v1092_v29, %v2056_v1  ;;  %v1145_v53 = vmul.f32 %v2056_v1, %v2056_v1  ;;  %v2090_v62 = vadd.f32 %v1891_v45, %v1874_v20  ;;  %v2104_v20 = vadd.f32 %v1891_v45, %v1878_v28 }
 0x162   :  { %v1094_v43 = vadd.f32 %v1093_v14, %v2052_v23  ;;  %v1190_v22 = vadd.f32 %v1189_v39, %v1145_v53  ;;  %v2097_v39 = vadd.f32 %v1891_v45, %v1876_v24  ;;  %v2111_v24 = vadd.f32 %v1891_v45, %v1880_v32 }
 0x163   :  { %v1153_v28 = vmul.f32 %v2104_v20, %v2104_v20 }
 0x164   :  { %v1095_v34 = vadd.f32 %v1094_v43, %v2060_v57  ;;  %v1191_v6 = vadd.f32 %v1190_v22, %v1146_v0  ;;  %v1151_v0 = vmul.f32 %v2090_v62, %v2090_v62  ;;  %v1154_v32 = vmul.f32 %v2111_v24, %v2111_v24 }
 0x166   :  { %v1096_v42 = vadd.f32 %v1095_v34, %v2069_v19  ;;  %v1192_v31 = vadd.f32 %v1191_v6, %v1147_v51  ;;  %v1152_v51 = vmul.f32 %v2097_v39, %v2097_v39 }
 0x168   :  { %v1097_v63 = vadd.f32 %v1096_v42, %v2074_v4  ;;  %v1193_v29 = vadd.f32 %v1192_v31, %v1148_v8  ;;  %v2116_v8 = vadd.f32 %v1891_v45, %v1882_v36 }
 0x16a   :  { %v1194_v14 = vadd.f32 %v1193_v29, %v1149_v12  ;;  %v1098_v53 = vadd.f32 %v1097_v63, %v2081_v41  ;;  %v2123_v12 = vadd.f32 %v1891_v45, %v1884_v40  ;;  %v1155_v36 = vmul.f32 %v2116_v8, %v2116_v8 }
 0x16c   :  { %v1099_v43 = vadd.f32 %v1098_v53, %v2090_v62  ;;  %v1195_v22 = vadd.f32 %v1194_v14, %v1150_v16  ;;  %v2132_v16 = vadd.f32 %v1891_v45, %v1886_v44  ;;  %v1156_v40 = vmul.f32 %v2123_v12, %v2123_v12 }
 0x16e   :  { %v1100_v34 = vadd.f32 %v1099_v43, %v2097_v39  ;;  %v1196_v6 = vadd.f32 %v1195_v22, %v1151_v0  ;;  %v2139_v0 = vadd.f32 %v1891_v45, %v1902_v52 }
 0x170   :  { %v1101_v42 = vadd.f32 %v1100_v34, %v2104_v20  ;;  %v1197_v31 = vadd.f32 %v1196_v6, %v1152_v51  ;;  %2537 = vst [vmem:[#allocation2_spill] sm:$0xff] %v2139_v0  ;;  %v2144_v51 = vadd.f32 %v1891_v45, %v1916_v61  ;;  %v1157_v34 = vmul.f32 %v2132_v16, %v2132_v16 }
 0x171   :  { %v2158_v61 = vadd.f32 %v1891_v45, %v1945_v30 }
 0x172   :  { %v1102_v63 = vadd.f32 %v1101_v42, %v2111_v24  ;;  %v1198_v29 = vadd.f32 %v1197_v31, %v1153_v28  ;;  %2538 = vst [vmem:[#allocation3_spill] sm:$0xff] %v2144_v51  ;;  %v932_v28 = vlaneseq  ;;  %v2151_v42 = vadd.f32 %v1891_v45, %v1931_v13 }
 0x173   :  { %v1158_v31 = vmul.f32 %v2139_v0, %v2139_v0  ;;  %2540 = vst [vmem:[#allocation5_spill] sm:$0xff] %v2158_v61  ;;  %v2165_v13 = vadd.f32 %v1891_v45, %v1959_v55  ;;  %v1161_v30 = vmul.f32 %v2158_v61, %v2158_v61 }
 0x174   :  { %v1103_v14 = vadd.f32 %v1102_v63, %v2116_v8  ;;  %v1199_v53 = vadd.f32 %v1198_v29, %v1154_v32  ;;  %2539 = vst [vmem:[#allocation4_spill] sm:$0xff] %v2151_v42  ;;  %v1159_v29 = vmul.f32 %v2144_v51, %v2144_v51 }
 0x176   :  { %v1104_v43 = vadd.f32 %v1103_v14, %v2123_v12  ;;  %v1200_v22 = vadd.f32 %v1199_v53, %v1155_v36  ;;  %v2167_v14 = vshrl.u32 %v932_v28, 7  ;;  %v2184_v28 = vadd.f32 %v1891_v45, %v1987_v33 }
 0x177   :  { %v2200_v33 = vadd.f32 %v1891_v45, %v2012_v17 }
 0x178   :  { %v1105_v44 = vadd.f32 %v1104_v43, %v2132_v16  ;;  %v1201_v6 = vadd.f32 %v1200_v22, %v1156_v40  ;;  %v1160_v40 = vmul.f32 %v2151_v42, %v2151_v42  ;;  %v2176_v22 = vadd.f32 %v1891_v45, %v1973_v7  ;;  %2541 = vst [vmem:[#allocation6_spill] sm:$0xff] %v2184_v28 }
 0x179   :  { %v978_v55 = vadd.s32 360, %v2167_v14  ;;  %2544 = vst [vmem:[#allocation9_spill] sm:$0xff] %v2200_v33 }
 0x17a   :  { %v1106_v52 = vadd.f32 %v1105_v44, %v2139_v0  ;;  %v1202_v32 = vadd.f32 %v1201_v6, %v1157_v34  ;;  %v1162_v6 = vmul.f32 %v2165_v13, %v2165_v13 }
 0x17b   :  { %vm1024_vm0 = vcmp.lt.s32.totalorder %v978_v55, 364 }
 0x17c   :  { %v1107_v63 = vadd.f32 %v1106_v52, %v2144_v51  ;;  %v1203_v36 = vadd.f32 %v1202_v32, %v1158_v31  ;;  %v2189_v32 = vadd.f32 %v1891_v45, %v2001_v35  ;;  %v1164_v35 = vmul.f32 %v2184_v28, %v2184_v28 }
 0x17e   :  { %v1108_v53 = vadd.f32 %v1107_v63, %v2151_v42  ;;  %v1204_v43 = vadd.f32 %v1203_v36, %v1159_v29  ;;  %2542 = vst [vmem:[#allocation7_spill] sm:$0xff] %v2189_v32  ;;  %v1163_v63 = vmul.f32 %v2176_v22, %v2176_v22  ;;  %v2196_v36 = vadd.f32 %v1891_v45, %v2024_v47 }
 0x17f   :  { %v1166_v45 = vmul.f32 %v2200_v33, %v2200_v33 }
 0x180   :  { %v1109_v44 = vadd.f32 %v1108_v53, %v2158_v61  ;;  %v1205_v34 = vadd.f32 %v1204_v43, %v1160_v40  ;;  %2543 = vst [vmem:[#allocation8_spill] sm:$0xff] %v2196_v36  ;;  %v1070_v47 = vsel %vm1024_vm0, %v2196_v36, 0.0 }
 0x182   :  { %v1110_v52 = vadd.f32 %v1109_v44, %v2165_v13  ;;  %v1206_v31 = vadd.f32 %v1205_v34, %v1161_v30  ;;  %v1165_v30 = vmul.f32 %v2189_v32, %v2189_v32 }
 0x184   :  { %v1111_v7 = vadd.f32 %v1110_v52, %v2176_v22  ;;  %v1207_v29 = vadd.f32 %v1206_v31, %v1162_v6  ;;  %v1167_v6 = vmul.f32 %v1070_v47, %v1070_v47 }
 0x186   :  { %v1112_v53 = vadd.f32 %v1111_v7, %v2184_v28  ;;  %v1208_v40 = vadd.f32 %v1207_v29, %v1163_v63 }
 0x188   :  { %v1113_v43 = vadd.f32 %v1112_v53, %v2189_v32  ;;  %v1209_v44 = vadd.f32 %v1208_v40, %v1164_v35 }
 0x18a   :  { %v1114_v34 = vadd.f32 %v1113_v43, %v2200_v33  ;;  %v1210_v17 = vadd.f32 %v1209_v44, %v1165_v30 }
 0x18c   :  { %v1115_v55 = vadd.f32 %v1114_v34, %v1070_v47  ;;  %v1211_v52 = vadd.f32 %v1210_v17, %v1166_v45  ;;  %v1224_v34 = vld [vmem:[%s2526_s3] sm:$0x1]  ;;  %v1234_v45 = vsub.s32 0, %v2167_v14 }
 0x18e   :  { %v1116_v31 = vrot.slane %v1115_v55, 4  ;;  %v1212_v7 = vadd.f32 %v1211_v52, %v1167_v6 }
 0x190   :  { %v1117_v63 = vadd.f32 %v1116_v31, %v1115_v55  ;;  %v1213_v29 = vrot.slane %v1212_v7, 4 }
 0x192   :  { %v1118_v53 = vrot.slane %v1117_v63, 2  ;;  %v1214_v61 = vadd.f32 %v1213_v29, %v1212_v7  ;;  %v2545_v29 = vld [vmem:[#allocation6_spill] sm:$0xff] }
 0x194   :  { %v1119_v42 = vadd.f32 %v1118_v53, %v1117_v63  ;;  %v1215_v51 = vrot.slane %v1214_v61, 2  ;;  %v2546_v53 = vld [vmem:[#allocation7_spill] sm:$0xff] }
 0x196   :  { %v1120_v35 = vrot.slane %v1119_v42, 1  ;;  %v1216_v40 = vadd.f32 %v1215_v51, %v1214_v61  ;;  %v1228_v51 = vld [vmem:[%s2527_s4] sm:$0x1] }
 0x198   :  { %v1121_v0 = vadd.f32 %v1120_v35, %v1119_v42  ;;  %v1217_v36 = vrot.slane %v1216_v40, 1  ;;  %v2547_v35 = vld [vmem:[#allocation9_spill] sm:$0xff] }
 0x19a   :  { %v1218_v43 = vadd.f32 %v1217_v36, %v1216_v40  ;;  %v1219_v32 = vmul.f32 0.0027472528, %v1121_v0  ;;  %v2548_v40 = vld [vmem:[#allocation8_spill] sm:$0xff] }
 0x19c   :  { %v1220_v28 = vmul.f32 0.0027472528, %v1218_v43  ;;  %v1221_v33 = vmul.f32 %v1219_v32, %v1219_v32 }
 0x19e   :  { %v1222_v30 = vsub.f32 %v1220_v28, %v1221_v33 }
 0x1a0   :  { %v1223_v44 = vmax.f32 %v1222_v30, 0.0 }
 0x1a2   :  { %v1225_v47 = vadd.f32 1e-05, %v1223_v44 }
 0x1a4   :  { %1613 = vrsqrt.f32 %v1225_v47 }
 0x1b1   :  { %v1614_v17 = vpop.eup %1613 }
 0x1b2   :  { %v1227_v55 = vmul.f32 %v1614_v17, %v1224_v34 }
 0x1b4   :  { %v1229_v42 = vmul.f32 %v1227_v55, %v1219_v32  ;;  %v1235_v0 = vrot.slane %v1227_v55, %v1234_v45 }
 0x1b6   :  { %v1230_v61 = vsub.f32 %v1228_v51, %v1229_v42  ;;  %v1237_v28 = vmul.f32 %v1235_v0, %v1897_v49  ;;  %v1238_v36 = vmul.f32 %v1235_v0, %v1894_v46  ;;  %v1239_v33 = vmul.f32 %v1235_v0, %v1900_v50 }
 0x1b7   :  { %v1240_v6 = vmul.f32 %v1235_v0, %v1907_v54  ;;  %v1241_v52 = vmul.f32 %v1235_v0, %v1914_v59  ;;  %v1242_v14 = vmul.f32 %v1235_v0, %v1923_v2  ;;  %v1243_v31 = vmul.f32 %v1235_v0, %v1929_v10 }
 0x1b8   :  { %v1244_v7 = vmul.f32 %v1235_v0, %v1937_v18  ;;  %v1245_v32 = vmul.f32 %v1235_v0, %v1943_v26  ;;  %v1246_v63 = vmul.f32 %v1235_v0, %v1951_v37  ;;  %v1247_v49 = vmul.f32 %v1235_v0, %v1957_v48 }
 0x1b9   :  { %v1248_v46 = vmul.f32 %v1235_v0, %v1965_v58  ;;  %v1249_v50 = vmul.f32 %v1235_v0, %v1971_v5  ;;  %v1250_v54 = vmul.f32 %v1235_v0, %v1979_v15  ;;  %v1251_v59 = vmul.f32 %v1235_v0, %v1985_v25 }
 0x1ba   :  { %v1252_v2 = vmul.f32 %v1235_v0, %v1993_v38  ;;  %v1253_v10 = vmul.f32 %v1235_v0, %v1999_v56  ;;  %v1254_v18 = vmul.f32 %v1235_v0, %v2008_v9  ;;  %v1255_v26 = vmul.f32 %v1235_v0, %v2016_v21 }
 0x1bb   :  { %v1256_v37 = vmul.f32 %v1235_v0, %v2022_v60  ;;  %v1257_v48 = vmul.f32 %v1235_v0, %v2030_v11  ;;  %v1258_v58 = vmul.f32 %v1235_v0, %v2036_v3  ;;  %v1259_v5 = vmul.f32 %v1235_v0, %v2045_v27 }
 0x1bc   :  { %v1260_v15 = vmul.f32 %v1235_v0, %v2056_v1  ;;  %v1261_v25 = vmul.f32 %v1235_v0, %v2052_v23  ;;  %v1262_v38 = vmul.f32 %v1235_v0, %v2060_v57  ;;  %v1263_v56 = vmul.f32 %v1235_v0, %v2069_v19 }
 0x1bd   :  { %v1264_v9 = vmul.f32 %v1235_v0, %v2074_v4  ;;  %v1265_v21 = vmul.f32 %v1235_v0, %v2081_v41  ;;  %v1266_v60 = vmul.f32 %v1235_v0, %v2090_v62  ;;  %v1267_v11 = vmul.f32 %v1235_v0, %v2097_v39 }
 0x1be   :  { %v1268_v3 = vmul.f32 %v1235_v0, %v2104_v20  ;;  %v1269_v27 = vmul.f32 %v1235_v0, %v2111_v24  ;;  %v1270_v1 = vmul.f32 %v1235_v0, %v2116_v8  ;;  %v1271_v23 = vmul.f32 %v1235_v0, %v2123_v12  ;;  %v2549_v24 = vld [vmem:[#allocation2_spill] sm:$0xff]  ;;  %v2550_v8 = vld [vmem:[#allocation3_spill] sm:$0xff]  ;;  %v2551_v12 = vld [vmem:[#allocation4_spill] sm:$0xff] }
 0x1bf   :  { %v1272_v57 = vmul.f32 %v1235_v0, %v2132_v16  ;;  %v1277_v19 = vmul.f32 %v1235_v0, %v2165_v13  ;;  %v1278_v4 = vmul.f32 %v1235_v0, %v2176_v22  ;;  %v1279_v41 = vmul.f32 %v1235_v0, %v2545_v29  ;;  %v2552_v16 = vld [vmem:[#allocation5_spill] sm:$0xff] }
 0x1c0   :  { %v1280_v62 = vmul.f32 %v1235_v0, %v2546_v53  ;;  %v1281_v39 = vmul.f32 %v1235_v0, %v2547_v35  ;;  %v1282_v20 = vmul.f32 %v1235_v0, %v2548_v40  ;;  %v1287_v43 = vrot.slane %v1230_v61, %v1234_v45 }
 0x1c1   :  { %v1273_v30 = vmul.f32 %v1235_v0, %v2549_v24  ;;  %v1274_v44 = vmul.f32 %v1235_v0, %v2550_v8  ;;  %v1275_v47 = vmul.f32 %v1235_v0, %v2551_v12  ;;  %v1276_v34 = vmul.f32 %v1235_v0, %v2552_v16 }
 0x1c2   :  { %v1289_v13 = vadd.f32 %v1287_v43, %v1237_v28  ;;  %v1290_v17 = vadd.f32 %v1287_v43, %v1238_v36  ;;  %v1291_v22 = vadd.f32 %v1287_v43, %v1239_v33  ;;  %v1292_v55 = vadd.f32 %v1287_v43, %v1240_v6 }
 0x1c3   :  { %v1293_v51 = vadd.f32 %v1287_v43, %v1241_v52  ;;  %v1294_v42 = vadd.f32 %v1287_v43, %v1242_v14  ;;  %v2265_v29 = vadd.f32 %v1287_v43, %v1243_v31  ;;  %v2267_v53 = vadd.f32 %v1287_v43, %v1244_v7 }
 0x1c4   :  { %v2269_v35 = vadd.f32 %v1287_v43, %v1245_v32  ;;  %v2271_v45 = vadd.f32 %v1287_v43, %v1246_v63  ;;  %v2273_v61 = vadd.f32 %v1287_v43, %v1247_v49  ;;  %v2275_v40 = vadd.f32 %v1287_v43, %v1248_v46 }
 0x1c5   :  { %v2277_v24 = vadd.f32 %v1287_v43, %v1249_v50  ;;  %v2279_v0 = vadd.f32 %v1287_v43, %v1250_v54  ;;  %v2281_v28 = vadd.f32 %v1287_v43, %v1251_v59  ;;  %v2283_v36 = vadd.f32 %v1287_v43, %v1252_v2 }
 0x1c6   :  { %v2285_v33 = vadd.f32 %v1287_v43, %v1253_v10  ;;  %v2287_v6 = vadd.f32 %v1287_v43, %v1254_v18  ;;  %v2289_v52 = vadd.f32 %v1287_v43, %v1255_v26  ;;  %v2291_v14 = vadd.f32 %v1287_v43, %v1256_v37 }
 0x1c7   :  { %v2293_v31 = vadd.f32 %v1287_v43, %v1257_v48  ;;  %v2295_v7 = vadd.f32 %v1287_v43, %v1258_v58  ;;  %v2297_v32 = vadd.f32 %v1287_v43, %v1259_v5  ;;  %v2299_v63 = vadd.f32 %v1287_v43, %v1260_v15 }
 0x1c8   :  { %v2301_v49 = vadd.f32 %v1287_v43, %v1261_v25  ;;  %v2303_v46 = vadd.f32 %v1287_v43, %v1262_v38  ;;  %v2305_v50 = vadd.f32 %v1287_v43, %v1263_v56  ;;  %v2307_v54 = vadd.f32 %v1287_v43, %v1264_v9 }
 0x1c9   :  { %v2309_v59 = vadd.f32 %v1287_v43, %v1265_v21  ;;  %v2311_v2 = vadd.f32 %v1287_v43, %v1266_v60  ;;  %v2313_v10 = vadd.f32 %v1287_v43, %v1267_v11  ;;  %v2315_v18 = vadd.f32 %v1287_v43, %v1268_v3 }
 0x1ca   :  { %v2317_v26 = vadd.f32 %v1287_v43, %v1269_v27  ;;  %v2319_v37 = vadd.f32 %v1287_v43, %v1270_v1  ;;  %v2321_v48 = vadd.f32 %v1287_v43, %v1271_v23  ;;  %v2323_v58 = vadd.f32 %v1287_v43, %v1272_v57 }
 0x1cb   :  { %v2325_v5 = vadd.f32 %v1287_v43, %v1273_v30  ;;  %v2327_v15 = vadd.f32 %v1287_v43, %v1274_v44  ;;  %v2329_v25 = vadd.f32 %v1287_v43, %v1275_v47  ;;  %v2331_v38 = vadd.f32 %v1287_v43, %v1276_v34 }
 0x1cc   :  { %v2333_v56 = vadd.f32 %v1287_v43, %v1277_v19  ;;  %v2335_v9 = vadd.f32 %v1287_v43, %v1278_v4  ;;  %v2337_v21 = vadd.f32 %v1287_v43, %v1279_v41  ;;  %v2339_v60 = vadd.f32 %v1287_v43, %v1280_v62 }
 0x1cd   :  { %v2341_v11 = vadd.f32 %v1287_v43, %v1281_v39  ;;  %v2343_v3 = vadd.f32 %v1287_v43, %v1282_v20  ;;  %v1335_v27 = vmax.f32 %v1289_v13, 0.0  ;;  %v1336_v1 = vmax.f32 %v1290_v17, 0.0 }
 0x1ce   :  { %v1337_v23 = vmax.f32 %v1291_v22, 0.0  ;;  %v1338_v57 = vmax.f32 %v1292_v55, 0.0  ;;  %v1339_v30 = vmax.f32 %v1293_v51, 0.0  ;;  %v1340_v8 = vmax.f32 %v1294_v42, 0.0 }
 0x1cf   :  { %v1341_v44 = vmax.f32 %v2265_v29, 0.0  ;;  %v1342_v19 = vmax.f32 %v2267_v53, 0.0  ;;  %v1343_v4 = vmax.f32 %v2269_v35, 0.0  ;;  %v1344_v41 = vmax.f32 %v2271_v45, 0.0  ;;  %1381 = vst [vmem:[%s2528_s5] sm:$0xff] %v1335_v27  ;;  %1382 = vst [vmem:[%s2528_s5 + $0x8] sm:$0xff] %v1336_v1 }
 0x1d0   :  { %v1345_v62 = vmax.f32 %v2273_v61, 0.0  ;;  %v1346_v39 = vmax.f32 %v2275_v40, 0.0  ;;  %v1347_v20 = vmax.f32 %v2277_v24, 0.0  ;;  %v1348_v43 = vmax.f32 %v2279_v0, 0.0  ;;  %1383 = vst [vmem:[%s2528_s5 + $0x10] sm:$0xff] %v1337_v23  ;;  %1384 = vst [vmem:[%s2528_s5 + $0x18] sm:$0xff] %v1338_v57 }
 0x1d1   :  { %1385 = vst [vmem:[%s2528_s5 + $0x20] sm:$0xff] %v1339_v30  ;;  %1386 = vst [vmem:[%s2528_s5 + $0x28] sm:$0xff] %v1340_v8  ;;  %v1349_v12 = vmax.f32 %v2281_v28, 0.0  ;;  %v1350_v47 = vmax.f32 %v2283_v36, 0.0  ;;  %v1351_v16 = vmax.f32 %v2285_v33, 0.0  ;;  %v1352_v34 = vmax.f32 %v2287_v6, 0.0 }
 0x1d2   :  { %1387 = vst [vmem:[%s2528_s5 + $0x30] sm:$0xff] %v1341_v44  ;;  %1388 = vst [vmem:[%s2528_s5 + $0x38] sm:$0xff] %v1342_v19  ;;  %v1353_v13 = vmax.f32 %v2289_v52, 0.0  ;;  %v1354_v17 = vmax.f32 %v2291_v14, 0.0  ;;  %v1355_v22 = vmax.f32 %v2293_v31, 0.0  ;;  %v1356_v55 = vmax.f32 %v2295_v7, 0.0 }
 0x1d3   :  { %1389 = vst [vmem:[%s2528_s5 + $0x40] sm:$0xff] %v1343_v4  ;;  %1390 = vst [vmem:[%s2528_s5 + $0x48] sm:$0xff] %v1344_v41  ;;  %v1357_v51 = vmax.f32 %v2297_v32, 0.0  ;;  %v1358_v42 = vmax.f32 %v2299_v63, 0.0  ;;  %v1359_v29 = vmax.f32 %v2301_v49, 0.0  ;;  %v1360_v53 = vmax.f32 %v2303_v46, 0.0 }
 0x1d4   :  { %1391 = vst [vmem:[%s2528_s5 + $0x50] sm:$0xff] %v1345_v62  ;;  %1392 = vst [vmem:[%s2528_s5 + $0x58] sm:$0xff] %v1346_v39  ;;  %v1361_v35 = vmax.f32 %v2305_v50, 0.0  ;;  %v1362_v45 = vmax.f32 %v2307_v54, 0.0  ;;  %v1363_v61 = vmax.f32 %v2309_v59, 0.0  ;;  %v1364_v40 = vmax.f32 %v2311_v2, 0.0 }
 0x1d5   :  { %1393 = vst [vmem:[%s2528_s5 + $0x60] sm:$0xff] %v1347_v20  ;;  %1394 = vst [vmem:[%s2528_s5 + $0x68] sm:$0xff] %v1348_v43  ;;  %v1365_v24 = vmax.f32 %v2313_v10, 0.0  ;;  %v1366_v0 = vmax.f32 %v2315_v18, 0.0  ;;  %v1367_v28 = vmax.f32 %v2317_v26, 0.0  ;;  %v1368_v36 = vmax.f32 %v2319_v37, 0.0 }
 0x1d6   :  { %1395 = vst [vmem:[%s2528_s5 + $0x70] sm:$0xff] %v1349_v12  ;;  %1396 = vst [vmem:[%s2528_s5 + $0x78] sm:$0xff] %v1350_v47  ;;  %v1369_v33 = vmax.f32 %v2321_v48, 0.0  ;;  %v1370_v6 = vmax.f32 %v2323_v58, 0.0  ;;  %v1371_v52 = vmax.f32 %v2325_v5, 0.0  ;;  %v1372_v14 = vmax.f32 %v2327_v15, 0.0 }
 0x1d7   :  { %1397 = vst [vmem:[%s2528_s5 + $0x80] sm:$0xff] %v1351_v16  ;;  %1398 = vst [vmem:[%s2528_s5 + $0x88] sm:$0xff] %v1352_v34  ;;  %v1373_v31 = vmax.f32 %v2329_v25, 0.0  ;;  %v1374_v7 = vmax.f32 %v2331_v38, 0.0  ;;  %v1375_v32 = vmax.f32 %v2333_v56, 0.0  ;;  %v1376_v63 = vmax.f32 %v2335_v9, 0.0 }
 0x1d8   :  { %1399 = vst [vmem:[%s2528_s5 + $0x90] sm:$0xff] %v1353_v13  ;;  %1400 = vst [vmem:[%s2528_s5 + $0x98] sm:$0xff] %v1354_v17  ;;  %v1377_v49 = vmax.f32 %v2337_v21, 0.0  ;;  %v1378_v46 = vmax.f32 %v2339_v60, 0.0  ;;  %v1379_v50 = vmax.f32 %v2341_v11, 0.0  ;;  %v1380_v54 = vmax.f32 %v2343_v3, 0.0 }
 0x1d9   :  { %1401 = vst [vmem:[%s2528_s5 + $0xa0] sm:$0xff] %v1355_v22  ;;  %1402 = vst [vmem:[%s2528_s5 + $0xa8] sm:$0xff] %v1356_v55 }
 0x1da   :  { %1403 = vst [vmem:[%s2528_s5 + $0xb0] sm:$0xff] %v1357_v51  ;;  %1404 = vst [vmem:[%s2528_s5 + $0xb8] sm:$0xff] %v1358_v42 }
 0x1db   :  { %1405 = vst [vmem:[%s2528_s5 + $0xc0] sm:$0xff] %v1359_v29  ;;  %1406 = vst [vmem:[%s2528_s5 + $0xc8] sm:$0xff] %v1360_v53 }
 0x1dc   :  { %1407 = vst [vmem:[%s2528_s5 + $0xd0] sm:$0xff] %v1361_v35  ;;  %1408 = vst [vmem:[%s2528_s5 + $0xd8] sm:$0xff] %v1362_v45 }
 0x1dd   :  { %1409 = vst [vmem:[%s2528_s5 + $0xe0] sm:$0xff] %v1363_v61  ;;  %1410 = vst [vmem:[%s2528_s5 + $0xe8] sm:$0xff] %v1364_v40 }
 0x1de   :  { %1411 = vst [vmem:[%s2528_s5 + $0xf0] sm:$0xff] %v1365_v24  ;;  %1412 = vst [vmem:[%s2528_s5 + $0xf8] sm:$0xff] %v1366_v0 }
 0x1df   :  { %1413 = vst [vmem:[%s2528_s5 + $0x100] sm:$0xff] %v1367_v28  ;;  %1414 = vst [vmem:[%s2528_s5 + $0x108] sm:$0xff] %v1368_v36 }
 0x1e0   :  { %1415 = vst [vmem:[%s2528_s5 + $0x110] sm:$0xff] %v1369_v33  ;;  %1416 = vst [vmem:[%s2528_s5 + $0x118] sm:$0xff] %v1370_v6 }
 0x1e1   :  { %1417 = vst [vmem:[%s2528_s5 + $0x120] sm:$0xff] %v1371_v52  ;;  %1418 = vst [vmem:[%s2528_s5 + $0x128] sm:$0xff] %v1372_v14 }
 0x1e2   :  { %1419 = vst [vmem:[%s2528_s5 + $0x130] sm:$0xff] %v1373_v31  ;;  %1420 = vst [vmem:[%s2528_s5 + $0x138] sm:$0xff] %v1374_v7 }
 0x1e3   :  { %1421 = vst [vmem:[%s2528_s5 + $0x140] sm:$0xff] %v1375_v32  ;;  %1422 = vst [vmem:[%s2528_s5 + $0x148] sm:$0xff] %v1376_v63 }
 0x1e4   :  { %1423 = vst [vmem:[%s2528_s5 + $0x150] sm:$0xff] %v1377_v49  ;;  %1424 = vst [vmem:[%s2528_s5 + $0x158] sm:$0xff] %v1378_v46 }
 0x1e5   :  { %1425 = vst [vmem:[%s2528_s5 + $0x160] sm:$0xff] %v1379_v50  ;;  %1426 = vst [vmem:[%s2528_s5 + $0x168] sm:$0xff] %v1380_v54 }

</bundles_post_ra>
